<compile_context>
chip_gen: v7x
topology: tpu7x:2x2x1
jax: 0.10.0
libtpu: 0.0.40
codegen_flags: <defaults>
</compile_context>

<pallas_src>
import functools
import math

import jax
import jax.numpy as jnp
from jax.experimental import pallas as pl
from jax.experimental.pallas import tpu as pltpu


def _layernorm(x, gamma, beta, eps):
    mean = jnp.mean(x, axis=-1, keepdims=True)
    var = jnp.mean(jnp.square(x - mean), axis=-1, keepdims=True)
    return (x - mean) * jax.lax.rsqrt(var + eps) * gamma + beta


def _new_gelu(x):
    # NewGELUActivation: 0.5*x*(1+tanh(sqrt(2/pi)*(x+0.044715*x^3)))
    c = math.sqrt(2.0 / math.pi)
    return 0.5 * x * (1.0 + jnp.tanh(c * (x + 0.044715 * x * x * x)))


def block_kernel(x_ref, ln1_g_ref, ln1_b_ref,
                 wq_ref, bq_ref, wkv_ref, bkv_ref, wo_ref, bo_ref,
                 ln2_g_ref, ln2_b_ref,
                 w1_ref, b1_ref, w2_ref, b2_ref,
                 out_ref,
                 x1_s, n2_s, acc_s,
                 *, num_heads, eps):
    i = pl.program_id(1)          # MLP intermediate-dim chunk index ("arbitrary")
    f32, bf16 = jnp.float32, jnp.bfloat16

    # ---------------- phase 1: attention + residual (first chunk only) -------
    @pl.when(i == 0)
    def _attention_and_residual():
        x = x_ref[0]                                       # (S, H) f32
        S, H = x.shape
        nh = num_heads
        Dh = H // nh

        n1 = _layernorm(x, ln1_g_ref[0], ln1_b_ref[0], eps)   # f32
        n1_b = n1.astype(bf16)

        # Full-width projections (full MXU width/depth). 1/sqrt(Dh) is folded
        # into wq/bq host-side. K and V are fused into one (H, 2H) matmul.
        q = (jnp.dot(n1_b, wq_ref[...], preferred_element_type=f32)
             + bq_ref[0]).astype(bf16)                         # (S, H)
        kv = jnp.dot(n1_b, wkv_ref[...], preferred_element_type=f32) + bkv_ref[0]
        k = kv[:, :H].astype(bf16)                             # (S, H)
        v = kv[:, H:].astype(bf16)                             # (S, H)

        # Per-head scores / softmax / context (static lane slices; matmuls with
        # K=N=Dh are inherent to attention). Contexts are concatenated back to
        # (S, H) so the output projection is ONE full-depth matmul.
        ctx_heads = []
        for h in range(nh):
            sl = slice(h * Dh, (h + 1) * Dh)
            qh, kh, vh = q[:, sl], k[:, sl], v[:, sl]
            s = jnp.einsum("qd,kd->qk", qh, kh,
                           preferred_element_type=f32)          # (S, S)
            s = s - jnp.max(s, axis=-1, keepdims=True)
            e = jnp.exp(s)
            p = e * pl.reciprocal(jnp.sum(e, axis=-1, keepdims=True), approx=True)
            # attn_dropout: eval-mode identity.
            ctx_heads.append(jnp.dot(p.astype(bf16), vh,
                                     preferred_element_type=f32))  # (S, Dh)
        ctx = jnp.concatenate(ctx_heads, axis=-1).astype(bf16)     # (S, H)

        attn_out = jnp.dot(ctx, wo_ref[...],
                           preferred_element_type=f32) + bo_ref[0]
        # output_dropout: eval-mode identity.

        x1 = x + attn_out                                       # residual 1
        x1_s[...] = x1
        n2_s[...] = _layernorm(x1, ln2_g_ref[0], ln2_b_ref[0], eps).astype(bf16)
        acc_s[...] = jnp.zeros_like(acc_s)

    # ---------------- phase 2: MLP, (optionally) streamed over intermediate --
    h1 = jnp.dot(n2_s[...], w1_ref[...],
                 preferred_element_type=f32) + b1_ref[0]        # (S, tI) f32
    h1 = _new_gelu(h1)                                          # f32 (EUP tanh)
    acc_s[...] += jnp.dot(h1.astype(bf16), w2_ref[...],
                          preferred_element_type=f32)

    @pl.when(i == pl.num_programs(1) - 1)
    def _finalize():
        # MLP dropout: eval-mode identity.
        out_ref[0] = (x1_s[...] + acc_s[...] + b2_ref[0]).astype(out_ref.dtype)


def _make_spec(shape, index_map, single_buffer):
    """BlockSpec; optionally single-buffered (the block is fetched only once)."""
    if single_buffer:
        try:
            return pl.BlockSpec(shape, index_map, pipeline_mode=pl.Buffered(1))
        except TypeError:      # older/newer API without pipeline_mode kwarg
            pass
    return pl.BlockSpec(shape, index_map)


def vit_block(x, params, *, num_heads, i_chunks=1, eps=1e-5,
              single_buffer_weights=False, interpret=False):
    """Fused transformer block.

    i_chunks:  number of chunks the MLP intermediate dim is streamed over.
               Keep 1 (weights resident) on v5e/v6e; raise on v7x if the MLP
               weights do not fit the 64 MiB VMEM.
    single_buffer_weights: single-buffer the constant-index weight blocks
               (VMEM saving, recommended on v7x).
    """
    B, S, H = x.shape
    I = params["w1"].shape[1]
    assert H % num_heads == 0
    Dh = H // num_heads
    assert I % i_chunks == 0
    tI = I // i_chunks
    scale = 1.0 / math.sqrt(Dh)
    f32, bf16 = jnp.float32, jnp.bfloat16

    # ---- host-side (traced, cheap) weight prep: bf16 matmul inputs ----------
    wqkv = params["wqkv"].astype(f32)                      # (H, 3H)
    bqkv = params["bqkv"].reshape(3 * H).astype(f32)       # (3H,)
    wq = (wqkv[:, :H] * scale).astype(bf16)                # scale folded in
    bq = (bqkv[:H] * scale).reshape(1, H)                  # f32, scale folded
    wkv = wqkv[:, H:].astype(bf16)                         # (H, 2H) fused K|V
    bkv = bqkv[H:].reshape(1, 2 * H)                       # (1, 2H) f32
    wo = params["wo"].astype(bf16)                         # (H, H)
    w1 = params["w1"].astype(bf16)                         # (H, I)
    w2 = params["w2"].astype(bf16)                         # (I, H)

    in_arrays = [
        x,
        params["ln1_g"].astype(f32), params["ln1_b"].astype(f32),
        wq, bq, wkv, bkv, wo, params["bo"].astype(f32),
        params["ln2_g"].astype(f32), params["ln2_b"].astype(f32),
        w1, params["b1"].astype(f32), w2, params["b2"].astype(f32),
    ]

    def fixed(shape):
        # Constant block index => DMA'd once for the whole grid.
        return _make_spec(shape, lambda b, i: (0,) * len(shape),
                          single_buffer_weights)

    # Serpentine chunk order (only meaningful when i_chunks > 1): avoids
    # re-fetching the boundary w1/w2 chunk at every batch transition.
    if i_chunks > 1:
        def _serp(b, i):
            return jnp.where(b % 2 == 0, i, i_chunks - 1 - i)
        w1_map = lambda b, i: (0, _serp(b, i))
        b1_map = lambda b, i: (0, _serp(b, i))
        w2_map = lambda b, i: (_serp(b, i), 0)
    else:
        w1_map = lambda b, i: (0, 0)
        b1_map = lambda b, i: (0, 0)
        w2_map = lambda b, i: (0, 0)

    in_specs = [
        pl.BlockSpec((1, S, H), lambda b, i: (b, 0, 0)),   # x (full sequence)
        fixed((1, H)), fixed((1, H)),                      # ln1 gamma/beta
        fixed((H, H)),                                     # wq (scaled)
        fixed((1, H)),                                     # bq (scaled)
        fixed((H, 2 * H)),                                 # wkv (fused K|V)
        fixed((1, 2 * H)),                                 # bkv
        fixed((H, H)),                                     # wo
        fixed((1, H)),                                     # bo
        fixed((1, H)), fixed((1, H)),                      # ln2 gamma/beta
        pl.BlockSpec((H, tI), w1_map),                     # w1 chunk
        pl.BlockSpec((1, tI), b1_map),                     # b1 chunk
        pl.BlockSpec((tI, H), w2_map),                     # w2 chunk
        fixed((1, H)),                                     # b2
    ]
    out_spec = pl.BlockSpec((1, S, H), lambda b, i: (b, 0, 0))
    scratch_shapes = [
        pltpu.VMEM((S, H), jnp.float32),    # x after attention residual
        pltpu.VMEM((S, H), jnp.bfloat16),   # layernorm_2 output (matmul input)
        pltpu.VMEM((S, H), jnp.float32),    # MLP output accumulator
    ]

    # ---- VMEM limit: actual block sizes, capped below the physical VMEM -----
    def nbytes(shape, dtype):
        n = 1
        for d in shape:
            n *= int(d)
        return n * jnp.dtype(dtype).itemsize

    streamed_bytes = (nbytes((1, S, H), x.dtype) * 2          # x in + out block
                      + nbytes((H, tI), bf16) + nbytes((1, tI), f32)
                      + nbytes((tI, H), bf16))
    fixed_bytes = (4 * nbytes((1, H), f32)                    # ln params
                   + nbytes((H, H), bf16) + nbytes((1, H), f32)       # wq, bq
                   + nbytes((H, 2 * H), bf16) + nbytes((1, 2 * H), f32)
                   + nbytes((H, H), bf16) + 2 * nbytes((1, H), f32))  # wo,bo,b2
    scratch_bytes = 2 * nbytes((S, H), f32) + nbytes((S, H), bf16)
    fixed_mult = 1 if single_buffer_weights else 2
    need = 2 * streamed_bytes + fixed_mult * fixed_bytes + scratch_bytes

    try:
        vmem_cap = int(getattr(pltpu.get_tpu_info(), "vmem_capacity_bytes",
                               64 << 20))
    except Exception:
        vmem_cap = 64 << 20                                   # conservative
    vmem_budget = int(0.8 * vmem_cap)                         # headroom
    vmem_limit = max(min(int(1.5 * need), vmem_budget),
                     min(16 << 20, vmem_budget))

    mm = lambda m, k, n: 2 * m * k * n
    per_batch_flops = (mm(S, H, H) + mm(S, H, 2 * H)          # Q, fused K|V
                       + num_heads * (mm(S, Dh, S) + mm(S, S, Dh))
                       + mm(S, H, H)                          # output proj
                       + mm(S, H, I) + mm(S, I, H))           # MLP
    cost = pl.CostEstimate(
        flops=int(B * per_batch_flops),
        transcendentals=int(B * (num_heads * S * S + S * I + 2 * S)),
        bytes_accessed=int(sum(int(a.size) * a.dtype.itemsize for a in in_arrays)
                           + int(x.size) * x.dtype.itemsize))

    kernel = functools.partial(block_kernel, num_heads=num_heads, eps=eps)
    return pl.pallas_call(
        kernel,
        out_shape=jax.ShapeDtypeStruct((B, S, H), x.dtype),
        grid_spec=pltpu.PrefetchScalarGridSpec(
            num_scalar_prefetch=0,
            grid=(B, i_chunks),
            in_specs=in_specs,
            out_specs=out_spec,
            scratch_shapes=scratch_shapes,
        ),
        compiler_params=pltpu.CompilerParams(
            dimension_semantics=("parallel", "arbitrary"),
            vmem_limit_bytes=vmem_limit),
        cost_estimate=cost,
        interpret=interpret,
    )(*in_arrays)


def vit_block_ref(x, params, *, num_heads, eps=1e-5):
    """Pure-JAX f32 reference (same math as the PyTorch module)."""
    B, S, H = x.shape
    hd = H // num_heads
    normed = _layernorm(x, params["ln1_g"][0], params["ln1_b"][0], eps)
    qkv = normed @ params["wqkv"] + params["bqkv"][0]
    q, k, v = jnp.split(qkv, 3, axis=-1)

    def heads(t):
        return t.reshape(B, S, num_heads, hd).transpose(0, 2, 1, 3)

    q, k, v = heads(q), heads(k), heads(v)
    scores = jnp.einsum("bhqd,bhkd->bhqk", q, k) / math.sqrt(hd)
    probs = jax.nn.softmax(scores, axis=-1)
    attn = jnp.einsum("bhqk,bhkd->bhqd", probs, v)
    attn = attn.transpose(0, 2, 1, 3).reshape(B, S, H)
    attn = attn @ params["wo"] + params["bo"][0]
    x = x + attn
    normed2 = _layernorm(x, params["ln2_g"][0], params["ln2_b"][0], eps)
    h1 = _new_gelu(normed2 @ params["w1"] + params["b1"][0])
    h2 = h1 @ params["w2"] + params["b2"][0]
    return x + h2


def init_params(key, hidden, intermediate):
    ks = jax.random.split(key, 8)
    s = 0.02
    return {
        "ln1_g": jnp.ones((1, hidden), jnp.float32),
        "ln1_b": jnp.zeros((1, hidden), jnp.float32),
        "wqkv": s * jax.random.normal(ks[0], (hidden, 3 * hidden), jnp.float32),
        "bqkv": s * jax.random.normal(ks[1], (1, 3 * hidden), jnp.float32),
        "wo":   s * jax.random.normal(ks[2], (hidden, hidden), jnp.float32),
        "bo":   s * jax.random.normal(ks[3], (1, hidden), jnp.float32),
        "ln2_g": jnp.ones((1, hidden), jnp.float32),
        "ln2_b": jnp.zeros((1, hidden), jnp.float32),
        "w1":   s * jax.random.normal(ks[4], (hidden, intermediate), jnp.float32),
        "b1":   s * jax.random.normal(ks[5], (1, intermediate), jnp.float32),
        "w2":   s * jax.random.normal(ks[6], (intermediate, hidden), jnp.float32),
        "b2":   s * jax.random.normal(ks[7], (1, hidden), jnp.float32),
    }


if __name__ == "__main__":
    # Small but lane/sublane-aligned shapes (S, H multiples of 128, head=64).
    B, S, H, NH, I = 2, 128, 128, 2, 512
    key = jax.random.PRNGKey(0)
    kx, kp = jax.random.split(key)
    x = jax.random.normal(kx, (B, S, H), jnp.float32)
    params = init_params(kp, H, I)
    ref = vit_block_ref(x, params, num_heads=NH)

    # Recommended config (v5e/v6e; also fine on v7x at these sizes):
    # MLP weights resident, single pass over the intermediate dim.
    fn = jax.jit(functools.partial(vit_block, num_heads=NH, i_chunks=1))
    out = jax.block_until_ready(fn(x, params))
    assert out.shape == (B, S, H)
    err = float(jnp.max(jnp.abs(out - ref)))
    assert jnp.allclose(out, ref, atol=2e-2, rtol=2e-2), f"mismatch: {err}"

    # Streamed-MLP config (what a VMEM-limited v7x layer would use) to validate
    # the chunked accumulation path as well.
    fn2 = jax.jit(functools.partial(vit_block, num_heads=NH, i_chunks=2))
    out2 = jax.block_until_ready(fn2(x, params))
    err2 = float(jnp.max(jnp.abs(out2 - ref)))
    assert jnp.allclose(out2, ref, atol=2e-2, rtol=2e-2), f"mismatch: {err2}"

    print("KERNEL_OK")
</pallas_src>

<mosaic_0001>
module attributes {stable_mosaic.version = 11 : i64} {
  func.func @block_kernel(%arg0: i32, %arg1: i32, %arg2: memref<1x128x128xf32, #tpu.memory_space<vmem>>, %arg3: memref<1x128xf32, #tpu.memory_space<vmem>>, %arg4: memref<1x128xf32, #tpu.memory_space<vmem>>, %arg5: memref<128x128xbf16, #tpu.memory_space<vmem>>, %arg6: memref<1x128xf32, #tpu.memory_space<vmem>>, %arg7: memref<128x256xbf16, #tpu.memory_space<vmem>>, %arg8: memref<1x256xf32, #tpu.memory_space<vmem>>, %arg9: memref<128x128xbf16, #tpu.memory_space<vmem>>, %arg10: memref<1x128xf32, #tpu.memory_space<vmem>>, %arg11: memref<1x128xf32, #tpu.memory_space<vmem>>, %arg12: memref<1x128xf32, #tpu.memory_space<vmem>>, %arg13: memref<128x512xbf16, #tpu.memory_space<vmem>>, %arg14: memref<1x512xf32, #tpu.memory_space<vmem>>, %arg15: memref<512x128xbf16, #tpu.memory_space<vmem>>, %arg16: memref<1x128xf32, #tpu.memory_space<vmem>>, %arg17: memref<1x128x128xf32, #tpu.memory_space<vmem>>, %arg18: memref<128x128xf32, #tpu.memory_space<vmem>>, %arg19: memref<128x128xbf16, #tpu.memory_space<vmem>>, %arg20: memref<128x128xf32, #tpu.memory_space<vmem>>) attributes {dimension_semantics = [#tpu.dimension_semantics<parallel>, #tpu.dimension_semantics<arbitrary>], iteration_bounds = array<i64: 2, 1>, scalar_prefetch = 0 : i64, scratch_operands = 3 : i64, tpu.core_type = #tpu.core_type<tc>, window_params = [{transform_indices = @transform_0, window_bounds = array<i64: 1, 128, 128>}, {pipeline_mode = #tpu.pipeline_mode<synchronous>, transform_indices = @transform_1, window_bounds = array<i64: 1, 128>}, {pipeline_mode = #tpu.pipeline_mode<synchronous>, transform_indices = @transform_2, window_bounds = array<i64: 1, 128>}, {pipeline_mode = #tpu.pipeline_mode<synchronous>, transform_indices = @transform_3, window_bounds = array<i64: 128, 128>}, {pipeline_mode = #tpu.pipeline_mode<synchronous>, transform_indices = @transform_4, window_bounds = array<i64: 1, 128>}, {pipeline_mode = #tpu.pipeline_mode<synchronous>, transform_indices = @transform_5, window_bounds = array<i64: 128, 256>}, {pipeline_mode = #tpu.pipeline_mode<synchronous>, transform_indices = @transform_6, window_bounds = array<i64: 1, 256>}, {pipeline_mode = #tpu.pipeline_mode<synchronous>, transform_indices = @transform_7, window_bounds = array<i64: 128, 128>}, {pipeline_mode = #tpu.pipeline_mode<synchronous>, transform_indices = @transform_8, window_bounds = array<i64: 1, 128>}, {pipeline_mode = #tpu.pipeline_mode<synchronous>, transform_indices = @transform_9, window_bounds = array<i64: 1, 128>}, {pipeline_mode = #tpu.pipeline_mode<synchronous>, transform_indices = @transform_10, window_bounds = array<i64: 1, 128>}, {pipeline_mode = #tpu.pipeline_mode<synchronous>, transform_indices = @transform_11, window_bounds = array<i64: 128, 512>}, {pipeline_mode = #tpu.pipeline_mode<synchronous>, transform_indices = @transform_12, window_bounds = array<i64: 1, 512>}, {pipeline_mode = #tpu.pipeline_mode<synchronous>, transform_indices = @transform_13, window_bounds = array<i64: 512, 128>}, {pipeline_mode = #tpu.pipeline_mode<synchronous>, transform_indices = @transform_14, window_bounds = array<i64: 1, 128>}, {transform_indices = @transform_15, window_bounds = array<i64: 1, 128, 128>}]} {
    %c0_i32 = arith.constant 0 : i32
    %0 = arith.cmpi eq, %arg1, %c0_i32 : i32
    %1 = arith.extui %0 : i1 to i32
    %c0_i32_0 = arith.constant 0 : i32
    %2 = arith.cmpi ne, %1, %c0_i32_0 : i32
    scf.if %2 {
      %c0_19 = arith.constant 0 : index
      %c0_20 = arith.constant 0 : index
      %c0_21 = arith.constant 0 : index
      %33 = vector.load %arg2[%c0_19, %c0_20, %c0_21] : memref<1x128x128xf32, #tpu.memory_space<vmem>>, vector<1x128x128xf32>
      %34 = vector.shape_cast %33 : vector<1x128x128xf32> to vector<128x128xf32>
      %c0_22 = arith.constant 0 : index
      %c0_23 = arith.constant 0 : index
      %35 = vector.load %arg3[%c0_22, %c0_23] : memref<1x128xf32, #tpu.memory_space<vmem>>, vector<1x128xf32>
      %36 = vector.shape_cast %35 : vector<1x128xf32> to vector<128xf32>
      %c0_24 = arith.constant 0 : index
      %c0_25 = arith.constant 0 : index
      %37 = vector.load %arg4[%c0_24, %c0_25] : memref<1x128xf32, #tpu.memory_space<vmem>>, vector<1x128xf32>
      %38 = vector.shape_cast %37 : vector<1x128xf32> to vector<128xf32>
      %cst_26 = arith.constant dense<0.000000e+00> : vector<128xf32>
      %39 = vector.multi_reduction <add>, %34, %cst_26 [1] : vector<128x128xf32> to vector<128xf32>
      %40 = vector.shape_cast %39 : vector<128xf32> to vector<128x1xf32>
      %cst_27 = arith.constant 1.280000e+02 : f32
      %41 = vector.broadcast %cst_27 : f32 to vector<128x1xf32>
      %42 = arith.divf %40, %41 : vector<128x1xf32>
      %43 = vector.broadcast %42 : vector<128x1xf32> to vector<128x128xf32>
      %44 = arith.subf %34, %43 : vector<128x128xf32>
      %45 = arith.mulf %44, %44 : vector<128x128xf32>
      %cst_28 = arith.constant dense<0.000000e+00> : vector<128xf32>
      %46 = vector.multi_reduction <add>, %45, %cst_28 [1] : vector<128x128xf32> to vector<128xf32>
      %47 = vector.shape_cast %46 : vector<128xf32> to vector<128x1xf32>
      %cst_29 = arith.constant 1.280000e+02 : f32
      %48 = vector.broadcast %cst_29 : f32 to vector<128x1xf32>
      %49 = arith.divf %47, %48 : vector<128x1xf32>
      %50 = vector.broadcast %42 : vector<128x1xf32> to vector<128x128xf32>
      %51 = arith.subf %34, %50 : vector<128x128xf32>
      %cst_30 = arith.constant 9.99999974E-6 : f32
      %52 = vector.broadcast %cst_30 : f32 to vector<128x1xf32>
      %53 = arith.addf %49, %52 : vector<128x1xf32>
      %54 = math.rsqrt %53 : vector<128x1xf32>
      %55 = vector.broadcast %54 : vector<128x1xf32> to vector<128x128xf32>
      %56 = arith.mulf %51, %55 : vector<128x128xf32>
      %57 = vector.shape_cast %36 : vector<128xf32> to vector<1x128xf32>
      %58 = vector.broadcast %57 : vector<1x128xf32> to vector<128x128xf32>
      %59 = arith.mulf %56, %58 : vector<128x128xf32>
      %60 = vector.shape_cast %38 : vector<128xf32> to vector<1x128xf32>
      %61 = vector.broadcast %60 : vector<1x128xf32> to vector<128x128xf32>
      %62 = arith.addf %59, %61 : vector<128x128xf32>
      %63 = arith.truncf %62 : vector<128x128xf32> to vector<128x128xbf16>
      %c0_31 = arith.constant 0 : index
      %c0_32 = arith.constant 0 : index
      %64 = vector.load %arg5[%c0_31, %c0_32] : memref<128x128xbf16, #tpu.memory_space<vmem>>, vector<128x128xbf16>
      %cst_33 = arith.constant dense<0.000000e+00> : vector<128x128xf32>
      %65 = tpu.matmul %63, %64, %cst_33 {dimension_numbers = #tpu.dot_dimension_numbers<[1], [0], [0], [1], [0, 0, 1, 1], [], []>} : vector<128x128xbf16>, vector<128x128xbf16>, vector<128x128xf32> -> vector<128x128xf32>
      %c0_34 = arith.constant 0 : index
      %c0_35 = arith.constant 0 : index
      %66 = vector.load %arg6[%c0_34, %c0_35] : memref<1x128xf32, #tpu.memory_space<vmem>>, vector<1x128xf32>
      %67 = vector.shape_cast %66 : vector<1x128xf32> to vector<128xf32>
      %68 = vector.shape_cast %67 : vector<128xf32> to vector<1x128xf32>
      %69 = vector.broadcast %68 : vector<1x128xf32> to vector<128x128xf32>
      %70 = arith.addf %65, %69 : vector<128x128xf32>
      %71 = arith.truncf %70 : vector<128x128xf32> to vector<128x128xbf16>
      %c0_36 = arith.constant 0 : index
      %c0_37 = arith.constant 0 : index
      %72 = vector.load %arg7[%c0_36, %c0_37] : memref<128x256xbf16, #tpu.memory_space<vmem>>, vector<128x256xbf16>
      %cst_38 = arith.constant dense<0.000000e+00> : vector<128x256xf32>
      %73 = tpu.matmul %63, %72, %cst_38 {dimension_numbers = #tpu.dot_dimension_numbers<[1], [0], [0], [1], [0, 0, 1, 1], [], []>} : vector<128x128xbf16>, vector<128x256xbf16>, vector<128x256xf32> -> vector<128x256xf32>
      %c0_39 = arith.constant 0 : index
      %c0_40 = arith.constant 0 : index
      %74 = vector.load %arg8[%c0_39, %c0_40] : memref<1x256xf32, #tpu.memory_space<vmem>>, vector<1x256xf32>
      %75 = vector.shape_cast %74 : vector<1x256xf32> to vector<256xf32>
      %76 = vector.shape_cast %75 : vector<256xf32> to vector<1x256xf32>
      %77 = vector.broadcast %76 : vector<1x256xf32> to vector<128x256xf32>
      %78 = arith.addf %73, %77 : vector<128x256xf32>
      %79 = vector.extract_strided_slice %78 {offsets = [0, 0], sizes = [128, 128], strides = [1, 1]} : vector<128x256xf32> to vector<128x128xf32>
      %80 = arith.truncf %79 : vector<128x128xf32> to vector<128x128xbf16>
      %81 = vector.extract_strided_slice %78 {offsets = [0, 128], sizes = [128, 128], strides = [1, 1]} : vector<128x256xf32> to vector<128x128xf32>
      %82 = arith.truncf %81 : vector<128x128xf32> to vector<128x128xbf16>
      %83 = vector.extract_strided_slice %71 {offsets = [0, 0], sizes = [128, 64], strides = [1, 1]} : vector<128x128xbf16> to vector<128x64xbf16>
      %84 = vector.extract_strided_slice %80 {offsets = [0, 0], sizes = [128, 64], strides = [1, 1]} : vector<128x128xbf16> to vector<128x64xbf16>
      %85 = vector.extract_strided_slice %82 {offsets = [0, 0], sizes = [128, 64], strides = [1, 1]} : vector<128x128xbf16> to vector<128x64xbf16>
      "tpu.trace_start"() <{level = 10 : i32, message = "qd,kd->qk"}> : () -> ()
      %cst_41 = arith.constant dense<0.000000e+00> : vector<128x128xf32>
      %86 = tpu.matmul %83, %84, %cst_41 {dimension_numbers = #tpu.dot_dimension_numbers<[1], [1], [0], [0], [0, 0, 1, 0], [], []>} : vector<128x64xbf16>, vector<128x64xbf16>, vector<128x128xf32> -> vector<128x128xf32>
      "tpu.trace_stop"() : () -> ()
      %cst_42 = arith.constant dense<0xFF800000> : vector<128xf32>
      %87 = vector.multi_reduction <maximumf>, %86, %cst_42 [1] : vector<128x128xf32> to vector<128xf32>
      %88 = vector.shape_cast %87 : vector<128xf32> to vector<128x1xf32>
      %89 = vector.broadcast %88 : vector<128x1xf32> to vector<128x128xf32>
      %90 = arith.subf %86, %89 : vector<128x128xf32>
      %91 = math.exp %90 : vector<128x128xf32>
      %cst_43 = arith.constant dense<0.000000e+00> : vector<128xf32>
      %92 = vector.multi_reduction <add>, %91, %cst_43 [1] : vector<128x128xf32> to vector<128xf32>
      %93 = vector.shape_cast %92 : vector<128xf32> to vector<128x1xf32>
      %94 = tpu.reciprocal %93 {approx = true} : vector<128x1xf32> -> vector<128x1xf32>
      %95 = vector.broadcast %94 : vector<128x1xf32> to vector<128x128xf32>
      %96 = arith.mulf %91, %95 : vector<128x128xf32>
      %97 = arith.truncf %96 : vector<128x128xf32> to vector<128x128xbf16>
      %cst_44 = arith.constant dense<0.000000e+00> : vector<128x64xf32>
      %98 = tpu.matmul %97, %85, %cst_44 {dimension_numbers = #tpu.dot_dimension_numbers<[1], [0], [0], [1], [0, 0, 1, 1], [], []>} : vector<128x128xbf16>, vector<128x64xbf16>, vector<128x64xf32> -> vector<128x64xf32>
      %99 = vector.extract_strided_slice %71 {offsets = [0, 64], sizes = [128, 64], strides = [1, 1]} : vector<128x128xbf16> to vector<128x64xbf16>
      %100 = vector.extract_strided_slice %80 {offsets = [0, 64], sizes = [128, 64], strides = [1, 1]} : vector<128x128xbf16> to vector<128x64xbf16>
      %101 = vector.extract_strided_slice %82 {offsets = [0, 64], sizes = [128, 64], strides = [1, 1]} : vector<128x128xbf16> to vector<128x64xbf16>
      "tpu.trace_start"() <{level = 10 : i32, message = "qd,kd->qk"}> : () -> ()
      %cst_45 = arith.constant dense<0.000000e+00> : vector<128x128xf32>
      %102 = tpu.matmul %99, %100, %cst_45 {dimension_numbers = #tpu.dot_dimension_numbers<[1], [1], [0], [0], [0, 0, 1, 0], [], []>} : vector<128x64xbf16>, vector<128x64xbf16>, vector<128x128xf32> -> vector<128x128xf32>
      "tpu.trace_stop"() : () -> ()
      %cst_46 = arith.constant dense<0xFF800000> : vector<128xf32>
      %103 = vector.multi_reduction <maximumf>, %102, %cst_46 [1] : vector<128x128xf32> to vector<128xf32>
      %104 = vector.shape_cast %103 : vector<128xf32> to vector<128x1xf32>
      %105 = vector.broadcast %104 : vector<128x1xf32> to vector<128x128xf32>
      %106 = arith.subf %102, %105 : vector<128x128xf32>
      %107 = math.exp %106 : vector<128x128xf32>
      %cst_47 = arith.constant dense<0.000000e+00> : vector<128xf32>
      %108 = vector.multi_reduction <add>, %107, %cst_47 [1] : vector<128x128xf32> to vector<128xf32>
      %109 = vector.shape_cast %108 : vector<128xf32> to vector<128x1xf32>
      %110 = tpu.reciprocal %109 {approx = true} : vector<128x1xf32> -> vector<128x1xf32>
      %111 = vector.broadcast %110 : vector<128x1xf32> to vector<128x128xf32>
      %112 = arith.mulf %107, %111 : vector<128x128xf32>
      %113 = arith.truncf %112 : vector<128x128xf32> to vector<128x128xbf16>
      %cst_48 = arith.constant dense<0.000000e+00> : vector<128x64xf32>
      %114 = tpu.matmul %113, %101, %cst_48 {dimension_numbers = #tpu.dot_dimension_numbers<[1], [0], [0], [1], [0, 0, 1, 1], [], []>} : vector<128x128xbf16>, vector<128x64xbf16>, vector<128x64xf32> -> vector<128x64xf32>
      %115 = tpu.concatenate %98, %114 in 1 : vector<128x64xf32>, vector<128x64xf32> -> vector<128x128xf32>
      %116 = arith.truncf %115 : vector<128x128xf32> to vector<128x128xbf16>
      %c0_49 = arith.constant 0 : index
      %c0_50 = arith.constant 0 : index
      %117 = vector.load %arg9[%c0_49, %c0_50] : memref<128x128xbf16, #tpu.memory_space<vmem>>, vector<128x128xbf16>
      %cst_51 = arith.constant dense<0.000000e+00> : vector<128x128xf32>
      %118 = tpu.matmul %116, %117, %cst_51 {dimension_numbers = #tpu.dot_dimension_numbers<[1], [0], [0], [1], [0, 0, 1, 1], [], []>} : vector<128x128xbf16>, vector<128x128xbf16>, vector<128x128xf32> -> vector<128x128xf32>
      %c0_52 = arith.constant 0 : index
      %c0_53 = arith.constant 0 : index
      %119 = vector.load %arg10[%c0_52, %c0_53] : memref<1x128xf32, #tpu.memory_space<vmem>>, vector<1x128xf32>
      %120 = vector.shape_cast %119 : vector<1x128xf32> to vector<128xf32>
      %121 = vector.shape_cast %120 : vector<128xf32> to vector<1x128xf32>
      %122 = vector.broadcast %121 : vector<1x128xf32> to vector<128x128xf32>
      %123 = arith.addf %118, %122 : vector<128x128xf32>
      %124 = arith.addf %34, %123 : vector<128x128xf32>
      %c0_54 = arith.constant 0 : index
      %c0_55 = arith.constant 0 : index
      %125 = vector.load %arg18[%c0_54, %c0_55] : memref<128x128xf32, #tpu.memory_space<vmem>>, vector<128x128xf32>
      tpu.vector_store %arg18[%c0_54, %c0_55], %124 {strides = array<i32>} : memref<128x128xf32, #tpu.memory_space<vmem>>, vector<128x128xf32>,
      %c0_56 = arith.constant 0 : index
      %c0_57 = arith.constant 0 : index
      %126 = vector.load %arg11[%c0_56, %c0_57] : memref<1x128xf32, #tpu.memory_space<vmem>>, vector<1x128xf32>
      %127 = vector.shape_cast %126 : vector<1x128xf32> to vector<128xf32>
      %c0_58 = arith.constant 0 : index
      %c0_59 = arith.constant 0 : index
      %128 = vector.load %arg12[%c0_58, %c0_59] : memref<1x128xf32, #tpu.memory_space<vmem>>, vector<1x128xf32>
      %129 = vector.shape_cast %128 : vector<1x128xf32> to vector<128xf32>
      %cst_60 = arith.constant dense<0.000000e+00> : vector<128xf32>
      %130 = vector.multi_reduction <add>, %124, %cst_60 [1] : vector<128x128xf32> to vector<128xf32>
      %131 = vector.shape_cast %130 : vector<128xf32> to vector<128x1xf32>
      %cst_61 = arith.constant 1.280000e+02 : f32
      %132 = vector.broadcast %cst_61 : f32 to vector<128x1xf32>
      %133 = arith.divf %131, %132 : vector<128x1xf32>
      %134 = vector.broadcast %133 : vector<128x1xf32> to vector<128x128xf32>
      %135 = arith.subf %124, %134 : vector<128x128xf32>
      %136 = arith.mulf %135, %135 : vector<128x128xf32>
      %cst_62 = arith.constant dense<0.000000e+00> : vector<128xf32>
      %137 = vector.multi_reduction <add>, %136, %cst_62 [1] : vector<128x128xf32> to vector<128xf32>
      %138 = vector.shape_cast %137 : vector<128xf32> to vector<128x1xf32>
      %cst_63 = arith.constant 1.280000e+02 : f32
      %139 = vector.broadcast %cst_63 : f32 to vector<128x1xf32>
      %140 = arith.divf %138, %139 : vector<128x1xf32>
      %141 = vector.broadcast %133 : vector<128x1xf32> to vector<128x128xf32>
      %142 = arith.subf %124, %141 : vector<128x128xf32>
      %cst_64 = arith.constant 9.99999974E-6 : f32
      %143 = vector.broadcast %cst_64 : f32 to vector<128x1xf32>
      %144 = arith.addf %140, %143 : vector<128x1xf32>
      %145 = math.rsqrt %144 : vector<128x1xf32>
      %146 = vector.broadcast %145 : vector<128x1xf32> to vector<128x128xf32>
      %147 = arith.mulf %142, %146 : vector<128x128xf32>
      %148 = vector.shape_cast %127 : vector<128xf32> to vector<1x128xf32>
      %149 = vector.broadcast %148 : vector<1x128xf32> to vector<128x128xf32>
      %150 = arith.mulf %147, %149 : vector<128x128xf32>
      %151 = vector.shape_cast %129 : vector<128xf32> to vector<1x128xf32>
      %152 = vector.broadcast %151 : vector<1x128xf32> to vector<128x128xf32>
      %153 = arith.addf %150, %152 : vector<128x128xf32>
      %154 = arith.truncf %153 : vector<128x128xf32> to vector<128x128xbf16>
      %c0_65 = arith.constant 0 : index
      %c0_66 = arith.constant 0 : index
      %155 = vector.load %arg19[%c0_65, %c0_66] : memref<128x128xbf16, #tpu.memory_space<vmem>>, vector<128x128xbf16>
      tpu.vector_store %arg19[%c0_65, %c0_66], %154 {strides = array<i32>} : memref<128x128xbf16, #tpu.memory_space<vmem>>, vector<128x128xbf16>,
      %cst_67 = arith.constant 0.000000e+00 : f32
      %156 = vector.broadcast %cst_67 : f32 to vector<128x128xf32>
      %c0_68 = arith.constant 0 : index
      %c0_69 = arith.constant 0 : index
      %157 = vector.load %arg20[%c0_68, %c0_69] : memref<128x128xf32, #tpu.memory_space<vmem>>, vector<128x128xf32>
      tpu.vector_store %arg20[%c0_68, %c0_69], %156 {strides = array<i32>} : memref<128x128xf32, #tpu.memory_space<vmem>>, vector<128x128xf32>,
    } else {
    }
    %c0 = arith.constant 0 : index
    %c0_1 = arith.constant 0 : index
    %3 = vector.load %arg19[%c0, %c0_1] : memref<128x128xbf16, #tpu.memory_space<vmem>>, vector<128x128xbf16>
    %c0_2 = arith.constant 0 : index
    %c0_3 = arith.constant 0 : index
    %4 = vector.load %arg13[%c0_2, %c0_3] : memref<128x512xbf16, #tpu.memory_space<vmem>>, vector<128x512xbf16>
    %cst = arith.constant dense<0.000000e+00> : vector<128x512xf32>
    %5 = tpu.matmul %3, %4, %cst {dimension_numbers = #tpu.dot_dimension_numbers<[1], [0], [0], [1], [0, 0, 1, 1], [], []>} : vector<128x128xbf16>, vector<128x512xbf16>, vector<128x512xf32> -> vector<128x512xf32>
    %c0_4 = arith.constant 0 : index
    %c0_5 = arith.constant 0 : index
    %6 = vector.load %arg14[%c0_4, %c0_5] : memref<1x512xf32, #tpu.memory_space<vmem>>, vector<1x512xf32>
    %7 = vector.shape_cast %6 : vector<1x512xf32> to vector<512xf32>
    %8 = vector.shape_cast %7 : vector<512xf32> to vector<1x512xf32>
    %9 = vector.broadcast %8 : vector<1x512xf32> to vector<128x512xf32>
    %10 = arith.addf %5, %9 : vector<128x512xf32>
    %cst_6 = arith.constant 5.000000e-01 : f32
    %11 = vector.broadcast %cst_6 : f32 to vector<128x512xf32>
    %12 = arith.mulf %11, %10 : vector<128x512xf32>
    %cst_7 = arith.constant 4.471500e-02 : f32
    %13 = vector.broadcast %cst_7 : f32 to vector<128x512xf32>
    %14 = arith.mulf %13, %10 : vector<128x512xf32>
    %15 = arith.mulf %14, %10 : vector<128x512xf32>
    %16 = arith.mulf %15, %10 : vector<128x512xf32>
    %17 = arith.addf %10, %16 : vector<128x512xf32>
    %cst_8 = arith.constant 0.797884583 : f32
    %18 = vector.broadcast %cst_8 : f32 to vector<128x512xf32>
    %19 = arith.mulf %18, %17 : vector<128x512xf32>
    %20 = math.tanh %19 : vector<128x512xf32>
    %cst_9 = arith.constant 1.000000e+00 : f32
    %21 = vector.broadcast %cst_9 : f32 to vector<128x512xf32>
    %22 = arith.addf %21, %20 : vector<128x512xf32>
    %23 = arith.mulf %12, %22 : vector<128x512xf32>
    %c0_10 = arith.constant 0 : index
    %c0_11 = arith.constant 0 : index
    %24 = vector.load %arg20[%c0_10, %c0_11] : memref<128x128xf32, #tpu.memory_space<vmem>>, vector<128x128xf32>
    %25 = arith.truncf %23 : vector<128x512xf32> to vector<128x512xbf16>
    %c0_12 = arith.constant 0 : index
    %c0_13 = arith.constant 0 : index
    %26 = vector.load %arg15[%c0_12, %c0_13] : memref<512x128xbf16, #tpu.memory_space<vmem>>, vector<512x128xbf16>
    %cst_14 = arith.constant dense<0.000000e+00> : vector<128x128xf32>
    %27 = tpu.matmul %25, %26, %cst_14 {dimension_numbers = #tpu.dot_dimension_numbers<[1], [0], [0], [1], [0, 0, 1, 1], [], []>} : vector<128x512xbf16>, vector<512x128xbf16>, vector<128x128xf32> -> vector<128x128xf32>
    %28 = arith.addf %24, %27 : vector<128x128xf32>
    %c0_15 = arith.constant 0 : index
    %c0_16 = arith.constant 0 : index
    %29 = vector.load %arg20[%c0_15, %c0_16] : memref<128x128xf32, #tpu.memory_space<vmem>>, vector<128x128xf32>
    tpu.vector_store %arg20[%c0_15, %c0_16], %28 {strides = array<i32>} : memref<128x128xf32, #tpu.memory_space<vmem>>, vector<128x128xf32>,
    %c0_i32_17 = arith.constant 0 : i32
    %30 = arith.cmpi eq, %arg1, %c0_i32_17 : i32
    %31 = arith.extui %30 : i1 to i32
    %c0_i32_18 = arith.constant 0 : i32
    %32 = arith.cmpi ne, %31, %c0_i32_18 : i32
    scf.if %32 {
      %c0_19 = arith.constant 0 : index
      %c0_20 = arith.constant 0 : index
      %33 = vector.load %arg18[%c0_19, %c0_20] : memref<128x128xf32, #tpu.memory_space<vmem>>, vector<128x128xf32>
      %c0_21 = arith.constant 0 : index
      %c0_22 = arith.constant 0 : index
      %34 = vector.load %arg20[%c0_21, %c0_22] : memref<128x128xf32, #tpu.memory_space<vmem>>, vector<128x128xf32>
      %35 = arith.addf %33, %34 : vector<128x128xf32>
      %c0_23 = arith.constant 0 : index
      %c0_24 = arith.constant 0 : index
      %36 = vector.load %arg16[%c0_23, %c0_24] : memref<1x128xf32, #tpu.memory_space<vmem>>, vector<1x128xf32>
      %37 = vector.shape_cast %36 : vector<1x128xf32> to vector<128xf32>
      %38 = vector.shape_cast %37 : vector<128xf32> to vector<1x128xf32>
      %39 = vector.broadcast %38 : vector<1x128xf32> to vector<128x128xf32>
      %40 = arith.addf %35, %39 : vector<128x128xf32>
      %c0_25 = arith.constant 0 : index
      %c0_26 = arith.constant 0 : index
      %c0_27 = arith.constant 0 : index
      %41 = vector.load %arg17[%c0_25, %c0_26, %c0_27] : memref<1x128x128xf32, #tpu.memory_space<vmem>>, vector<1x128x128xf32>
      %42 = vector.shape_cast %41 : vector<1x128x128xf32> to vector<128x128xf32>
      %43 = vector.shape_cast %40 : vector<128x128xf32> to vector<1x128x128xf32>
      tpu.vector_store %arg17[%c0_25, %c0_26, %c0_27], %43 {strides = array<i32>} : memref<1x128x128xf32, #tpu.memory_space<vmem>>, vector<1x128x128xf32>,
    } else {
    }
    return
  }
  func.func @transform_0(%arg0: i32, %arg1: i32) -> (i32, i32, i32) {
    %c0_i32 = arith.constant 0 : i32
    %c0_i32_0 = arith.constant 0 : i32
    %c0_i32_1 = arith.constant 0 : i32
    return %arg0, %c0_i32, %c0_i32_0 : i32, i32, i32
  }
  func.func @transform_1(%arg0: i32, %arg1: i32) -> (i32, i32) {
    %c0_i32 = arith.constant 0 : i32
    %c0_i32_0 = arith.constant 0 : i32
    %c0_i32_1 = arith.constant 0 : i32
    return %c0_i32, %c0_i32_0 : i32, i32
  }
  func.func @transform_2(%arg0: i32, %arg1: i32) -> (i32, i32) {
    %c0_i32 = arith.constant 0 : i32
    %c0_i32_0 = arith.constant 0 : i32
    %c0_i32_1 = arith.constant 0 : i32
    return %c0_i32, %c0_i32_0 : i32, i32
  }
  func.func @transform_3(%arg0: i32, %arg1: i32) -> (i32, i32) {
    %c0_i32 = arith.constant 0 : i32
    %c0_i32_0 = arith.constant 0 : i32
    %c0_i32_1 = arith.constant 0 : i32
    return %c0_i32, %c0_i32_0 : i32, i32
  }
  func.func @transform_4(%arg0: i32, %arg1: i32) -> (i32, i32) {
    %c0_i32 = arith.constant 0 : i32
    %c0_i32_0 = arith.constant 0 : i32
    %c0_i32_1 = arith.constant 0 : i32
    return %c0_i32, %c0_i32_0 : i32, i32
  }
  func.func @transform_5(%arg0: i32, %arg1: i32) -> (i32, i32) {
    %c0_i32 = arith.constant 0 : i32
    %c0_i32_0 = arith.constant 0 : i32
    %c0_i32_1 = arith.constant 0 : i32
    return %c0_i32, %c0_i32_0 : i32, i32
  }
  func.func @transform_6(%arg0: i32, %arg1: i32) -> (i32, i32) {
    %c0_i32 = arith.constant 0 : i32
    %c0_i32_0 = arith.constant 0 : i32
    %c0_i32_1 = arith.constant 0 : i32
    return %c0_i32, %c0_i32_0 : i32, i32
  }
  func.func @transform_7(%arg0: i32, %arg1: i32) -> (i32, i32) {
    %c0_i32 = arith.constant 0 : i32
    %c0_i32_0 = arith.constant 0 : i32
    %c0_i32_1 = arith.constant 0 : i32
    return %c0_i32, %c0_i32_0 : i32, i32
  }
  func.func @transform_8(%arg0: i32, %arg1: i32) -> (i32, i32) {
    %c0_i32 = arith.constant 0 : i32
    %c0_i32_0 = arith.constant 0 : i32
    %c0_i32_1 = arith.constant 0 : i32
    return %c0_i32, %c0_i32_0 : i32, i32
  }
  func.func @transform_9(%arg0: i32, %arg1: i32) -> (i32, i32) {
    %c0_i32 = arith.constant 0 : i32
    %c0_i32_0 = arith.constant 0 : i32
    %c0_i32_1 = arith.constant 0 : i32
    return %c0_i32, %c0_i32_0 : i32, i32
  }
  func.func @transform_10(%arg0: i32, %arg1: i32) -> (i32, i32) {
    %c0_i32 = arith.constant 0 : i32
    %c0_i32_0 = arith.constant 0 : i32
    %c0_i32_1 = arith.constant 0 : i32
    return %c0_i32, %c0_i32_0 : i32, i32
  }
  func.func @transform_11(%arg0: i32, %arg1: i32) -> (i32, i32) {
    %c0_i32 = arith.constant 0 : i32
    %c0_i32_0 = arith.constant 0 : i32
    %c0_i32_1 = arith.constant 0 : i32
    return %c0_i32, %c0_i32_0 : i32, i32
  }
  func.func @transform_12(%arg0: i32, %arg1: i32) -> (i32, i32) {
    %c0_i32 = arith.constant 0 : i32
    %c0_i32_0 = arith.constant 0 : i32
    %c0_i32_1 = arith.constant 0 : i32
    return %c0_i32, %c0_i32_0 : i32, i32
  }
  func.func @transform_13(%arg0: i32, %arg1: i32) -> (i32, i32) {
    %c0_i32 = arith.constant 0 : i32
    %c0_i32_0 = arith.constant 0 : i32
    %c0_i32_1 = arith.constant 0 : i32
    return %c0_i32, %c0_i32_0 : i32, i32
  }
  func.func @transform_14(%arg0: i32, %arg1: i32) -> (i32, i32) {
    %c0_i32 = arith.constant 0 : i32
    %c0_i32_0 = arith.constant 0 : i32
    %c0_i32_1 = arith.constant 0 : i32
    return %c0_i32, %c0_i32_0 : i32, i32
  }
  func.func @transform_15(%arg0: i32, %arg1: i32) -> (i32, i32, i32) {
    %c0_i32 = arith.constant 0 : i32
    %c0_i32_0 = arith.constant 0 : i32
    %c0_i32_1 = arith.constant 0 : i32
    return %arg0, %c0_i32, %c0_i32_0 : i32, i32, i32
  }
}

</mosaic_0001>

<bundles_post_ra>
// kernel: vit_block.1
= control target key start
LH: loop header
LB: loop body
LE: loop exit
PB: predicated region body
PF: predicated region fallthrough
CT: control target
= control target key end

     0   :  { %s7902_s0 = inlined_call_operand.vmem [shape: f32[2,128,128], index: 0, kind: input, shape index: {}]   ;;  %s7903_s1 = inlined_call_operand.vmem [shape: f32[1,128], index: 1, kind: input, shape index: {}]   ;;  %s7904_s2 = inlined_call_operand.vmem [shape: f32[1,128], index: 2, kind: input, shape index: {}]   ;;  %s7905_s3 = inlined_call_operand.vmem [shape: bf16[128,128], index: 3, kind: input, shape index: {}]   ;;  %s7906_s4 = inlined_call_operand.vmem [shape: f32[1,128], index: 4, kind: input, shape index: {}]   ;;  %s7907_s5 = inlined_call_operand.vmem [shape: bf16[128,256], index: 5, kind: input, shape index: {}]   ;;  %s7908_s6 = inlined_call_operand.vmem [shape: f32[1,256], index: 6, kind: input, shape index: {}]   ;;  %s7909_s7 = inlined_call_operand.vmem [shape: bf16[128,128], index: 7, kind: input, shape index: {}]   ;;  %s7910_s8 = inlined_call_operand.vmem [shape: f32[1,128], index: 8, kind: input, shape index: {}]   ;;  %s7911_s9 = inlined_call_operand.vmem [shape: f32[1,128], index: 9, kind: input, shape index: {}]   ;;  %s7912_s10 = inlined_call_operand.vmem [shape: f32[1,128], index: 10, kind: input, shape index: {}]   ;;  %s7913_s11 = inlined_call_operand.vmem [shape: bf16[128,512], index: 11, kind: input, shape index: {}]   ;;  %s7914_s12 = inlined_call_operand.vmem [shape: f32[1,512], index: 12, kind: input, shape index: {}]   ;;  %s7915_s13 = inlined_call_operand.vmem [shape: bf16[512,128], index: 13, kind: input, shape index: {}]   ;;  %s7916_s14 = inlined_call_operand.vmem [shape: f32[1,128], index: 14, kind: input, shape index: {}]   ;;  %s7917_s15 = inlined_call_operand.hbm [shape: f32[2,128,128], index: 15, kind: output, shape index: {}]  }
   0x1   :  { %7964 = sst [smem:[#allocation41_spill]] %s7902_s0 }
   0x2   :  { %7965 = sst [smem:[#allocation42_spill]] %s7917_s15 }
   0x3   :  { %20 = vsyncpa [#allocation6], 0 }
   0x4   :  { %22 = vsyncpa [#allocation6 + $0x1], 0  ;;  %s5595_s18 = smov 0   ;;  %s5597_s19 = smov 0  }
   0x5   :  { %s5599_s20 = smov 0   ;;  %s5601_s21 = smov 0  }
   0x6   :  { %s5603_s22 = smov 0   ;;  %s5605_s23 = smov 0  }
   0x7 LB: > { %7966 = sst [smem:[#allocation8_spill]] %s5488_s18  ;;  %s4309_s24 = sadd.s32 4294967295, %s5508_s23   ;;  %s5508_s23 = sphi %s5605_s23, %s28_s23   ;;  %s5504_s22 = sphi %s5603_s22, %s8056_s22   ;;  %s5500_s21 = sphi %s5601_s21, %s8055_s21   ;;  %s5496_s20 = sphi %s5599_s20, %s8059_s20   ;;  %s5492_s19 = sphi %s5597_s19, %s8058_s19   ;;  %s5488_s18 = sphi %s5595_s18, %s8057_s18  }
   0x8   : > { %7967 = sst [smem:[#allocation9_spill]] %s5504_s22  ;;  %s4310_s25 = sadd.s32 4294967294, %s5508_s23  }
   0x9   : > { %s40_s26 = sadd.s32 1, %s5504_s22  ;;  %s367_s27 = sadd.s32 1, %s5496_s20 }
   0xa   : > { %p42_p0 = scmp.ge.s32.totalorder %s40_s26, 2  ;;  %p377_p1 = scmp.ne.s32.totalorder %s5496_s20, %s5492_s19 }
   0xb   : > { %p378_p2 = scmp.eq.s32.totalorder %s4309_s24, 1  ;;  %p383_p3 = scmp.ne.s32.totalorder %s5492_s19, %s5488_s18 }
   0xc   : > { %s8061_s26 = smov (%p42_p0, %s40_s26), 0  ;;  %p384_p5 = scmp.eq.s32.totalorder %s4310_s25, 1 }
   0xd   : > { %7968 = sst [smem:[#allocation10_spill]] %s8061_s26  ;;  %p5635_p4 = por %p378_p2, %p377_p1 }
   0xe   : > { %s364_s29 = ssub.s32 %s5504_s22, %s8061_s26  ;;  %p4313_p6 = scmp.ge.s32.totalorder %s5508_s23, 1 }
   0xf   : > { %p365_p7 = scmp.eq.s32.totalorder %s364_s29, 0  ;;  %p5642_p8 = por %p384_p5, %p383_p3 }
  0x10   : > { %p452_p9 = scmp.lt.s32.totalorder %s5508_s23, 3 }
  0x11   : > { %s5648_s16 = scalar_select %p365_p7, %s5496_s20, %s367_s27  }
  0x12   : > { %p453_p10 = pnand %p4313_p6, %p452_p9 }
  0x13   : > { %7971 = sst [smem:[#allocation11_spill]] %s5648_s16 }
  0x14   : > { %456 = sbr.rel (%p453_p10) target bundleno = 2786 (0xae2), region = 80 }
  0x1b   : > { %p500_p11 = scmp.lt.s32.totalorder %s5500_s21, 1  ;;  %s7972_s0 = sld [smem:[#allocation41_spill]]  ;;  %v4974_v16 = vld [vmem:[%s7907_s5 + $0x4] ss:$8 sps:$4 sm:$0xff]   ;;  %v4976_v17 = vld [vmem:[%s7907_s5] ss:$8 sps:$4 sm:$0xff]  }
  0x1c   : > { %v4977_v18 = vld [vmem:[%s7905_s3] sm:$0xff]   ;;  %v4978_v19 = vld [vmem:[%s7907_s5 + $0x14] ss:$8 sps:$4 sm:$0xff]   ;;  %1041 = vmatprep.subr.bf16.mxu1 %v4974_v16  ;;  %v4980_v58 = vld [vmem:[%s7907_s5 + $0x10] ss:$8 sps:$4 sm:$0xff]   ;;  %vm1170_vm0 = vcmask 523264  }
  0x1d   : > { %s501_s17 = scalar_select %p500_p11, %s5500_s21, 1  ;;  %4667 = vmatprep.subr.bf16.mxu0 %v4977_v18  ;;  %1042 = vmatpush1.bf16.msra.mxu1 %v4976_v17 }
  0x1e   : > { %4668 = vmatpush3.bf16.msra.mxu0 %v4977_v18  ;;  %1043 = vmatprep.subr.bf16.mxu1 %v4978_v19  ;;  %v4985_v18 = vld [vmem:[%s7905_s3 + $0x10] sm:$0xff]   ;;  %s5511_s22 = smov 64   ;;  %s497_s16 = sand.u32 1, %s5492_s19  }
  0x1f   : > { %s4441_s24 = sshll.u32 %s501_s17, 7  ;;  %v4986_v19 = vld [vmem:[%s7907_s5 + $0x34] ss:$8 sps:$4 sm:$0xff]   ;;  %s4314_s29 = sshll.u32 %s497_s16, 7 }
  0x20   : > { %s8051_s18 = sld [smem:[#allocation42_spill]] }
  0x21   : > { %s5655_s25 = scalar_lea.vmem %s7972_s0, %s4441_s24  ;;  %1044 = vmatpush1.bf16.msra.mxu1 %v4980_v58  ;;  %s7798_s0 = scalar_lea.vmem [#allocation5], %s4314_s29 }
  0x22   : > { %v510_v0 = vld [vmem:[%s5655_s25] sm:$0xff]  ;;  %v512_v1 = vld [vmem:[%s5655_s25 + $0x10] sm:$0xff]  ;;  %v511_v2 = vld [vmem:[%s5655_s25 + $0x8] sm:$0xff]  ;;  %s4239_s26 = sshll.u32 %s7798_s0, 4  ;;  %s5512_s24 = smov [#allocation5]   ;;  %s7849_s26 = int_to_ptr.vmem [resolvable:$true] %s4239_s26 }
  0x23   : > { %528 = vadd.xlane.f32.xlu0 %v510_v0  ;;  %532 = vadd.xlane.f32.xlu1 %v512_v1  ;;  %v513_v3 = vld [vmem:[%s5655_s25 + $0x18] sm:$0xff]  ;;  %v514_v4 = vld [vmem:[%s5655_s25 + $0x20] sm:$0xff]  ;;  %v515_v5 = vld [vmem:[%s5655_s25 + $0x28] sm:$0xff]  ;;  %s5430_s17 = scalar_lea.vmem %s7849_s26, 2048 }
  0x24   : > { %v5664_v6 = vld [vmem:[%s5655_s25 + $0x30] sm:$0xff]  ;;  %v5667_v7 = vld [vmem:[%s5655_s25 + $0x38] sm:$0xff]  ;;  %v5670_v8 = vld [vmem:[%s5655_s25 + $0x40] sm:$0xff]  ;;  %p5431_p12 = scmp.ne.s32.totalorder %s7849_s26, %s5430_s17 }
  0x25   : > { %v5673_v9 = vld [vmem:[%s5655_s25 + $0x48] sm:$0xff]  ;;  %v5678_v10 = vld [vmem:[%s5655_s25 + $0x50] sm:$0xff]  ;;  %v5681_v11 = vld [vmem:[%s5655_s25 + $0x58] sm:$0xff] }
  0x26   : > { %v5686_v12 = vld [vmem:[%s5655_s25 + $0x60] sm:$0xff]  ;;  %v5689_v13 = vld [vmem:[%s5655_s25 + $0x68] sm:$0xff]  ;;  %v5694_v14 = vld [vmem:[%s5655_s25 + $0x70] sm:$0xff]  ;;  %s8052_s27 = smov %s8051_s18  ;;  %p5432_p13 = pnand %p5431_p12, %p5635_p4 }
  0x27   : > { %530 = vadd.xlane.f32.xlu0 %v511_v2  ;;  %534 = vadd.xlane.f32.xlu1 %v513_v3  ;;  %v5697_v15 = vld [vmem:[%s5655_s25 + $0x78] sm:$0xff] }
  0x28   : > { %p5433_p0 = pneg %p5432_p13 }
  0x2b   : > { %536 = vadd.xlane.f32.xlu0 %v514_v4  ;;  %538 = vadd.xlane.f32.xlu1 %v515_v5 }
  0x2f   : > { %540 = vadd.xlane.f32.xlu0 %v5664_v6  ;;  %542 = vadd.xlane.f32.xlu1 %v5667_v7 }
  0x33   : > { %544 = vadd.xlane.f32.xlu0 %v5670_v8  ;;  %546 = vadd.xlane.f32.xlu1 %v5673_v9 }
  0x37   : > { %548 = vadd.xlane.f32.xlu0 %v5678_v10  ;;  %550 = vadd.xlane.f32.xlu1 %v5681_v11 }
  0x3b   : > { %552 = vadd.xlane.f32.xlu0 %v5686_v12  ;;  %554 = vadd.xlane.f32.xlu1 %v5689_v13 }
  0x3f   : > { %556 = vadd.xlane.f32.xlu0 %v5694_v14  ;;  %558 = vadd.xlane.f32.xlu1 %v5697_v15 }
  0xb0   : > { %v529_v20 = vpop.xlane.xlu0 %528  ;;  %v533_v21 = vpop.xlane.xlu1 %532 }
  0xb1   : > { %v561_v22 = vmul.f32 0.0078125, %v529_v20  ;;  %v563_v23 = vmul.f32 0.0078125, %v533_v21 }
  0xb3   : > { %v5715_v24 = vsub.f32 %v510_v0, %v561_v22  ;;  %v5717_v25 = vsub.f32 %v512_v1, %v563_v23  ;;  %v4981_v0 = vld [vmem:[%s7905_s3 + $0x8] sm:$0xff]   ;;  %v4988_v22 = vld [vmem:[%s7907_s5 + $0x30] ss:$8 sps:$4 sm:$0xff]  }
  0xb4   : > { %v531_v26 = vpop.xlane.xlu0 %530  ;;  %v535_v27 = vpop.xlane.xlu1 %534  ;;  %v4982_v1 = vld [vmem:[%s7907_s5 + $0x24] ss:$8 sps:$4 sm:$0xff]   ;;  %4669 = vmatprep.subr.bf16.mxu0 %v4981_v0 }
  0xb5   : > { %v562_v28 = vmul.f32 0.0078125, %v531_v26  ;;  %v593_v29 = vmul.f32 %v5715_v24, %v5715_v24  ;;  %v564_v30 = vmul.f32 0.0078125, %v535_v27  ;;  %v595_v31 = vmul.f32 %v5717_v25, %v5717_v25  ;;  %1045 = vmatprep.subr.bf16.mxu1 %v4982_v1  ;;  %4670 = vmatpush3.bf16.msra.mxu0 %v4981_v0 }
  0xb6   : > { %4671 = vmatprep.subr.bf16.mxu0 %v4985_v18 }
  0xb7   : > { %609 = vadd.xlane.f32.xlu0 %v593_v29  ;;  %v5723_v32 = vsub.f32 %v511_v2, %v562_v28  ;;  %v5725_v33 = vsub.f32 %v513_v3, %v564_v30  ;;  %v4989_v29 = vld [vmem:[%s7905_s3 + $0x18] sm:$0xff]   ;;  %v4990_v30 = vld [vmem:[%s7907_s5 + $0x44] ss:$8 sps:$4 sm:$0xff]  }
  0xb8   : > { %v537_v34 = vpop.xlane.xlu0 %536  ;;  %v539_v35 = vpop.xlane.xlu1 %538 }
  0xb9   : > { %v565_v36 = vmul.f32 0.0078125, %v537_v34  ;;  %v594_v37 = vmul.f32 %v5723_v32, %v5723_v32  ;;  %v566_v38 = vmul.f32 0.0078125, %v539_v35  ;;  %v596_v39 = vmul.f32 %v5725_v33, %v5725_v33  ;;  %4672 = vmatpush3.bf16.msra.mxu0 %v4985_v18  ;;  %v4994_v35 = vld [vmem:[%s7907_s5 + $0x54] ss:$8 sps:$4 sm:$0xff]  }
  0xba   : > { %4673 = vmatprep.subr.bf16.mxu0 %v4989_v29 }
  0xbb   : > { %613 = vadd.xlane.f32.xlu0 %v595_v31  ;;  %611 = vadd.xlane.f32.xlu1 %v594_v37  ;;  %v5731_v40 = vsub.f32 %v514_v4, %v565_v36  ;;  %v5733_v41 = vsub.f32 %v515_v5, %v566_v38  ;;  %v4992_v31 = vld [vmem:[%s7907_s5 + $0x40] ss:$8 sps:$4 sm:$0xff]   ;;  %v4996_v36 = vld [vmem:[%s7907_s5 + $0x50] ss:$8 sps:$4 sm:$0xff]   ;;  %v4998_v38 = vld [vmem:[%s7907_s5 + $0x64] ss:$8 sps:$4 sm:$0xff]  }
  0xbc   : > { %v541_v42 = vpop.xlane.xlu0 %540  ;;  %v543_v43 = vpop.xlane.xlu1 %542  ;;  %v4997_v37 = vld [vmem:[%s7905_s3 + $0x28] sm:$0xff]  }
  0xbd   : > { %v567_v44 = vmul.f32 0.0078125, %v541_v42  ;;  %v597_v45 = vmul.f32 %v5731_v40, %v5731_v40  ;;  %v568_v46 = vmul.f32 0.0078125, %v543_v43  ;;  %v598_v47 = vmul.f32 %v5733_v41, %v5733_v41  ;;  %4674 = vmatpush3.bf16.msra.mxu0 %v4989_v29  ;;  %v5001_v42 = vld [vmem:[%s7905_s3 + $0x30] sm:$0xff]  }
  0xbe   : > { %v5002_v43 = vld [vmem:[%s7907_s5 + $0x74] ss:$8 sps:$4 sm:$0xff]  }
  0xbf   : > { %615 = vadd.xlane.f32.xlu1 %v596_v39  ;;  %617 = vadd.xlane.f32.xlu0 %v597_v45  ;;  %v5740_v48 = vsub.f32 %v5664_v6, %v567_v44  ;;  %v5743_v49 = vsub.f32 %v5667_v7, %v568_v46  ;;  %v4984_v7 = vld [vmem:[%s7907_s5 + $0x20] ss:$8 sps:$4 sm:$0xff]   ;;  %v5004_v44 = vld [vmem:[%s7907_s5 + $0x70] ss:$8 sps:$4 sm:$0xff]   ;;  %v5510_v46 = vmov 0  }
  0xc0   : > { %v545_v50 = vpop.xlane.xlu0 %544  ;;  %v547_v51 = vpop.xlane.xlu1 %546  ;;  %1046 = vmatpush1.bf16.msra.mxu1 %v4984_v7  ;;  %v5000_v39 = vld [vmem:[%s7907_s5 + $0x60] ss:$8 sps:$4 sm:$0xff]   ;;  %v5005_v45 = vld [vmem:[%s7905_s3 + $0x38] sm:$0xff]   ;;  %1073 = vmatprep.mubr.bf16.mxu1 %v5510_v46 }
  0xc1   : > { %v569_v52 = vmul.f32 0.0078125, %v545_v50  ;;  %v599_v53 = vmul.f32 %v5740_v48, %v5740_v48  ;;  %v570_v54 = vmul.f32 0.0078125, %v547_v51  ;;  %v600_v55 = vmul.f32 %v5743_v49, %v5743_v49  ;;  %1047 = vmatprep.subr.bf16.mxu1 %v4986_v19 }
  0xc3   : > { %619 = vadd.xlane.f32.xlu1 %v598_v47  ;;  %621 = vadd.xlane.f32.xlu0 %v599_v53  ;;  %v5750_v56 = vsub.f32 %v5670_v8, %v569_v52  ;;  %v5753_v57 = vsub.f32 %v5673_v9, %v570_v54 }
  0xc4   : > { %v549_v59 = vpop.xlane.xlu0 %548  ;;  %v551_v60 = vpop.xlane.xlu1 %550  ;;  %1048 = vmatpush1.bf16.msra.mxu1 %v4988_v22  ;;  %v5854_v22 = vld [vmem:[%s7903_s1] ss:$0 sm:$0xff] }
  0xc5   : > { %v571_v61 = vmul.f32 0.0078125, %v549_v59  ;;  %v601_v62 = vmul.f32 %v5750_v56, %v5750_v56  ;;  %v572_v63 = vmul.f32 0.0078125, %v551_v60  ;;  %v602_v2 = vmul.f32 %v5753_v57, %v5753_v57  ;;  %1049 = vmatprep.subr.bf16.mxu1 %v4990_v30 }
  0xc7   : > { %623 = vadd.xlane.f32.xlu1 %v600_v55  ;;  %625 = vadd.xlane.f32.xlu0 %v601_v62  ;;  %v5769_v3 = vsub.f32 %v5678_v10, %v571_v61  ;;  %v5772_v4 = vsub.f32 %v5681_v11, %v572_v63 }
  0xc8   : > { %v553_v5 = vpop.xlane.xlu0 %552  ;;  %v555_v6 = vpop.xlane.xlu1 %554  ;;  %1050 = vmatpush1.bf16.msra.mxu1 %v4992_v31 }
  0xc9   : > { %v573_v8 = vmul.f32 0.0078125, %v553_v5  ;;  %v603_v9 = vmul.f32 %v5769_v3, %v5769_v3  ;;  %v574_v16 = vmul.f32 0.0078125, %v555_v6  ;;  %v604_v10 = vmul.f32 %v5772_v4, %v5772_v4  ;;  %1051 = vmatprep.subr.bf16.mxu1 %v4994_v35 }
  0xcb   : > { %627 = vadd.xlane.f32.xlu1 %v602_v2  ;;  %629 = vadd.xlane.f32.xlu0 %v603_v9  ;;  %v5782_v11 = vsub.f32 %v5686_v12, %v573_v8  ;;  %v5785_v17 = vsub.f32 %v5689_v13, %v574_v16 }
  0xcc   : > { %v557_v20 = vpop.xlane.xlu0 %556  ;;  %v559_v21 = vpop.xlane.xlu1 %558  ;;  %1052 = vmatpush1.bf16.msra.mxu1 %v4996_v36 }
  0xcd   : > { %v575_v23 = vmul.f32 0.0078125, %v557_v20  ;;  %v605_v12 = vmul.f32 %v5782_v11, %v5782_v11  ;;  %v576_v13 = vmul.f32 0.0078125, %v559_v21  ;;  %v606_v26 = vmul.f32 %v5785_v17, %v5785_v17  ;;  %1053 = vmatprep.subr.bf16.mxu1 %v4998_v38 }
  0xcf   : > { %631 = vadd.xlane.f32.xlu1 %v604_v10  ;;  %633 = vadd.xlane.f32.xlu0 %v605_v12  ;;  %v5801_v27 = vsub.f32 %v5694_v14, %v575_v23  ;;  %v5804_v28 = vsub.f32 %v5697_v15, %v576_v13  ;;  %v4993_v15 = vld [vmem:[%s7905_s3 + $0x20] sm:$0xff]  }
  0xd0   : > { %4675 = vmatprep.subr.bf16.mxu0 %v4993_v15  ;;  %1054 = vmatpush1.bf16.msra.mxu1 %v5000_v39 }
  0xd1   : > { %v607_v34 = vmul.f32 %v5801_v27, %v5801_v27  ;;  %v608_v14 = vmul.f32 %v5804_v28, %v5804_v28  ;;  %4676 = vmatpush3.bf16.msra.mxu0 %v4993_v15  ;;  %1055 = vmatprep.subr.bf16.mxu1 %v5002_v43  ;;  %v5861_v15 = vld [vmem:[%s7904_s2] ss:$0 sm:$0xff] }
  0xd2   : > { %4677 = vmatprep.subr.bf16.mxu0 %v4997_v37 }
  0xd3   : > { %635 = vadd.xlane.f32.xlu1 %v606_v26  ;;  %637 = vadd.xlane.f32.xlu0 %v607_v34 }
  0xd4   : > { %1056 = vmatpush1.bf16.msra.mxu1 %v5004_v44 }
  0xd5   : > { %4678 = vmatpush3.bf16.msra.mxu0 %v4997_v37 }
  0xd6   : > { %4679 = vmatprep.subr.bf16.mxu0 %v5001_v42 }
  0xd7   : > { %639 = vadd.xlane.f32.xlu1 %v608_v14 }
  0xd9   : > { %4680 = vmatpush3.bf16.msra.mxu0 %v5001_v42 }
  0xda   : > { %4681 = vmatprep.subr.bf16.mxu0 %v5005_v45 }
  0xdd   : > { %4682 = vmatpush3.bf16.msra.mxu0 %v5005_v45 }
 0x144   : > { %v610_v47 = vpop.xlane.xlu0 %609 }
 0x145   : > { %v641_v50 = vmul.f32 0.0078125, %v610_v47 }
 0x147   : > { %v657_v51 = vadd.f32 1e-05, %v641_v50 }
 0x148   : > { %v612_v52 = vpop.xlane.xlu1 %611  ;;  %v614_v53 = vpop.xlane.xlu0 %613 }
 0x149   : > { %5094 = vrsqrt.f32 %v657_v51  ;;  %v642_v54 = vmul.f32 0.0078125, %v612_v52  ;;  %v643_v55 = vmul.f32 0.0078125, %v614_v53 }
 0x14b   : > { %v658_v58 = vadd.f32 1e-05, %v642_v54  ;;  %v659_v59 = vadd.f32 1e-05, %v643_v55 }
 0x14c   : > { %v616_v60 = vpop.xlane.xlu1 %615  ;;  %v618_v61 = vpop.xlane.xlu0 %617 }
 0x14d   : > { %5096 = vrsqrt.f32 %v658_v58  ;;  %v644_v62 = vmul.f32 0.0078125, %v616_v60  ;;  %v645_v63 = vmul.f32 0.0078125, %v618_v61 }
 0x14e   : > { %5098 = vrsqrt.f32 %v659_v59 }
 0x14f   : > { %v660_v0 = vadd.f32 1e-05, %v644_v62  ;;  %v661_v1 = vadd.f32 1e-05, %v645_v63 }
 0x150   : > { %v620_v2 = vpop.xlane.xlu1 %619  ;;  %v622_v5 = vpop.xlane.xlu0 %621 }
 0x151   : > { %5100 = vrsqrt.f32 %v660_v0  ;;  %v646_v6 = vmul.f32 0.0078125, %v620_v2  ;;  %v647_v7 = vmul.f32 0.0078125, %v622_v5 }
 0x152   : > { %5102 = vrsqrt.f32 %v661_v1 }
 0x153   : > { %v5095_v8 = vpop.eup %5094  ;;  %v662_v9 = vadd.f32 1e-05, %v646_v6  ;;  %v663_v16 = vadd.f32 1e-05, %v647_v7 }
 0x154   : > { %v624_v10 = vpop.xlane.xlu1 %623  ;;  %v626_v18 = vpop.xlane.xlu0 %625  ;;  %v689_v19 = vmul.f32 %v5095_v8, %v5715_v24 }
 0x155   : > { %5104 = vrsqrt.f32 %v662_v9  ;;  %v648_v20 = vmul.f32 0.0078125, %v624_v10  ;;  %v649_v21 = vmul.f32 0.0078125, %v626_v18 }
 0x156   : > { %5106 = vrsqrt.f32 %v663_v16  ;;  %v711_v34 = vmul.f32 %v5854_v22, %v689_v19 }
 0x157   : > { %v5097_v23 = vpop.eup %5096  ;;  %v664_v12 = vadd.f32 1e-05, %v648_v20  ;;  %v665_v13 = vadd.f32 1e-05, %v649_v21 }
 0x158   : > { %v5099_v26 = vpop.eup %5098  ;;  %v628_v29 = vpop.xlane.xlu1 %627  ;;  %v690_v31 = vmul.f32 %v5097_v23, %v5723_v32  ;;  %v733_v45 = vadd.f32 %v5861_v15, %v711_v34 }
 0x159   : > { %v630_v30 = vpop.xlane.xlu0 %629  ;;  %5108 = vrsqrt.f32 %v664_v12  ;;  %v650_v24 = vmul.f32 0.0078125, %v628_v29  ;;  %v691_v35 = vmul.f32 %v5099_v26, %v5717_v25 }
 0x15a   : > { %v651_v14 = vmul.f32 0.0078125, %v630_v30  ;;  %5110 = vrsqrt.f32 %v665_v13  ;;  %v712_v36 = vmul.f32 %v5854_v22, %v690_v31 }
 0x15b   : > { %v5101_v37 = vpop.eup %5100  ;;  %v666_v38 = vadd.f32 1e-05, %v650_v24  ;;  %v713_v32 = vmul.f32 %v5854_v22, %v691_v35 }
 0x15c   : > { %v667_v39 = vadd.f32 1e-05, %v651_v14  ;;  %v5103_v42 = vpop.eup %5102  ;;  %v632_v43 = vpop.xlane.xlu1 %631  ;;  %v734_v47 = vadd.f32 %v5861_v15, %v712_v36  ;;  %v692_v50 = vmul.f32 %v5101_v37, %v5725_v33 }
 0x15d   : > { %v634_v44 = vpop.xlane.xlu0 %633  ;;  %5112 = vrsqrt.f32 %v666_v38  ;;  %v652_v51 = vmul.f32 0.0078125, %v632_v43  ;;  %v693_v54 = vmul.f32 %v5103_v42, %v5731_v40  ;;  %v735_v60 = vadd.f32 %v5861_v15, %v713_v32 }
 0x15e   : > { %v653_v25 = vmul.f32 0.0078125, %v634_v44  ;;  %5114 = vrsqrt.f32 %v667_v39  ;;  %v749_v52 = vpack.c.bf16 %v734_v47, %v733_v45  ;;  %v714_v53 = vmul.f32 %v5854_v22, %v692_v50 }
 0x15f   : > { %v5105_v55 = vpop.eup %5104  ;;  %v668_v58 = vadd.f32 1e-05, %v652_v51  ;;  %v715_v1 = vmul.f32 %v5854_v22, %v693_v54 }
 0x160   : > { %v669_v59 = vadd.f32 1e-05, %v653_v25  ;;  %v5107_v61 = vpop.eup %5106  ;;  %v636_v62 = vpop.xlane.xlu1 %635  ;;  %4683 = vmatprep.mubr.bf16.mxu0 %v749_v52  ;;  %1074 = vmatmul.mubr.bf16.vlgmr.msra.gmra.mrb[0].mxu1 %v749_v52  ;;  %v736_v33 = vadd.f32 %v5861_v15, %v714_v53  ;;  %v694_v0 = vmul.f32 %v5105_v55, %v5733_v41 }
 0x161   : > { %v638_v63 = vpop.xlane.xlu0 %637  ;;  %5116 = vrsqrt.f32 %v668_v58  ;;  %v654_v2 = vmul.f32 0.0078125, %v636_v62  ;;  %1083 = vmatprep.mubr.bf16.mxu1 %v5510_v46  ;;  %v695_v40 = vmul.f32 %v5107_v61, %v5740_v48  ;;  %v737_v19 = vadd.f32 %v5861_v15, %v715_v1 }
 0x162   : > { %v655_v5 = vmul.f32 0.0078125, %v638_v63  ;;  %5118 = vrsqrt.f32 %v669_v59  ;;  %v750_v6 = vpack.c.bf16 %v736_v33, %v735_v60  ;;  %v716_v7 = vmul.f32 %v5854_v22, %v694_v0 }
 0x163   : > { %v5109_v8 = vpop.eup %5108  ;;  %v670_v9 = vadd.f32 1e-05, %v654_v2  ;;  %v717_v10 = vmul.f32 %v5854_v22, %v695_v40 }
 0x164   : > { %v671_v16 = vadd.f32 1e-05, %v655_v5  ;;  %v5111_v18 = vpop.eup %5110  ;;  %v640_v41 = vpop.xlane.xlu1 %639  ;;  %4684 = vmatmul.mubr.bf16.vlgmr.msra.gmra.mrb[0].mxu0 %v750_v6  ;;  %v738_v20 = vadd.f32 %v5861_v15, %v716_v7  ;;  %v696_v21 = vmul.f32 %v5109_v8, %v5743_v49 }
 0x165   : > { %5120 = vrsqrt.f32 %v670_v9  ;;  %v656_v48 = vmul.f32 0.0078125, %v640_v41  ;;  %v697_v23 = vmul.f32 %v5111_v18, %v5750_v56  ;;  %v739_v30 = vadd.f32 %v5861_v15, %v717_v10  ;;  %v5937_v18 = vld [vmem:[%s7906_s4] ss:$0 sm:$0xff] }
 0x166   : > { %5122 = vrsqrt.f32 %v671_v16  ;;  %v751_v12 = vpack.c.bf16 %v738_v20, %v737_v19  ;;  %v718_v13 = vmul.f32 %v5854_v22, %v696_v21 }
 0x167   : > { %v5113_v26 = vpop.eup %5112  ;;  %v672_v29 = vadd.f32 1e-05, %v656_v48  ;;  %v719_v49 = vmul.f32 %v5854_v22, %v697_v23 }
 0x168   : > { %v5115_v31 = vpop.eup %5114  ;;  %4687 = vmatprep.mubr.bf16.mxu0 %v751_v12  ;;  %1084 = vmatmul.mubr.bf16.gmra.mrb[4].mxu1 %v750_v6  ;;  %v740_v34 = vadd.f32 %v5861_v15, %v718_v13  ;;  %v698_v24 = vmul.f32 %v5113_v26, %v5753_v57 }
 0x169   : > { %5124 = vrsqrt.f32 %v672_v29  ;;  %1093 = vmatprep.mubr.bf16.mxu1 %v5510_v46  ;;  %v699_v56 = vmul.f32 %v5115_v31, %v5769_v3  ;;  %v741_v39 = vadd.f32 %v5861_v15, %v719_v49 }
 0x16a   : > { %v752_v14 = vpack.c.bf16 %v740_v34, %v739_v30  ;;  %v720_v35 = vmul.f32 %v5854_v22, %v698_v24 }
 0x16b   : > { %v5117_v36 = vpop.eup %5116  ;;  %v721_v37 = vmul.f32 %v5854_v22, %v699_v56 }
 0x16c   : > { %v5119_v38 = vpop.eup %5118  ;;  %4688 = vmatmul.mubr.bf16.gmra.mrb[4].mxu0 %v752_v14  ;;  %v742_v32 = vadd.f32 %v5861_v15, %v720_v35  ;;  %v700_v57 = vmul.f32 %v5117_v36, %v5772_v4 }
 0x16d   : > { %v701_v42 = vmul.f32 %v5119_v38, %v5782_v11  ;;  %v743_v45 = vadd.f32 %v5861_v15, %v721_v37 }
 0x16e   : > { %v753_v43 = vpack.c.bf16 %v742_v32, %v741_v39  ;;  %v722_v44 = vmul.f32 %v5854_v22, %v700_v57 }
 0x16f   : > { %v5121_v3 = vpop.eup %5120  ;;  %v723_v25 = vmul.f32 %v5854_v22, %v701_v42 }
 0x170   : > { %v5123_v47 = vpop.eup %5122  ;;  %4691 = vmatprep.mubr.bf16.mxu0 %v753_v43  ;;  %1094 = vmatmul.mubr.bf16.gmra.mrb[8].mxu1 %v751_v12  ;;  %v744_v50 = vadd.f32 %v5861_v15, %v722_v44  ;;  %v702_v51 = vmul.f32 %v5121_v3, %v5785_v17 }
 0x171   : > { %1103 = vmatprep.mubr.bf16.mxu1 %v5510_v46  ;;  %v703_v4 = vmul.f32 %v5123_v47, %v5801_v27  ;;  %v745_v54 = vadd.f32 %v5861_v15, %v723_v25 }
 0x172   : > { %v754_v11 = vpack.c.bf16 %v744_v50, %v743_v45  ;;  %v724_v52 = vmul.f32 %v5854_v22, %v702_v51 }
 0x173   : > { %v5125_v53 = vpop.eup %5124  ;;  %v725_v59 = vmul.f32 %v5854_v22, %v703_v4 }
 0x174   : > { %4692 = vmatmul.mubr.bf16.gmra.mrb[8].mxu0 %v754_v11  ;;  %v746_v55 = vadd.f32 %v5861_v15, %v724_v52  ;;  %v704_v58 = vmul.f32 %v5125_v53, %v5804_v28  ;;  %v951_v28 = vlaneseq }
 0x175   : > { %v747_v27 = vadd.f32 %v5861_v15, %v725_v59 }
 0x176   : > { %v755_v17 = vpack.c.bf16 %v746_v55, %v745_v54  ;;  %v726_v60 = vmul.f32 %v5854_v22, %v704_v58  ;;  %v5915_v22 = vshrl.u32 %v951_v28, 7 }
 0x178   : > { %4695 = vmatprep.mubr.bf16.mxu0 %v755_v17  ;;  %1104 = vmatmul.mubr.bf16.gmra.mrb[12].mxu1 %v752_v14  ;;  %v748_v61 = vadd.f32 %v5861_v15, %v726_v60  ;;  %v7923_v63 = vsub.s32 0, %v5915_v22  ;;  %v949_v15 = vld [vmem:[%s7908_s6] sm:$0x3]  ;;  %v7922_v33 = vsub.s32 1, %v5915_v22 }
 0x179   : > { %1113 = vmatprep.mubr.bf16.mxu1 %v5510_v46 }
 0x17a   : > { %v756_v62 = vpack.c.bf16 %v748_v61, %v747_v27  ;;  %v5924_v0 = vrot.slane %v949_v15, %v7923_v63  ;;  %v5928_v2 = vrot.slane %v949_v15, %v7922_v33 }
 0x17c   : > { %4696 = vmatmul.mubr.bf16.gmra.mrb[12].mxu0 %v756_v62 }
 0x180   : > { %1114 = vmatmul.mubr.bf16.gmra.mrb[16].mxu1 %v753_v43 }
 0x181   : > { %1123 = vmatprep.mubr.bf16.mxu1 %v5510_v46 }
 0x188   : > { %1124 = vmatmul.mubr.bf16.gmra.mrb[20].mxu1 %v754_v11 }
 0x189   : > { %1133 = vmatprep.mubr.bf16.mxu1 %v5510_v46 }
 0x190   : > { %1134 = vmatmul.mubr.bf16.gmra.mrb[24].mxu1 %v755_v17 }
 0x191   : > { %1143 = vmatprep.mubr.bf16.mxu1 %v5510_v46 }
 0x198   : > { %1144 = vmatmul.mubr.bf16.gmra.mrb[28].mxu1 %v756_v62 }
 0x233   : > { %v1075_v1 = vpop.f32.mrb[0].mxu1 }
 0x234   : > { %v1077_v5 = vpop.f32.mrb[1].mxu1  ;;  %v1076_v6 = vadd.f32 %v1075_v1, %v5924_v0 }
 0x235   : > { %v1079_v40 = vpop.f32.mrb[2].mxu1  ;;  %v1078_v9 = vadd.f32 %v1077_v5, %v5928_v2 }
 0x236   : > { %v1080_v7 = vadd.f32 %v1079_v40, %v5924_v0  ;;  %v1081_v8 = vpop.f32.mrb[3].mxu1 }
 0x237   : > { %v1082_v16 = vadd.f32 %v1081_v8, %v5928_v2  ;;  %v4685_v10 = vpop.f32.mrb[0].mxu0 }
 0x238   : > { %v1154_v41 = vpack.c.bf16 %v1080_v7, %v1076_v6  ;;  %v862_v19 = vpop.f32.mrb[1].mxu0  ;;  %v871_v48 = vadd.f32 %v4685_v10, %v5937_v18 }
 0x239   : > { %v5939_v20 = vpack.c.bf16 %v1082_v16, %v1078_v9  ;;  %v4686_v21 = vpop.f32.mrb[2].mxu0  ;;  %v863_v26 = vadd.f32 %v5937_v18, %v862_v19 }
 0x23a   : > { %v874_v23 = vadd.f32 %v4686_v21, %v5937_v18  ;;  %1597 = vrot.lane.b32.xlu0 %v1154_v41, %s5511_s22  ;;  %v865_v12 = vpop.f32.mrb[3].mxu0  ;;  %4859 = vmatprep.subr.msk.bf16.mxu0 %vm1170_vm0, %v1154_v41  ;;  %v1196_v13 = vsel %vm1170_vm0, %v1154_v41, 0 }
 0x23b   : > { %v866_v29 = vadd.f32 %v5937_v18, %v865_v12  ;;  %v1085_v30 = vpop.f32.mrb[4].mxu1  ;;  %4700 = vmatpush3.bf16.xpose.msra.mxu0 %v1196_v13  ;;  %4731 = vmatprep.subr.bf16.mxu1 %v5939_v20 }
 0x23c   : > { %v5949_v31 = vpack.c.bf16 %v874_v23, %v871_v48  ;;  %v1087_v34 = vpop.f32.mrb[5].mxu1  ;;  %4732 = vmatpush3.bf16.msra.mxu1 %v5939_v20  ;;  %v1086_v56 = vadd.f32 %v1085_v30, %v5924_v0 }
 0x23d   : > { %v5952_v24 = vpack.c.bf16 %v866_v29, %v863_v26  ;;  %v1089_v49 = vpop.f32.mrb[6].mxu1  ;;  %v1088_v36 = vadd.f32 %v1087_v34, %v5928_v2 }
 0x23e   : > { %v1090_v14 = vadd.f32 %v1089_v49, %v5924_v0  ;;  %v1091_v35 = vpop.f32.mrb[7].mxu1 }
 0x23f   : > { %v1092_v37 = vadd.f32 %v1091_v35, %v5928_v2  ;;  %v4689_v38 = vpop.f32.mrb[4].mxu0  ;;  %4715 = vmatprep.mubr.msk.bf16.mxu0 %vm1170_vm0, %v5952_v24 }
 0x240   : > { %v1155_v39 = vpack.c.bf16 %v1090_v14, %v1086_v56  ;;  %v878_v32 = vpop.f32.mrb[5].mxu0  ;;  %v887_v43 = vadd.f32 %v4689_v38, %v5937_v18 }
 0x241   : > { %v5960_v57 = vpack.c.bf16 %v1092_v37, %v1088_v36  ;;  %v4690_v42 = vpop.f32.mrb[6].mxu0  ;;  %v879_v47 = vadd.f32 %v5937_v18, %v878_v32 }
 0x242   : > { %v890_v44 = vadd.f32 %v4690_v42, %v5937_v18  ;;  %1599 = vrot.lane.b32.xlu1 %v1155_v39, %s5511_s22  ;;  %v881_v3 = vpop.f32.mrb[7].mxu0  ;;  %4860 = vmatprep.subr.msk.bf16.mxu0 %vm1170_vm0, %v1155_v39  ;;  %v1199_v45 = vsel %vm1170_vm0, %v1155_v39, 0 }
 0x243   : > { %v882_v50 = vadd.f32 %v5937_v18, %v881_v3  ;;  %v1095_v51 = vpop.f32.mrb[8].mxu1  ;;  %4702 = vmatpush3.bf16.xpose.msra.mxu0 %v1199_v45  ;;  %4733 = vmatprep.subr.bf16.mxu1 %v5960_v57 }
 0x244   : > { %v5970_v25 = vpack.c.bf16 %v890_v44, %v887_v43  ;;  %v1097_v4 = vpop.f32.mrb[9].mxu1  ;;  %4734 = vmatpush3.bf16.msra.mxu1 %v5960_v57  ;;  %v1096_v53 = vadd.f32 %v1095_v51, %v5924_v0 }
 0x245   : > { %v5973_v11 = vpack.c.bf16 %v882_v50, %v879_v47  ;;  %v1099_v52 = vpop.f32.mrb[10].mxu1  ;;  %v1098_v58 = vadd.f32 %v1097_v4, %v5928_v2 }
 0x246   : > { %v1100_v54 = vadd.f32 %v1099_v52, %v5924_v0  ;;  %v1101_v55 = vpop.f32.mrb[11].mxu1 }
 0x247   : > { %v1102_v59 = vadd.f32 %v1101_v55, %v5928_v2  ;;  %v4693_v17 = vpop.f32.mrb[8].mxu0 }
 0x248   : > { %v1156_v60 = vpack.c.bf16 %v1100_v54, %v1096_v53  ;;  %v894_v27 = vpop.f32.mrb[9].mxu0  ;;  %v903_v28 = vadd.f32 %v4693_v17, %v5937_v18 }
 0x249   : > { %v5979_v61 = vpack.c.bf16 %v1102_v59, %v1098_v58  ;;  %v4694_v62 = vpop.f32.mrb[10].mxu0  ;;  %v895_v40 = vadd.f32 %v5937_v18, %v894_v27 }
 0x24a   : > { %v906_v15 = vadd.f32 %v4694_v62, %v5937_v18  ;;  %1601 = vrot.lane.b32.xlu1 %v1156_v60, %s5511_s22  ;;  %v897_v1 = vpop.f32.mrb[11].mxu0  ;;  %4861 = vmatprep.subr.msk.bf16.mxu0 %vm1170_vm0, %v1156_v60  ;;  %v1202_v5 = vsel %vm1170_vm0, %v1156_v60, 0 }
 0x24b   : > { %v898_v6 = vadd.f32 %v5937_v18, %v897_v1  ;;  %v1105_v7 = vpop.f32.mrb[12].mxu1  ;;  %4704 = vmatpush3.bf16.xpose.msra.mxu0 %v1202_v5  ;;  %4735 = vmatprep.subr.bf16.mxu1 %v5979_v61 }
 0x24c   : > { %v5989_v8 = vpack.c.bf16 %v906_v15, %v903_v28  ;;  %v1107_v9 = vpop.f32.mrb[13].mxu1  ;;  %4736 = vmatpush3.bf16.msra.mxu1 %v5979_v61  ;;  %v1106_v41 = vadd.f32 %v1105_v7, %v5924_v0 }
 0x24d   : > { %v5992_v16 = vpack.c.bf16 %v898_v6, %v895_v40  ;;  %v1109_v10 = vpop.f32.mrb[14].mxu1  ;;  %v1108_v48 = vadd.f32 %v1107_v9, %v5928_v2 }
 0x24e   : > { %v1110_v19 = vadd.f32 %v1109_v10, %v5924_v0  ;;  %v1111_v21 = vpop.f32.mrb[15].mxu1 }
 0x24f   : > { %v1112_v23 = vadd.f32 %v1111_v21, %v5928_v2  ;;  %v4697_v12 = vpop.f32.mrb[12].mxu0 }
 0x250   : > { %v1157_v13 = vpack.c.bf16 %v1110_v19, %v1106_v41  ;;  %v919_v26 = vadd.f32 %v4697_v12, %v5937_v18  ;;  %v910_v29 = vpop.f32.mrb[13].mxu0 }
 0x251   : > { %v5999_v30 = vpack.c.bf16 %v1112_v23, %v1108_v48  ;;  %v4698_v34 = vpop.f32.mrb[14].mxu0  ;;  %v911_v35 = vadd.f32 %v5937_v18, %v910_v29 }
 0x252   : > { %v922_v49 = vadd.f32 %v4698_v34, %v5937_v18  ;;  %1603 = vrot.lane.b32.xlu1 %v1157_v13, %s5511_s22  ;;  %v913_v56 = vpop.f32.mrb[15].mxu0  ;;  %4862 = vmatprep.subr.msk.bf16.mxu0 %vm1170_vm0, %v1157_v13  ;;  %v1205_v14 = vsel %vm1170_vm0, %v1157_v13, 0 }
 0x253   : > { %v914_v36 = vadd.f32 %v5937_v18, %v913_v56  ;;  %v1115_v37 = vpop.f32.mrb[16].mxu1  ;;  %4706 = vmatpush3.bf16.xpose.msra.mxu0 %v1205_v14  ;;  %4737 = vmatprep.subr.bf16.mxu1 %v5999_v30 }
 0x254   : > { %v6008_v38 = vpack.c.bf16 %v922_v49, %v919_v26  ;;  %v1117_v39 = vpop.f32.mrb[17].mxu1  ;;  %4738 = vmatpush3.bf16.msra.mxu1 %v5999_v30  ;;  %v1116_v43 = vadd.f32 %v1115_v37, %v5924_v0 }
 0x255   : > { %v6011_v32 = vpack.c.bf16 %v914_v36, %v911_v35  ;;  %v1119_v42 = vpop.f32.mrb[18].mxu1  ;;  %v1118_v45 = vadd.f32 %v1117_v39, %v5928_v2 }
 0x256   : > { %v1120_v44 = vadd.f32 %v1119_v42, %v5924_v0  ;;  %v1121_v3 = vpop.f32.mrb[19].mxu1 }
 0x257   : > { %v1122_v18 = vadd.f32 %v1121_v3, %v5928_v2 }
 0x258   : > { %v1158_v47 = vpack.c.bf16 %v1120_v44, %v1116_v43 }
 0x259   : > { %v6017_v50 = vpack.c.bf16 %v1122_v18, %v1118_v45 }
 0x25a   : > { %1605 = vrot.lane.b32.xlu0 %v1158_v47, %s5511_s22  ;;  %4863 = vmatprep.subr.msk.bf16.mxu0 %vm1170_vm0, %v1158_v47  ;;  %v1208_v51 = vsel %vm1170_vm0, %v1158_v47, 0 }
 0x25b   : > { %v1125_v4 = vpop.f32.mrb[20].mxu1  ;;  %4708 = vmatpush3.bf16.xpose.msra.mxu0 %v1208_v51  ;;  %4739 = vmatprep.subr.bf16.mxu1 %v6017_v50 }
 0x25c   : > { %v1127_v52 = vpop.f32.mrb[21].mxu1  ;;  %4740 = vmatpush3.bf16.msra.mxu1 %v6017_v50  ;;  %v1126_v54 = vadd.f32 %v1125_v4, %v5924_v0 }
 0x25d   : > { %v1129_v53 = vpop.f32.mrb[22].mxu1  ;;  %v1128_v59 = vadd.f32 %v1127_v52, %v5928_v2 }
 0x25e   : > { %v1130_v55 = vadd.f32 %v1129_v53, %v5924_v0  ;;  %v1131_v58 = vpop.f32.mrb[23].mxu1 }
 0x25f   : > { %v1132_v17 = vadd.f32 %v1131_v58, %v5928_v2 }
 0x260   : > { %v1159_v60 = vpack.c.bf16 %v1130_v55, %v1126_v54 }
 0x261   : > { %v1167_v27 = vpack.c.bf16 %v1132_v17, %v1128_v59 }
 0x262   : > { %1607 = vrot.lane.b32.xlu1 %v1159_v60, %s5511_s22  ;;  %4864 = vmatprep.subr.msk.bf16.mxu0 %vm1170_vm0, %v1159_v60  ;;  %v1211_v62 = vsel %vm1170_vm0, %v1159_v60, 0 }
 0x263   : > { %v1135_v28 = vpop.f32.mrb[24].mxu1  ;;  %4710 = vmatpush3.bf16.xpose.msra.mxu0 %v1211_v62  ;;  %4741 = vmatprep.subr.bf16.mxu1 %v1167_v27 }
 0x264   : > { %v1137_v15 = vpop.f32.mrb[25].mxu1  ;;  %4742 = vmatpush3.bf16.msra.mxu1 %v1167_v27  ;;  %v1136_v5 = vadd.f32 %v1135_v28, %v5924_v0 }
 0x265   : > { %v1139_v1 = vpop.f32.mrb[26].mxu1  ;;  %v1138_v7 = vadd.f32 %v1137_v15, %v5928_v2 }
 0x266   : > { %v1140_v40 = vadd.f32 %v1139_v1, %v5924_v0  ;;  %v1141_v6 = vpop.f32.mrb[27].mxu1 }
 0x267   : > { %v1142_v9 = vadd.f32 %v1141_v6, %v5928_v2 }
 0x268   : > { %v1160_v10 = vpack.c.bf16 %v1140_v40, %v1136_v5 }
 0x269   : > { %v6035_v41 = vpack.c.bf16 %v1142_v9, %v1138_v7 }
 0x26a   : > { %1609 = vrot.lane.b32.xlu0 %v1160_v10, %s5511_s22  ;;  %4865 = vmatprep.subr.msk.bf16.mxu0 %vm1170_vm0, %v1160_v10  ;;  %v1214_v19 = vsel %vm1170_vm0, %v1160_v10, 0 }
 0x26b   : > { %v1145_v21 = vpop.f32.mrb[28].mxu1  ;;  %4712 = vmatpush3.bf16.xpose.msra.mxu0 %v1214_v19  ;;  %4743 = vmatprep.subr.bf16.mxu1 %v6035_v41 }
 0x26c   : > { %v1147_v48 = vpop.f32.mrb[29].mxu1  ;;  %4744 = vmatpush3.bf16.msra.mxu1 %v6035_v41  ;;  %v1146_v12 = vadd.f32 %v1145_v21, %v5924_v0 }
 0x26d   : > { %v1149_v23 = vpop.f32.mrb[30].mxu1  ;;  %v1148_v29 = vadd.f32 %v1147_v48, %v5928_v2 }
 0x26e   : > { %v1150_v13 = vadd.f32 %v1149_v23, %v5924_v0  ;;  %1573 = vrot.lane.b32.xlu0 %v5952_v24, %s5511_s22  ;;  %v1151_v26 = vpop.f32.mrb[31].mxu1 }
 0x26f   : > { %v1152_v34 = vadd.f32 %v1151_v26, %v5928_v2 }
 0x270   : > { %v1161_v49 = vpack.c.bf16 %v1150_v13, %v1146_v12 }
 0x271   : > { %v6048_v56 = vpack.c.bf16 %v1152_v34, %v1148_v29 }
 0x272   : > { %1577 = vrot.lane.b32.xlu0 %v5973_v11, %s5511_s22  ;;  %1611 = vrot.lane.b32.xlu1 %v1161_v49, %s5511_s22  ;;  %v1217_v14 = vsel %vm1170_vm0, %v1161_v49, 0 }
 0x273   : > { %4866 = vmatprep.subr.msk.bf16.mxu0 %vm1170_vm0, %v1161_v49  ;;  %4745 = vmatprep.subr.bf16.mxu1 %v6048_v56 }
 0x274   : > { %4714 = vmatpush3.bf16.xpose.msra.mxu0 %v1217_v14  ;;  %4746 = vmatpush3.bf16.msra.mxu1 %v6048_v56 }
 0x276   : > { %1581 = vrot.lane.b32.xlu0 %v5992_v16, %s5511_s22  ;;  %1575 = vrot.lane.b32.xlu1 %v5949_v31, %s5511_s22 }
 0x27a   : > { %1579 = vrot.lane.b32.xlu1 %v5970_v25, %s5511_s22  ;;  %1585 = vrot.lane.b32.xlu0 %v6011_v32, %s5511_s22 }
 0x27b   : > { %4716 = vmatmul.mubr.msk.bf16.vlgmr.msra.gmra.mrb[16].mxu0 %vm1170_vm0, %v5949_v31 }
 0x27c   : > { %4719 = vmatprep.mubr.msk.bf16.mxu0 %vm1170_vm0, %v5973_v11 }
 0x27e   : > { %1583 = vrot.lane.b32.xlu1 %v5989_v8, %s5511_s22  ;;  %1918 = vrot.lane.b32.xlu0 %v5939_v20, %s5511_s22 }
 0x282   : > { %1587 = vrot.lane.b32.xlu1 %v6008_v38, %s5511_s22  ;;  %1922 = vrot.lane.b32.xlu0 %v5979_v61, %s5511_s22 }
 0x283   : > { %4720 = vmatmul.mubr.msk.bf16.gmra.mrb[20].mxu0 %vm1170_vm0, %v5970_v25 }
 0x284   : > { %4723 = vmatprep.mubr.msk.bf16.mxu0 %vm1170_vm0, %v5992_v16 }
 0x286   : > { %1920 = vrot.lane.b32.xlu1 %v5960_v57, %s5511_s22  ;;  %1924 = vrot.lane.b32.xlu0 %v5999_v30, %s5511_s22 }
 0x28a   : > { %1928 = vrot.lane.b32.xlu1 %v1167_v27, %s5511_s22  ;;  %1926 = vrot.lane.b32.xlu0 %v6017_v50, %s5511_s22 }
 0x28b   : > { %4724 = vmatmul.mubr.msk.bf16.gmra.mrb[24].mxu0 %vm1170_vm0, %v5989_v8 }
 0x28c   : > { %4727 = vmatprep.mubr.msk.bf16.mxu0 %vm1170_vm0, %v6011_v32 }
 0x293   : > { %4728 = vmatmul.mubr.msk.bf16.gmra.mrb[28].mxu0 %vm1170_vm0, %v6008_v38 }
 0x2ac   : > { %v1598_v0 = vpop.permute.xlu0 %1597 }
 0x2ad   : > { %4867 = vmatprep.subr.msk.bf16.mxu0 %vm1170_vm0, %v1598_v0  ;;  %v1638_v2 = vsel %vm1170_vm0, %v1598_v0, 0 }
 0x2ae   : > { %4764 = vmatpush3.bf16.xpose.msra.mxu0 %v1638_v2 }
 0x2b4   : > { %v1600_v20 = vpop.permute.xlu1 %1599 }
 0x2b5   : > { %4868 = vmatprep.subr.msk.bf16.mxu0 %vm1170_vm0, %v1600_v20  ;;  %v1641_v31 = vsel %vm1170_vm0, %v1600_v20, 0 }
 0x2b6   : > { %4766 = vmatpush3.bf16.xpose.msra.mxu0 %v1641_v31 }
 0x2bc   : > { %v1602_v24 = vpop.permute.xlu1 %1601 }
 0x2bd   : > { %4869 = vmatprep.subr.msk.bf16.mxu0 %vm1170_vm0, %v1602_v24  ;;  %v1644_v57 = vsel %vm1170_vm0, %v1602_v24, 0 }
 0x2be   : > { %4768 = vmatpush3.bf16.xpose.msra.mxu0 %v1644_v57 }
 0x2c4   : > { %v1604_v25 = vpop.permute.xlu1 %1603 }
 0x2c5   : > { %4870 = vmatprep.subr.msk.bf16.mxu0 %vm1170_vm0, %v1604_v25  ;;  %v1647_v11 = vsel %vm1170_vm0, %v1604_v25, 0 }
 0x2c6   : > { %4770 = vmatpush3.bf16.xpose.msra.mxu0 %v1647_v11 }
 0x2cc   : > { %v1606_v61 = vpop.permute.xlu0 %1605 }
 0x2cd   : > { %4871 = vmatprep.subr.msk.bf16.mxu0 %vm1170_vm0, %v1606_v61  ;;  %v1650_v8 = vsel %vm1170_vm0, %v1606_v61, 0 }
 0x2ce   : > { %4772 = vmatpush3.bf16.xpose.msra.mxu0 %v1650_v8 }
 0x2d4   : > { %v1608_v16 = vpop.permute.xlu1 %1607 }
 0x2d5   : > { %4872 = vmatprep.subr.msk.bf16.mxu0 %vm1170_vm0, %v1608_v16  ;;  %v1653_v30 = vsel %vm1170_vm0, %v1608_v16, 0 }
 0x2d6   : > { %4774 = vmatpush3.bf16.xpose.msra.mxu0 %v1653_v30 }
 0x2dc   : > { %v1610_v35 = vpop.permute.xlu0 %1609 }
 0x2dd   : > { %4873 = vmatprep.subr.msk.bf16.mxu0 %vm1170_vm0, %v1610_v35  ;;  %v1656_v36 = vsel %vm1170_vm0, %v1610_v35, 0 }
 0x2de   : > { %4776 = vmatpush3.bf16.xpose.msra.mxu0 %v1656_v36 }
 0x2e0   : > { %v1574_v37 = vpop.permute.xlu0 %1573 }
 0x2e1   : > { %4779 = vmatprep.mubr.msk.bf16.mxu0 %vm1170_vm0, %v1574_v37 }
 0x2e4   : > { %v1612_v38 = vpop.permute.xlu1 %1611  ;;  %v1578_v39 = vpop.permute.xlu0 %1577 }
 0x2e5   : > { %4874 = vmatprep.subr.msk.bf16.mxu0 %vm1170_vm0, %v1612_v38  ;;  %v1659_v32 = vsel %vm1170_vm0, %v1612_v38, 0 }
 0x2e6   : > { %4778 = vmatpush3.bf16.xpose.msra.mxu0 %v1659_v32 }
 0x2e8   : > { %v1582_v42 = vpop.permute.xlu0 %1581  ;;  %v1576_v43 = vpop.permute.xlu1 %1575 }
 0x2ec   : > { %v1586_v44 = vpop.permute.xlu0 %1585  ;;  %v1580_v45 = vpop.permute.xlu1 %1579 }
 0x2ed   : > { %4780 = vmatmul.mubr.msk.bf16.vlgmr.msra.gmra.mrb[32].mxu0 %vm1170_vm0, %v1576_v43 }
 0x2ee   : > { %4783 = vmatprep.mubr.msk.bf16.mxu0 %vm1170_vm0, %v1578_v39 }
 0x2f0   : > { %v6113_v3 = vpop.permute.xlu0 %1918  ;;  %v1584_v18 = vpop.permute.xlu1 %1583 }
 0x2f1   : > { %4795 = vmatprep.subr.bf16.mxu1 %v6113_v3 }
 0x2f4   : > { %v1588_v47 = vpop.permute.xlu1 %1587  ;;  %v6192_v48 = vpop.permute.xlu0 %1922 }
 0x2f5   : > { %4784 = vmatmul.mubr.msk.bf16.gmra.mrb[36].mxu0 %vm1170_vm0, %v1580_v45 }
 0x2f6   : > { %4787 = vmatprep.mubr.msk.bf16.mxu0 %vm1170_vm0, %v1582_v42 }
 0x2f8   : > { %v6201_v13 = vpop.permute.xlu0 %1924  ;;  %v6209_v34 = vpop.permute.xlu1 %1920 }
 0x2fc   : > { %v6212_v49 = vpop.permute.xlu0 %1926  ;;  %v6224_v24 = vpop.permute.xlu1 %1928 }
 0x2fd   : > { %4788 = vmatmul.mubr.msk.bf16.gmra.mrb[40].mxu0 %vm1170_vm0, %v1584_v18 }
 0x2fe   : > { %4791 = vmatprep.mubr.msk.bf16.mxu0 %vm1170_vm0, %v1586_v44 }
 0x305   : > { %4792 = vmatmul.mubr.msk.bf16.gmra.mrb[44].mxu0 %vm1170_vm0, %v1588_v47 }
 0x306   : > { %2835 = vmatprep.mubr.bf16.mxu0 %v5510_v46 }
 0x34e   : > { %v6122_v50 = vpop.f32.mrb[16].mxu0 }
 0x34f   : > { %v6124_v51 = vpop.f32.mrb[17].mxu0  ;;  %1320 = vmax.xlane.f32.xlu0 %v6122_v50 }
 0x350   : > { %v6127_v4 = vpop.f32.mrb[18].mxu0 }
 0x351   : > { %v6129_v52 = vpop.f32.mrb[19].mxu0 }
 0x352   : > { %1318 = vmax.xlane.f32.xlu1 %v6129_v52 }
 0x353   : > { %1316 = vmax.xlane.f32.xlu0 %v6124_v51 }
 0x356   : > { %v6133_v53 = vpop.f32.mrb[20].mxu0 }
 0x357   : > { %v6135_v54 = vpop.f32.mrb[21].mxu0  ;;  %1322 = vmax.xlane.f32.xlu0 %v6127_v4 }
 0x358   : > { %v6138_v55 = vpop.f32.mrb[22].mxu0 }
 0x359   : > { %1330 = vmax.xlane.f32.xlu1 %v6138_v55  ;;  %v6141_v58 = vpop.f32.mrb[23].mxu0 }
 0x35b   : > { %1328 = vmax.xlane.f32.xlu0 %v6133_v53 }
 0x35d   : > { %1326 = vmax.xlane.f32.xlu1 %v6141_v58 }
 0x35e   : > { %v6145_v59 = vpop.f32.mrb[24].mxu0 }
 0x35f   : > { %v6147_v17 = vpop.f32.mrb[25].mxu0  ;;  %1324 = vmax.xlane.f32.xlu0 %v6135_v54 }
 0x360   : > { %v6150_v60 = vpop.f32.mrb[26].mxu0 }
 0x361   : > { %1338 = vmax.xlane.f32.xlu1 %v6150_v60  ;;  %v6153_v27 = vpop.f32.mrb[27].mxu0 }
 0x363   : > { %1336 = vmax.xlane.f32.xlu0 %v6145_v59 }
 0x365   : > { %1334 = vmax.xlane.f32.xlu1 %v6153_v27 }
 0x366   : > { %v6157_v62 = vpop.f32.mrb[28].mxu0 }
 0x367   : > { %1332 = vmax.xlane.f32.xlu0 %v6147_v17  ;;  %v6160_v28 = vpop.f32.mrb[29].mxu0 }
 0x368   : > { %v6162_v15 = vpop.f32.mrb[30].mxu0 }
 0x369   : > { %1346 = vmax.xlane.f32.xlu1 %v6162_v15  ;;  %v6165_v1 = vpop.f32.mrb[31].mxu0 }
 0x36b   : > { %1344 = vmax.xlane.f32.xlu0 %v6157_v62 }
 0x36d   : > { %1342 = vmax.xlane.f32.xlu1 %v6165_v1 }
 0x36f   : > { %1340 = vmax.xlane.f32.xlu0 %v6160_v28 }
 0x3c0   : > { %v6170_v5 = vpop.f32.mrb[32].mxu0 }
 0x3c1   : > { %1762 = vmax.xlane.f32.xlu0 %v6170_v5  ;;  %v6173_v40 = vpop.f32.mrb[33].mxu0 }
 0x3c2   : > { %v6175_v6 = vpop.f32.mrb[34].mxu0 }
 0x3c3   : > { %1764 = vmax.xlane.f32.xlu1 %v6175_v6  ;;  %v6178_v7 = vpop.f32.mrb[35].mxu0 }
 0x3c5   : > { %1758 = vmax.xlane.f32.xlu0 %v6173_v40 }
 0x3c7   : > { %1760 = vmax.xlane.f32.xlu1 %v6178_v7 }
 0x3c8   : > { %v6182_v9 = vpop.f32.mrb[36].mxu0 }
 0x3c9   : > { %1770 = vmax.xlane.f32.xlu0 %v6182_v9  ;;  %v6185_v10 = vpop.f32.mrb[37].mxu0 }
 0x3ca   : > { %v6187_v19 = vpop.f32.mrb[38].mxu0 }
 0x3cb   : > { %1772 = vmax.xlane.f32.xlu1 %v6187_v19  ;;  %v6190_v21 = vpop.f32.mrb[39].mxu0 }
 0x3cd   : > { %1766 = vmax.xlane.f32.xlu0 %v6185_v10 }
 0x3cf   : > { %1768 = vmax.xlane.f32.xlu1 %v6190_v21 }
 0x3d0   : > { %v6196_v23 = vpop.f32.mrb[40].mxu0 }
 0x3d1   : > { %1778 = vmax.xlane.f32.xlu0 %v6196_v23  ;;  %v6199_v12 = vpop.f32.mrb[41].mxu0 }
 0x3d2   : > { %v6203_v26 = vpop.f32.mrb[42].mxu0 }
 0x3d3   : > { %1780 = vmax.xlane.f32.xlu1 %v6203_v26  ;;  %v6206_v29 = vpop.f32.mrb[43].mxu0 }
 0x3d5   : > { %1774 = vmax.xlane.f32.xlu0 %v6199_v12 }
 0x3d7   : > { %1776 = vmax.xlane.f32.xlu1 %v6206_v29 }
 0x3d8   : > { %v6214_v14 = vpop.f32.mrb[44].mxu0 }
 0x3d9   : > { %1786 = vmax.xlane.f32.xlu0 %v6214_v14  ;;  %v6217_v0 = vpop.f32.mrb[45].mxu0 }
 0x3da   : > { %v6219_v2 = vpop.f32.mrb[46].mxu0 }
 0x3db   : > { %1788 = vmax.xlane.f32.xlu1 %v6219_v2  ;;  %v6222_v20 = vpop.f32.mrb[47].mxu0 }
 0x3dc   : > { %v1321_v31 = vpop.xlane.xlu0 %1320 }
 0x3dd   : > { %v1350_v57 = vsub.f32 %v6122_v50, %v1321_v31  ;;  %1782 = vmax.xlane.f32.xlu0 %v6217_v0 }
 0x3df   : > { %v1368_v25 = vmul.f32 1.442695, %v1350_v57  ;;  %1784 = vmax.xlane.f32.xlu1 %v6222_v20  ;;  %v1319_v61 = vpop.xlane.xlu1 %1318 }
 0x3e0   : > { %v1317_v11 = vpop.xlane.xlu0 %1316  ;;  %v1349_v30 = vsub.f32 %v6129_v52, %v1319_v61 }
 0x3e1   : > { %5126 = vpow2.f32 %v1368_v25  ;;  %v1348_v8 = vsub.f32 %v6124_v51, %v1317_v11 }
 0x3e2   : > { %v1366_v39 = vmul.f32 1.442695, %v1349_v30 }
 0x3e3   : > { %v1364_v16 = vmul.f32 1.442695, %v1348_v8 }
 0x3e4   : > { %v1323_v35 = vpop.xlane.xlu0 %1322 }
 0x3e5   : > { %5128 = vpow2.f32 %v1364_v16  ;;  %v1351_v36 = vsub.f32 %v6127_v4, %v1323_v35 }
 0x3e6   : > { %v1331_v37 = vpop.xlane.xlu1 %1330 }
 0x3e7   : > { %v1370_v38 = vmul.f32 1.442695, %v1351_v36  ;;  %v1355_v32 = vsub.f32 %v6138_v55, %v1331_v37 }
 0x3e8   : > { %v1329_v42 = vpop.xlane.xlu0 %1328 }
 0x3e9   : > { %5130 = vpow2.f32 %v1370_v38  ;;  %v1354_v43 = vsub.f32 %v6133_v53, %v1329_v42  ;;  %v1378_v47 = vmul.f32 1.442695, %v1355_v32 }
 0x3ea   : > { %v1327_v44 = vpop.xlane.xlu1 %1326  ;;  %5132 = vpow2.f32 %v1366_v39 }
 0x3eb   : > { %v6234_v45 = vpop.eup %5126  ;;  %v1376_v18 = vmul.f32 1.442695, %v1354_v43  ;;  %v1353_v50 = vsub.f32 %v6141_v58, %v1327_v44 }
 0x3ec   : > { %1400 = vadd.xlane.f32.xlu0 %v6234_v45  ;;  %v1325_v51 = vpop.xlane.xlu0 %1324 }
 0x3ed   : > { %5134 = vpow2.f32 %v1376_v18  ;;  %v1352_v4 = vsub.f32 %v6135_v54, %v1325_v51  ;;  %v1374_v53 = vmul.f32 1.442695, %v1353_v50 }
 0x3ee   : > { %v1339_v52 = vpop.xlane.xlu1 %1338  ;;  %5136 = vpow2.f32 %v1378_v47 }
 0x3ef   : > { %v6239_v55 = vpop.eup %5128  ;;  %v1372_v31 = vmul.f32 1.442695, %v1352_v4  ;;  %v1359_v57 = vsub.f32 %v6150_v60, %v1339_v52 }
 0x3f0   : > { %1396 = vadd.xlane.f32.xlu0 %v6239_v55  ;;  %v1337_v25 = vpop.xlane.xlu0 %1336 }
 0x3f1   : > { %5138 = vpow2.f32 %v1372_v31  ;;  %v1358_v58 = vsub.f32 %v6145_v59, %v1337_v25  ;;  %v1386_v54 = vmul.f32 1.442695, %v1359_v57 }
 0x3f2   : > { %v1335_v11 = vpop.xlane.xlu1 %1334  ;;  %5140 = vpow2.f32 %v1374_v53 }
 0x3f3   : > { %v6244_v61 = vpop.eup %5130  ;;  %v1384_v8 = vmul.f32 1.442695, %v1358_v58  ;;  %v1357_v16 = vsub.f32 %v6153_v27, %v1335_v11 }
 0x3f4   : > { %1402 = vadd.xlane.f32.xlu1 %v6244_v61  ;;  %v1333_v30 = vpop.xlane.xlu0 %1332  ;;  %v6249_v35 = vpop.eup %5132 }
 0x3f5   : > { %5142 = vpow2.f32 %v1384_v8  ;;  %v1356_v60 = vsub.f32 %v6147_v17, %v1333_v30  ;;  %v1382_v38 = vmul.f32 1.442695, %v1357_v16 }
 0x3f6   : > { %v1347_v36 = vpop.xlane.xlu1 %1346  ;;  %5144 = vpow2.f32 %v1386_v54 }
 0x3f7   : > { %v6251_v37 = vpop.eup %5134  ;;  %v1380_v59 = vmul.f32 1.442695, %v1356_v60  ;;  %v1363_v39 = vsub.f32 %v6162_v15, %v1347_v36 }
 0x3f8   : > { %1398 = vadd.xlane.f32.xlu1 %v6249_v35  ;;  %1408 = vadd.xlane.f32.xlu0 %v6251_v37  ;;  %v1345_v27 = vpop.xlane.xlu0 %1344  ;;  %v6257_v42 = vpop.eup %5136 }
 0x3f9   : > { %5146 = vpow2.f32 %v1380_v59  ;;  %v1362_v32 = vsub.f32 %v6157_v62, %v1345_v27  ;;  %v1394_v18 = vmul.f32 1.442695, %v1363_v39 }
 0x3fa   : > { %v1343_v17 = vpop.xlane.xlu1 %1342  ;;  %5148 = vpow2.f32 %v1382_v38 }
 0x3fb   : > { %v6259_v43 = vpop.eup %5138  ;;  %v1392_v44 = vmul.f32 1.442695, %v1362_v32  ;;  %v1361_v47 = vsub.f32 %v6165_v1, %v1343_v17 }
 0x3fc   : > { %1410 = vadd.xlane.f32.xlu1 %v6257_v42  ;;  %1404 = vadd.xlane.f32.xlu0 %v6259_v43  ;;  %v1341_v15 = vpop.xlane.xlu0 %1340  ;;  %v6265_v51 = vpop.eup %5140 }
 0x3fd   : > { %5150 = vpow2.f32 %v1392_v44  ;;  %v1360_v50 = vsub.f32 %v6160_v28, %v1341_v15  ;;  %v1390_v52 = vmul.f32 1.442695, %v1361_v47 }
 0x3fe   : > { %5152 = vpow2.f32 %v1394_v18 }
 0x3ff   : > { %v6267_v62 = vpop.eup %5142  ;;  %v1388_v4 = vmul.f32 1.442695, %v1360_v50 }
 0x400   : > { %1406 = vadd.xlane.f32.xlu1 %v6265_v51  ;;  %1416 = vadd.xlane.f32.xlu0 %v6267_v62  ;;  %v6271_v31 = vpop.eup %5144 }
 0x401   : > { %5154 = vpow2.f32 %v1388_v4 }
 0x402   : > { %5156 = vpow2.f32 %v1390_v52 }
 0x403   : > { %v6273_v53 = vpop.eup %5146 }
 0x404   : > { %1418 = vadd.xlane.f32.xlu1 %v6271_v31  ;;  %1412 = vadd.xlane.f32.xlu0 %v6273_v53  ;;  %v6277_v28 = vpop.eup %5148 }
 0x407   : > { %v6279_v1 = vpop.eup %5150 }
 0x408   : > { %1414 = vadd.xlane.f32.xlu1 %v6277_v28  ;;  %1424 = vadd.xlane.f32.xlu0 %v6279_v1  ;;  %v6283_v57 = vpop.eup %5152 }
 0x40b   : > { %v6285_v25 = vpop.eup %5154 }
 0x40c   : > { %1426 = vadd.xlane.f32.xlu1 %v6283_v57  ;;  %1420 = vadd.xlane.f32.xlu0 %v6285_v25  ;;  %v6289_v58 = vpop.eup %5156 }
 0x410   : > { %1422 = vadd.xlane.f32.xlu1 %v6289_v58 }
 0x44e   : > { %v1763_v11 = vpop.xlane.xlu0 %1762 }
 0x44f   : > { %v1792_v8 = vsub.f32 %v6170_v5, %v1763_v11 }
 0x450   : > { %v1765_v54 = vpop.xlane.xlu1 %1764 }
 0x451   : > { %v1810_v16 = vmul.f32 1.442695, %v1792_v8  ;;  %v1793_v30 = vsub.f32 %v6175_v6, %v1765_v54 }
 0x452   : > { %v1759_v60 = vpop.xlane.xlu0 %1758 }
 0x453   : > { %5158 = vpow2.f32 %v1810_v16  ;;  %v1790_v36 = vsub.f32 %v6173_v40, %v1759_v60  ;;  %v1812_v39 = vmul.f32 1.442695, %v1793_v30 }
 0x454   : > { %v1761_v59 = vpop.xlane.xlu1 %1760 }
 0x455   : > { %v1806_v38 = vmul.f32 1.442695, %v1790_v36  ;;  %v1791_v27 = vsub.f32 %v6178_v7, %v1761_v59 }
 0x456   : > { %v1771_v32 = vpop.xlane.xlu0 %1770 }
 0x457   : > { %5160 = vpow2.f32 %v1806_v38  ;;  %v1796_v17 = vsub.f32 %v6182_v9, %v1771_v32  ;;  %v1808_v15 = vmul.f32 1.442695, %v1791_v27 }
 0x458   : > { %v1773_v44 = vpop.xlane.xlu1 %1772  ;;  %5162 = vpow2.f32 %v1812_v39 }
 0x459   : > { %v1818_v18 = vmul.f32 1.442695, %v1796_v17  ;;  %v1797_v5 = vsub.f32 %v6187_v19, %v1773_v44 }
 0x45a   : > { %v1767_v6 = vpop.xlane.xlu0 %1766 }
 0x45b   : > { %5164 = vpow2.f32 %v1818_v18  ;;  %v1820_v47 = vmul.f32 1.442695, %v1797_v5  ;;  %v1794_v40 = vsub.f32 %v6185_v10, %v1767_v6 }
 0x45c   : > { %v1769_v50 = vpop.xlane.xlu1 %1768  ;;  %5166 = vpow2.f32 %v1808_v15 }
 0x45d   : > { %v6299_v4 = vpop.eup %5158  ;;  %v1795_v7 = vsub.f32 %v6190_v21, %v1769_v50  ;;  %v1814_v52 = vmul.f32 1.442695, %v1794_v40  ;;  %5168 = vpow2.f32 %v1820_v47 }
 0x45e   : > { %1842 = vadd.xlane.f32.xlu1 %v6299_v4  ;;  %v1779_v8 = vpop.xlane.xlu0 %1778 }
 0x45f   : > { %v1816_v9 = vmul.f32 1.442695, %v1795_v7  ;;  %5170 = vpow2.f32 %v1814_v52 }
 0x460   : > { %v1781_v16 = vpop.xlane.xlu1 %1780 }
 0x461   : > { %v6303_v11 = vpop.eup %5160  ;;  %5172 = vpow2.f32 %v1816_v9  ;;  %v1800_v9 = vsub.f32 %v6196_v23, %v1779_v8 }
 0x462   : > { %1838 = vadd.xlane.f32.xlu1 %v6303_v11  ;;  %v6306_v19 = vpop.eup %5162  ;;  %v1775_v30 = vpop.xlane.xlu0 %1774 }
 0x463   : > { %v1826_v63 = vmul.f32 1.442695, %v1800_v9 }
 0x464   : > { %v1777_v59 = vpop.xlane.xlu1 %1776 }
 0x465   : > { %v6308_v10 = vpop.eup %5164 }
 0x466   : > { %1844 = vadd.xlane.f32.xlu1 %v6306_v19  ;;  %1850 = vadd.xlane.f32.xlu0 %v6308_v10  ;;  %v6312_v21 = vpop.eup %5166  ;;  %v6324_v38 = vpop.xlane.xlu0 %1786 }
 0x467   : > { %v6314_v54 = vpop.eup %5168 }
 0x468   : > { %v6326_v39 = vpop.xlane.xlu1 %1788 }
 0x469   : > { %v6318_v60 = vpop.eup %5170 }
 0x46a   : > { %1840 = vadd.xlane.f32.xlu1 %v6312_v21  ;;  %1852 = vadd.xlane.f32.xlu0 %v6314_v54  ;;  %v6328_v27 = vpop.xlane.xlu0 %1782 }
 0x46b   : > { %v6320_v36 = vpop.eup %5172 }
 0x46c   : > { %v6330_v17 = vpop.xlane.xlu1 %1784 }
 0x46e   : > { %1848 = vadd.xlane.f32.xlu0 %v6320_v36  ;;  %1846 = vadd.xlane.f32.xlu1 %v6318_v60 }
 0x479   : > { %v1401_v32 = vpop.xlane.xlu0 %1400 }
 0x47d   : > { %v1397_v44 = vpop.xlane.xlu0 %1396 }
 0x47f   : > { %1932 = vrot.lane.b32.xlu1 %v6048_v56, %s5511_s22 }
 0x481   : > { %v1403_v18 = vpop.xlane.xlu1 %1402 }
 0x482   : > { %5174 = vrcp.f32 %v1403_v18  ;;  %v1798_v18 = vsub.f32 %v6199_v12, %v1775_v30 }
 0x483   : > { %5176 = vrcp.f32 %v1397_v44 }
 0x484   : > { %1930 = vrot.lane.b32.xlu0 %v6035_v41, %s5511_s22  ;;  %5178 = vrcp.f32 %v1401_v32  ;;  %v1799_v41 = vsub.f32 %v6206_v29, %v1777_v59 }
 0x485   : > { %v1399_v5 = vpop.xlane.xlu1 %1398  ;;  %v1409_v15 = vpop.xlane.xlu0 %1408 }
 0x486   : > { %5180 = vrcp.f32 %v1399_v5  ;;  %v1824_v8 = vmul.f32 1.442695, %v1799_v41 }
 0x489   : > { %v1411_v6 = vpop.xlane.xlu1 %1410  ;;  %v1405_v47 = vpop.xlane.xlu0 %1404 }
 0x48a   : > { %5182 = vrcp.f32 %v1411_v6 }
 0x48b   : > { %5184 = vrcp.f32 %v1405_v47  ;;  %v1801_v47 = vsub.f32 %v6203_v26, %v1781_v16  ;;  %v1803_v16 = vsub.f32 %v6222_v20, %v6330_v17 }
 0x48c   : > { %v5175_v40 = vpop.eup %5174  ;;  %5186 = vrcp.f32 %v1409_v15 }
 0x48d   : > { %v1407_v50 = vpop.xlane.xlu1 %1406  ;;  %v1417_v7 = vpop.xlane.xlu0 %1416  ;;  %v1447_v32 = vmul.f32 %v5175_v40, %v6244_v61  ;;  %v1822_v61 = vmul.f32 1.442695, %v1798_v18 }
 0x48e   : > { %v5177_v56 = vpop.eup %5176  ;;  %5188 = vrcp.f32 %v1407_v50 }
 0x48f   : > { %v5179_v52 = vpop.eup %5178  ;;  %v1444_v6 = vmul.f32 %v5177_v56, %v6239_v55  ;;  %v1828_v55 = vmul.f32 1.442695, %v1801_v47 }
 0x490   : > { %v5181_v44 = vpop.eup %5180  ;;  %v1446_v50 = vmul.f32 %v5179_v52, %v6234_v45 }
 0x491   : > { %v1419_v5 = vpop.xlane.xlu1 %1418  ;;  %v1413_v33 = vpop.xlane.xlu0 %1412  ;;  %v1445_v15 = vmul.f32 %v5181_v44, %v6249_v35 }
 0x492   : > { %5190 = vrcp.f32 %v1419_v5  ;;  %v1461_v29 = vpack.c.bf16 %v1447_v32, %v1446_v50 }
 0x493   : > { %v1460_v23 = vpack.c.bf16 %v1445_v15, %v1444_v6  ;;  %5192 = vrcp.f32 %v1413_v33  ;;  %v1802_v33 = vsub.f32 %v6217_v0, %v6328_v27 }
 0x494   : > { %v5183_v59 = vpop.eup %5182  ;;  %5194 = vrcp.f32 %v1417_v7 }
 0x495   : > { %v1415_v12 = vpop.xlane.xlu1 %1414  ;;  %4747 = vmatprep.mubr.bf16.mxu1 %v1460_v23  ;;  %v1425_v30 = vpop.xlane.xlu0 %1424  ;;  %v1451_v45 = vmul.f32 %v5183_v59, %v6257_v42  ;;  %v1804_v42 = vsub.f32 %v6214_v14, %v6324_v38  ;;  %v1830_v27 = vmul.f32 1.442695, %v1802_v33 }
 0x496   : > { %v5185_v40 = vpop.eup %5184  ;;  %5196 = vrcp.f32 %v1415_v12  ;;  %4748 = vmatmul.mubr.bf16.vlgmr.msra.gmra.mrb[32].mxu1 %v1461_v29 }
 0x497   : > { %v5187_v35 = vpop.eup %5186  ;;  %5198 = vpow2.f32 %v1826_v63  ;;  %4796 = vmatpush3.bf16.msra.mxu1 %v6113_v3  ;;  %v1448_v52 = vmul.f32 %v5185_v40, %v6259_v43  ;;  %v1805_v43 = vsub.f32 %v6219_v2, %v6326_v39  ;;  %v1834_v38 = vmul.f32 1.442695, %v1804_v42 }
 0x498   : > { %v5189_v26 = vpop.eup %5188  ;;  %5200 = vpow2.f32 %v1824_v8  ;;  %4797 = vmatprep.subr.bf16.mxu1 %v6209_v34  ;;  %v1450_v3 = vmul.f32 %v5187_v35, %v6251_v37 }
 0x499   : > { %5202 = vpow2.f32 %v1822_v61  ;;  %v1427_v7 = vpop.xlane.xlu1 %1426  ;;  %v1421_v56 = vpop.xlane.xlu0 %1420  ;;  %v1449_v63 = vmul.f32 %v5189_v26, %v6265_v51  ;;  %v1832_v51 = vmul.f32 1.442695, %v1803_v16  ;;  %v1836_v2 = vmul.f32 1.442695, %v1805_v43 }
 0x49a   : > { %5204 = vpow2.f32 %v1828_v55  ;;  %v1463_v20 = vpack.c.bf16 %v1451_v45, %v1450_v3 }
 0x49b   : > { %5206 = vrcp.f32 %v1427_v7  ;;  %4798 = vmatpush3.bf16.msra.mxu1 %v6209_v34  ;;  %v1462_v0 = vpack.c.bf16 %v1449_v63, %v1448_v52 }
 0x49c   : > { %5208 = vrcp.f32 %v1421_v56  ;;  %4799 = vmatprep.subr.bf16.mxu1 %v6192_v48  ;;  %v5191_v17 = vpop.eup %5190 }
 0x49d   : > { %5210 = vrcp.f32 %v1425_v30  ;;  %v1423_v9 = vpop.xlane.xlu1 %1422  ;;  %4751 = vmatprep.mubr.bf16.mxu1 %v1462_v0  ;;  %v5193_v37 = vpop.eup %5192  ;;  %v1455_v44 = vmul.f32 %v5191_v17, %v6271_v31 }
 0x49e   : > { %5212 = vrcp.f32 %v1423_v9  ;;  %4752 = vmatmul.mubr.bf16.gmra.mrb[36].mxu1 %v1463_v20  ;;  %v5195_v34 = vpop.eup %5194  ;;  %v1452_v39 = vmul.f32 %v5193_v37, %v6273_v53 }
 0x49f   : > { %4800 = vmatpush3.bf16.msra.mxu1 %v6192_v48  ;;  %5214 = vpow2.f32 %v1830_v27  ;;  %v1454_v5 = vmul.f32 %v5195_v34, %v6267_v62 }
 0x4a0   : > { %v5197_v14 = vpop.eup %5196  ;;  %4801 = vmatprep.subr.bf16.mxu1 %v6201_v13  ;;  %5216 = vpow2.f32 %v1832_v51 }
 0x4a1   : > { %v6363_v41 = vpop.eup %5198  ;;  %v1453_v32 = vmul.f32 %v5197_v14, %v6277_v28  ;;  %5218 = vpow2.f32 %v1834_v38  ;;  %v1465_v53 = vpack.c.bf16 %v1455_v44, %v1454_v5 }
 0x4a2   : > { %v6367_v18 = vpop.eup %5200  ;;  %5220 = vpow2.f32 %v1836_v2 }
 0x4a3   : > { %v6370_v48 = vpop.eup %5202  ;;  %4802 = vmatpush3.bf16.msra.mxu1 %v6201_v13  ;;  %1856 = vadd.xlane.f32.xlu0 %v6367_v18  ;;  %v1464_v6 = vpack.c.bf16 %v1453_v32, %v1452_v39 }
 0x4a4   : > { %v6374_v31 = vpop.eup %5204  ;;  %4803 = vmatprep.subr.bf16.mxu1 %v6212_v49  ;;  %1854 = vadd.xlane.f32.xlu1 %v6370_v48 }
 0x4a5   : > { %v5207_v28 = vpop.eup %5206  ;;  %4755 = vmatprep.mubr.bf16.mxu1 %v1464_v6 }
 0x4a6   : > { %v5209_v15 = vpop.eup %5208  ;;  %4756 = vmatmul.mubr.bf16.gmra.mrb[40].mxu1 %v1465_v53  ;;  %v1459_v47 = vmul.f32 %v5207_v28, %v6283_v57 }
 0x4a7   : > { %v5211_v62 = vpop.eup %5210  ;;  %4804 = vmatpush3.bf16.msra.mxu1 %v6212_v49  ;;  %1858 = vadd.xlane.f32.xlu0 %v6363_v41  ;;  %v1456_v50 = vmul.f32 %v5209_v15, %v6285_v25 }
 0x4a8   : > { %v5213_v13 = vpop.eup %5212  ;;  %4805 = vmatprep.subr.bf16.mxu1 %v6224_v24  ;;  %1860 = vadd.xlane.f32.xlu1 %v6374_v31  ;;  %v1458_v29 = vmul.f32 %v5211_v62, %v6279_v1 }
 0x4a9   : > { %v1457_v23 = vmul.f32 %v5213_v13, %v6289_v58  ;;  %v6385_v8 = vpop.eup %5214 }
 0x4aa   : > { %v6388_v59 = vpop.eup %5216  ;;  %v1467_v61 = vpack.c.bf16 %v1459_v47, %v1458_v29 }
 0x4ab   : > { %4806 = vmatpush3.bf16.msra.mxu1 %v6224_v24  ;;  %1862 = vadd.xlane.f32.xlu0 %v6385_v8  ;;  %v1466_v49 = vpack.c.bf16 %v1457_v23, %v1456_v50  ;;  %v6393_v57 = vpop.eup %5218 }
 0x4ac   : > { %1864 = vadd.xlane.f32.xlu1 %v6388_v59  ;;  %v6395_v25 = vpop.eup %5220 }
 0x4ad   : > { %4759 = vmatprep.mubr.bf16.mxu1 %v1466_v49 }
 0x4ae   : > { %4760 = vmatmul.mubr.bf16.gmra.mrb[44].mxu1 %v1467_v61 }
 0x4af   : > { %1866 = vadd.xlane.f32.xlu0 %v6393_v57 }
 0x4b0   : > { %1868 = vadd.xlane.f32.xlu1 %v6395_v25 }
 0x4eb   : > { %v1843_v1 = vpop.xlane.xlu1 %1842 }
 0x4ef   : > { %v1839_v58 = vpop.xlane.xlu1 %1838 }
 0x4f3   : > { %v1845_v12 = vpop.xlane.xlu1 %1844  ;;  %v1851_v24 = vpop.xlane.xlu0 %1850 }
 0x4f4   : > { %5222 = vrcp.f32 %v1845_v12 }
 0x4f5   : > { %5224 = vrcp.f32 %v1839_v58 }
 0x4f6   : > { %5226 = vrcp.f32 %v1843_v1 }
 0x4f7   : > { %v1841_v30 = vpop.xlane.xlu1 %1840  ;;  %v1853_v40 = vpop.xlane.xlu0 %1852 }
 0x4f8   : > { %5228 = vrcp.f32 %v1841_v30 }
 0x4f9   : > { %5230 = vrcp.f32 %v1853_v40 }
 0x4fb   : > { %v1847_v55 = vpop.xlane.xlu1 %1846  ;;  %v1849_v35 = vpop.xlane.xlu0 %1848 }
 0x4fc   : > { %5232 = vrcp.f32 %v1847_v55 }
 0x4fd   : > { %5234 = vrcp.f32 %v1849_v35 }
 0x4fe   : > { %v5223_v26 = vpop.eup %5222  ;;  %5236 = vrcp.f32 %v1851_v24 }
 0x4ff   : > { %v1931_v33 = vpop.permute.xlu0 %1930  ;;  %v5225_v45 = vpop.eup %5224  ;;  %v1889_v52 = vmul.f32 %v5223_v26, %v6306_v19 }
 0x500   : > { %4807 = vmatprep.subr.bf16.mxu1 %v1931_v33  ;;  %v5227_v16 = vpop.eup %5226  ;;  %v1933_v7 = vpop.permute.xlu1 %1932  ;;  %v1886_v63 = vmul.f32 %v5225_v45, %v6303_v11 }
 0x501   : > { %4808 = vmatpush3.bf16.msra.mxu1 %v1931_v33  ;;  %v1888_v0 = vmul.f32 %v5227_v16, %v6299_v4 }
 0x502   : > { %v5229_v56 = vpop.eup %5228  ;;  %4809 = vmatprep.subr.bf16.mxu1 %v1933_v7 }
 0x503   : > { %v1887_v3 = vmul.f32 %v5229_v56, %v6312_v21  ;;  %v5231_v42 = vpop.eup %5230  ;;  %v1903_v17 = vpack.c.bf16 %v1889_v52, %v1888_v0  ;;  %v5007_v56 = vld [vmem:[%s7909_s7 + $0x8] sm:$0xff]   ;;  %v5008_v52 = vld [vmem:[%s7909_s7 + $0x10] sm:$0xff]  }
 0x504   : > { %v1893_v11 = vmul.f32 %v5231_v42, %v6314_v54  ;;  %v5011_v0 = vld [vmem:[%s7909_s7 + $0x28] sm:$0xff]   ;;  %v5012_v42 = vld [vmem:[%s7909_s7 + $0x30] sm:$0xff]  }
 0x505   : > { %4810 = vmatpush3.bf16.msra.mxu1 %v1933_v7  ;;  %v1902_v27 = vpack.c.bf16 %v1887_v3, %v1886_v63  ;;  %v5006_v7 = vld [vmem:[%s7909_s7] sm:$0xff]   ;;  %v5009_v63 = vld [vmem:[%s7909_s7 + $0x18] sm:$0xff]  }
 0x506   : > { %v5233_v20 = vpop.eup %5232  ;;  %4827 = vmatprep.subr.bf16.mxu1 %v5006_v7  ;;  %v5010_v3 = vld [vmem:[%s7909_s7 + $0x20] sm:$0xff]  }
 0x507   : > { %v5235_v43 = vpop.eup %5234  ;;  %4811 = vmatprep.mubr.bf16.mxu1 %v1902_v27  ;;  %v1890_v51 = vmul.f32 %v5233_v20, %v6318_v60  ;;  %v5013_v27 = vld [vmem:[%s7909_s7 + $0x38] sm:$0xff]  }
 0x508   : > { %4812 = vmatmul.mubr.bf16.vlgmr.msra.gmra.mrb[48].mxu1 %v1903_v17  ;;  %v1891_v9 = vmul.f32 %v5235_v43, %v6320_v36  ;;  %v5237_v19 = vpop.eup %5236 }
 0x509   : > { %v1892_v21 = vmul.f32 %v5237_v19, %v6308_v10  ;;  %4828 = vmatpush3.bf16.msra.mxu1 %v5006_v7 }
 0x50a   : > { %v1904_v37 = vpack.c.bf16 %v1891_v9, %v1890_v51  ;;  %4829 = vmatprep.subr.bf16.mxu1 %v5007_v56 }
 0x50b   : > { %v1905_v4 = vpack.c.bf16 %v1893_v11, %v1892_v21 }
 0x50c   : > { %4815 = vmatprep.mubr.bf16.mxu1 %v1904_v37 }
 0x50d   : > { %4830 = vmatpush3.bf16.msra.mxu1 %v5007_v56 }
 0x50e   : > { %4831 = vmatprep.subr.bf16.mxu1 %v5008_v52 }
 0x510   : > { %4816 = vmatmul.mubr.bf16.gmra.mrb[52].mxu1 %v1905_v4 }
 0x511   : > { %4832 = vmatpush3.bf16.msra.mxu1 %v5008_v52 }
 0x512   : > { %4833 = vmatprep.subr.bf16.mxu1 %v5009_v63 }
 0x515   : > { %4834 = vmatpush3.bf16.msra.mxu1 %v5009_v63 }
 0x516   : > { %4835 = vmatprep.subr.bf16.mxu1 %v5010_v3 }
 0x519   : > { %4836 = vmatpush3.bf16.msra.mxu1 %v5010_v3 }
 0x51a   : > { %4837 = vmatprep.subr.bf16.mxu1 %v5011_v0 }
 0x51d   : > { %4838 = vmatpush3.bf16.msra.mxu1 %v5011_v0 }
 0x51e   : > { %4839 = vmatprep.subr.bf16.mxu1 %v5012_v42 }
 0x521   : > { %4840 = vmatpush3.bf16.msra.mxu1 %v5012_v42 }
 0x522   : > { %4841 = vmatprep.subr.bf16.mxu1 %v5013_v27 }
 0x525   : > { %4842 = vmatpush3.bf16.msra.mxu1 %v5013_v27 }
 0x530   : > { %v1857_v34 = vpop.xlane.xlu0 %1856 }
 0x531   : > { %v1855_v14 = vpop.xlane.xlu1 %1854  ;;  %5238 = vrcp.f32 %v1857_v34 }
 0x532   : > { %5240 = vrcp.f32 %v1855_v14 }
 0x534   : > { %v1859_v38 = vpop.xlane.xlu0 %1858 }
 0x535   : > { %v1861_v44 = vpop.xlane.xlu1 %1860  ;;  %5242 = vrcp.f32 %v1859_v38 }
 0x536   : > { %5244 = vrcp.f32 %v1861_v44 }
 0x538   : > { %v1863_v60 = vpop.xlane.xlu0 %1862 }
 0x539   : > { %v1865_v2 = vpop.xlane.xlu1 %1864  ;;  %5246 = vrcp.f32 %v1863_v60 }
 0x53a   : > { %5248 = vrcp.f32 %v1865_v2 }
 0x53b   : > { %v5239_v36 = vpop.eup %5238 }
 0x53c   : > { %v5241_v39 = vpop.eup %5240  ;;  %v1867_v54 = vpop.xlane.xlu0 %1866  ;;  %v1895_v32 = vmul.f32 %v5239_v36, %v6367_v18 }
 0x53d   : > { %v1869_v10 = vpop.xlane.xlu1 %1868  ;;  %5250 = vrcp.f32 %v1867_v54  ;;  %v1894_v5 = vmul.f32 %v5241_v39, %v6370_v48 }
 0x53e   : > { %5252 = vrcp.f32 %v1869_v10 }
 0x53f   : > { %v5243_v6 = vpop.eup %5242  ;;  %v1906_v53 = vpack.c.bf16 %v1895_v32, %v1894_v5 }
 0x540   : > { %v5245_v28 = vpop.eup %5244  ;;  %v1896_v15 = vmul.f32 %v5243_v6, %v6363_v41 }
 0x541   : > { %4819 = vmatprep.mubr.bf16.mxu1 %v1906_v53  ;;  %v1897_v62 = vmul.f32 %v5245_v28, %v6374_v31 }
 0x543   : > { %v5247_v13 = vpop.eup %5246  ;;  %v1907_v47 = vpack.c.bf16 %v1897_v62, %v1896_v15 }
 0x544   : > { %v5249_v50 = vpop.eup %5248  ;;  %v1898_v23 = vmul.f32 %v5247_v13, %v6385_v8 }
 0x545   : > { %4820 = vmatmul.mubr.bf16.gmra.mrb[56].mxu1 %v1907_v47  ;;  %v1899_v18 = vmul.f32 %v5249_v50, %v6388_v59 }
 0x547   : > { %v5251_v29 = vpop.eup %5250  ;;  %v1908_v49 = vpack.c.bf16 %v1899_v18, %v1898_v23 }
 0x548   : > { %v5253_v48 = vpop.eup %5252  ;;  %v1900_v61 = vmul.f32 %v5251_v29, %v6393_v57 }
 0x549   : > { %4823 = vmatprep.mubr.bf16.mxu1 %v1908_v49  ;;  %v1901_v1 = vmul.f32 %v5253_v48, %v6395_v25 }
 0x54b   : > { %v1909_v41 = vpack.c.bf16 %v1901_v1, %v1900_v61 }
 0x54d   : > { %4824 = vmatmul.mubr.bf16.gmra.mrb[60].mxu1 %v1909_v41 }
 0x569   : > { %v6415_v58 = vpop.f32.mrb[32].mxu1 }
 0x56a   : > { %v6417_v31 = vpop.f32.mrb[33].mxu1 }
 0x56b   : > { %v6419_v12 = vpop.f32.mrb[34].mxu1 }
 0x56c   : > { %v6421_v8 = vpop.f32.mrb[35].mxu1 }
 0x571   : > { %v6423_v24 = vpop.f32.mrb[36].mxu1 }
 0x572   : > { %v6425_v59 = vpop.f32.mrb[37].mxu1 }
 0x573   : > { %v6427_v30 = vpop.f32.mrb[38].mxu1 }
 0x574   : > { %v6429_v57 = vpop.f32.mrb[39].mxu1 }
 0x579   : > { %v6431_v40 = vpop.f32.mrb[40].mxu1 }
 0x57a   : > { %v6433_v25 = vpop.f32.mrb[41].mxu1 }
 0x57b   : > { %v6435_v55 = vpop.f32.mrb[42].mxu1 }
 0x57c   : > { %v6437_v35 = vpop.f32.mrb[43].mxu1 }
 0x581   : > { %v6439_v26 = vpop.f32.mrb[44].mxu1 }
 0x582   : > { %v6441_v33 = vpop.f32.mrb[45].mxu1 }
 0x583   : > { %v6443_v45 = vpop.f32.mrb[46].mxu1 }
 0x584   : > { %v6445_v16 = vpop.f32.mrb[47].mxu1 }
 0x5db   : > { %v4813_v20 = vpop.f32.mrb[48].mxu1 }
 0x5dc   : > { %v1976_v17 = vpop.f32.mrb[49].mxu1 }
 0x5dd   : > { %v4814_v43 = vpop.f32.mrb[50].mxu1 }
 0x5de   : > { %v4939_v51 = vpack.i.bf16 %v4814_v43, %v4813_v20  ;;  %v1979_v9 = vpop.f32.mrb[51].mxu1 }
 0x5df   : > { %v4934_v19 = vpack.i.bf16 %v1979_v9, %v1976_v17 }
 0x5e0   : > { %4940 = vrot.lane.b32.xlu1 %v4939_v51, %s5511_s22 }
 0x5e1   : > { %4935 = vrot.lane.b32.xlu0 %v4934_v19, %s5511_s22 }
 0x5e3   : > { %v4817_v37 = vpop.f32.mrb[52].mxu1 }
 0x5e4   : > { %v1992_v11 = vpop.f32.mrb[53].mxu1 }
 0x5e5   : > { %v4818_v21 = vpop.f32.mrb[54].mxu1 }
 0x5e6   : > { %v4949_v4 = vpack.i.bf16 %v4818_v21, %v4817_v37  ;;  %v1995_v34 = vpop.f32.mrb[55].mxu1 }
 0x5e7   : > { %v4944_v14 = vpack.i.bf16 %v1995_v34, %v1992_v11 }
 0x5e9   : > { %4945 = vrot.lane.b32.xlu1 %v4944_v14, %s5511_s22 }
 0x5ed   : > { %4950 = vrot.lane.b32.xlu1 %v4949_v4, %s5511_s22 }
 0x618   : > { %v4821_v38 = vpop.f32.mrb[56].mxu1 }
 0x619   : > { %v2008_v44 = vpop.f32.mrb[57].mxu1 }
 0x61a   : > { %v4822_v60 = vpop.f32.mrb[58].mxu1 }
 0x61b   : > { %v4959_v2 = vpack.i.bf16 %v4822_v60, %v4821_v38  ;;  %v2011_v36 = vpop.f32.mrb[59].mxu1 }
 0x61c   : > { %v4954_v39 = vpack.i.bf16 %v2011_v36, %v2008_v44 }
 0x61d   : > { %4960 = vrot.lane.b32.xlu1 %v4959_v2, %s5511_s22 }
 0x61e   : > { %4955 = vrot.lane.b32.xlu0 %v4954_v39, %s5511_s22  ;;  %v5414_v39 = vld [vmem:[%s5655_s25] sm:$0xff] }
 0x620   : > { %v4825_v54 = vpop.f32.mrb[60].mxu1 }
 0x621   : > { %v2024_v32 = vpop.f32.mrb[61].mxu1 }
 0x622   : > { %v4826_v10 = vpop.f32.mrb[62].mxu1 }
 0x623   : > { %v4969_v5 = vpack.i.bf16 %v4826_v10, %v4825_v54  ;;  %v2027_v6 = vpop.f32.mrb[63].mxu1  ;;  %v5415_v10 = vld [vmem:[%s5655_s25 + $0x8] sm:$0xff] }
 0x624   : > { %v4964_v53 = vpack.i.bf16 %v2027_v6, %v2024_v32  ;;  %v5416_v6 = vld [vmem:[%s5655_s25 + $0x10] sm:$0xff] }
 0x625   : > { %4970 = vrot.lane.b32.xlu1 %v4969_v5, %s5511_s22 }
 0x626   : > { %4965 = vrot.lane.b32.xlu0 %v4964_v53, %s5511_s22 }
 0x652   : > { %v4941_v28 = vpop.permute.xlu1 %4940 }
 0x653   : > { %v4943_v15 = vunpack.i.h.bf16 %v4941_v28  ;;  %v4942_v62 = vunpack.i.l.bf16 %v4941_v28  ;;  %v4936_v13 = vpop.permute.xlu0 %4935 }
 0x654   : > { %v4938_v47 = vunpack.i.h.bf16 %v4936_v13  ;;  %v4937_v50 = vunpack.i.l.bf16 %v4936_v13 }
 0x655   : > { %v2106_v23 = vsel %vm1170_vm0, %v6419_v12, %v4943_v15  ;;  %v2105_v18 = vsel %vm1170_vm0, %v6415_v58, %v4942_v62  ;;  %v5417_v62 = vld [vmem:[%s5655_s25 + $0x18] sm:$0xff] }
 0x656   : > { %v2120_v29 = vpack.c.bf16 %v2106_v23, %v2105_v18  ;;  %v2103_v49 = vsel %vm1170_vm0, %v6417_v31, %v4937_v50  ;;  %v2104_v48 = vsel %vm1170_vm0, %v6421_v8, %v4938_v47 }
 0x657   : > { %v2119_v61 = vpack.c.bf16 %v2104_v48, %v2103_v49 }
 0x659   : > { %4843 = vmatprep.mubr.bf16.mxu1 %v2119_v61 }
 0x65a   : > { %4844 = vmatmul.mubr.bf16.vlgmr.msra.gmra.mrb[64].mxu1 %v2120_v29  ;;  %v5418_v29 = vld [vmem:[%s5655_s25 + $0x20] sm:$0xff] }
 0x65b   : > { %v4946_v1 = vpop.permute.xlu1 %4945 }
 0x65c   : > { %v4948_v41 = vunpack.i.h.bf16 %v4946_v1  ;;  %v4947_v7 = vunpack.i.l.bf16 %v4946_v1 }
 0x65e   : > { %v2107_v56 = vsel %vm1170_vm0, %v6425_v59, %v4947_v7  ;;  %v2108_v12 = vsel %vm1170_vm0, %v6429_v57, %v4948_v41  ;;  %v5419_v41 = vld [vmem:[%s5655_s25 + $0x28] sm:$0xff] }
 0x65f   : > { %v4951_v58 = vpop.permute.xlu1 %4950  ;;  %v2121_v52 = vpack.c.bf16 %v2108_v12, %v2107_v56  ;;  %v5420_v56 = vld [vmem:[%s5655_s25 + $0x30] sm:$0xff] }
 0x660   : > { %v4953_v63 = vunpack.i.h.bf16 %v4951_v58  ;;  %v4952_v3 = vunpack.i.l.bf16 %v4951_v58  ;;  %v5421_v58 = vld [vmem:[%s5655_s25 + $0x38] sm:$0xff] }
 0x661   : > { %4847 = vmatprep.mubr.bf16.mxu1 %v2121_v52 }
 0x662   : > { %v2109_v31 = vsel %vm1170_vm0, %v6423_v24, %v4952_v3  ;;  %v2110_v8 = vsel %vm1170_vm0, %v6427_v30, %v4953_v63 }
 0x663   : > { %v2122_v0 = vpack.c.bf16 %v2110_v8, %v2109_v31 }
 0x665   : > { %4848 = vmatmul.mubr.bf16.gmra.mrb[68].mxu1 %v2122_v0 }
 0x68f   : > { %v4961_v42 = vpop.permute.xlu1 %4960 }
 0x690   : > { %v4963_v27 = vunpack.i.h.bf16 %v4961_v42  ;;  %v4962_v20 = vunpack.i.l.bf16 %v4961_v42  ;;  %v4956_v59 = vpop.permute.xlu0 %4955 }
 0x691   : > { %v4958_v17 = vunpack.i.h.bf16 %v4956_v59  ;;  %v4957_v43 = vunpack.i.l.bf16 %v4956_v59 }
 0x692   : > { %v2113_v57 = vsel %vm1170_vm0, %v6431_v40, %v4962_v20  ;;  %v2114_v51 = vsel %vm1170_vm0, %v6435_v55, %v4963_v27  ;;  %v5422_v27 = vld [vmem:[%s5655_s25 + $0x40] sm:$0xff] }
 0x693   : > { %v2111_v24 = vsel %vm1170_vm0, %v6433_v25, %v4957_v43  ;;  %v2112_v30 = vsel %vm1170_vm0, %v6437_v35, %v4958_v17  ;;  %v2124_v9 = vpack.c.bf16 %v2114_v51, %v2113_v57  ;;  %v5423_v43 = vld [vmem:[%s5655_s25 + $0x48] sm:$0xff]  ;;  %v5424_v51 = vld [vmem:[%s5655_s25 + $0x50] sm:$0xff] }
 0x694   : > { %v2123_v19 = vpack.c.bf16 %v2112_v30, %v2111_v24 }
 0x696   : > { %4851 = vmatprep.mubr.bf16.mxu1 %v2123_v19  ;;  %v5425_v19 = vld [vmem:[%s5655_s25 + $0x58] sm:$0xff] }
 0x697   : > { %v4971_v37 = vpop.permute.xlu1 %4970  ;;  %4852 = vmatmul.mubr.bf16.gmra.mrb[72].mxu1 %v2124_v9 }
 0x698   : > { %v4973_v11 = vunpack.i.h.bf16 %v4971_v37  ;;  %v4972_v21 = vunpack.i.l.bf16 %v4971_v37  ;;  %v4966_v4 = vpop.permute.xlu0 %4965 }
 0x699   : > { %v4968_v34 = vunpack.i.h.bf16 %v4966_v4  ;;  %v4967_v14 = vunpack.i.l.bf16 %v4966_v4 }
 0x69a   : > { %v2117_v40 = vsel %vm1170_vm0, %v6439_v26, %v4972_v21  ;;  %v2118_v25 = vsel %vm1170_vm0, %v6443_v45, %v4973_v11  ;;  %v6515_v26 = vld [vmem:[%s7910_s8] ss:$0 sm:$0xff] }
 0x69b   : > { %v2115_v55 = vsel %vm1170_vm0, %v6441_v33, %v4967_v14  ;;  %v2116_v35 = vsel %vm1170_vm0, %v6445_v16, %v4968_v34  ;;  %v2126_v38 = vpack.c.bf16 %v2118_v25, %v2117_v40  ;;  %v5426_v14 = vld [vmem:[%s5655_s25 + $0x60] sm:$0xff] }
 0x69c   : > { %v2125_v44 = vpack.c.bf16 %v2116_v35, %v2115_v55  ;;  %v5427_v35 = vld [vmem:[%s5655_s25 + $0x68] sm:$0xff] }
 0x69e   : > { %4855 = vmatprep.mubr.bf16.mxu1 %v2125_v44  ;;  %v5428_v44 = vld [vmem:[%s5655_s25 + $0x70] sm:$0xff] }
 0x69f   : > { %4856 = vmatmul.mubr.bf16.gmra.mrb[76].mxu1 %v2126_v38 }
 0x6a0   : > { %2948 = vmatprep.mubr.bf16.mxu1 %v5510_v46 }
 0x72d   : > { %v4845_v45 = vpop.f32.mrb[64].mxu1 }
 0x72e   : > { %v2232_v60 = vpop.f32.mrb[65].mxu1  ;;  %v2241_v36 = vadd.f32 %v4845_v45, %v6515_v26 }
 0x72f   : > { %v2233_v33 = vadd.f32 %v6515_v26, %v2232_v60  ;;  %v4846_v2 = vpop.f32.mrb[66].mxu1  ;;  %v5429_v60 = vld [vmem:[%s5655_s25 + $0x78] sm:$0xff]  ;;  %s4442_s25 = sshll.u32 %s5500_s21, 11  ;;  %s7856_s21 = scalar_lea.sflag [#allocation6], %s497_s16 }
 0x730   : > { %v2235_v16 = vpop.f32.mrb[67].mxu1  ;;  %v6528_v53 = vadd.f32 %v5416_v6, %v2241_v36  ;;  %v2244_v28 = vadd.f32 %v4846_v2, %v6515_v26  ;;  %v5016_v2 = vld [vmem:[%s7913_s11 + $0x4] ss:$16 sps:$4 sm:$0xff]   ;;  %v5019_v36 = vld [vmem:[%s7913_s11 + $0xc] ss:$16 sps:$4 sm:$0xff]   ;;  %s7847_s29 = scalar_lea.hbm %s8051_s18, %s4442_s25  ;;  %s5434_s25 = sshll.u32 %s5512_s24, 4  ;;  %s5435_s25 = int_to_ptr.vmem [resolvable:$false] %s5434_s25 }
 0x731   : > { %v6520_v54 = vadd.f32 %v5414_v39, %v2233_v33  ;;  %v2236_v32 = vadd.f32 %v6515_v26, %v2235_v16  ;;  %v5017_v16 = vld [vmem:[%s7913_s11 + $0x8] ss:$16 sps:$4 sm:$0xff]   ;;  %v5022_v39 = vld [vmem:[%s7913_s11 + $0x24] ss:$16 sps:$4 sm:$0xff]   ;;  %2803 = vmatprep.subr.bf16.mxu0 %v5016_v2  ;;  %2916 = vmatprep.subr.bf16.mxu1 %v5019_v36  ;;  %v5043_v36 = vld [vmem:[%s7913_s11 + $0x8c] ss:$16 sps:$4 sm:$0xff]   ;;  %p5437_p1 = scmp.lt.s32.totalorder %s7849_s26, %s5435_s25 }
 0x732   : > { %7975 = vst [vmem:[#allocation14_spill] sm:$0xff] %v6528_v53  ;;  %v6534_v13 = vadd.f32 %v5417_v62, %v2244_v28  ;;  %2917 = vmatpush1.bf16.msra.mxu1 %v5017_v16  ;;  %v5023_v6 = vld [vmem:[%s7913_s11 + $0x28] ss:$16 sps:$4 sm:$0xff]   ;;  %v5040_v16 = vld [vmem:[%s7913_s11 + $0x84] ss:$16 sps:$4 sm:$0xff]   ;;  %s5436_s22 = scalar_lea.vmem %s5435_s25, 4096 }
 0x733   : > { %7973 = vst [vmem:[#allocation12_spill] sm:$0xff] %v6520_v54  ;;  %v6524_v5 = vadd.f32 %v5415_v10, %v2236_v32  ;;  %2329 = vadd.xlane.f32.xlu0 %v6520_v54  ;;  %v5025_v32 = vld [vmem:[%s7913_s11 + $0x2c] ss:$16 sps:$4 sm:$0xff]   ;;  %v5020_v10 = vld [vmem:[%s7913_s11 + $0x20] ss:$16 sps:$4 sm:$0xff]   ;;  %p5438_p2 = scmp.lt.s32.totalorder %s5436_s22, %s5430_s17 }
 0x734   : > { %7976 = vst [vmem:[#allocation15_spill] sm:$0xff] %v6534_v13  ;;  %2918 = vmatprep.subr.bf16.mxu1 %v5025_v32  ;;  %v5035_v2 = vld [vmem:[%s7913_s11 + $0x68] ss:$16 sps:$4 sm:$0xff]  }
 0x735   : > { %7974 = vst [vmem:[#allocation13_spill] sm:$0xff] %v6524_v5  ;;  %2331 = vadd.xlane.f32.xlu1 %v6524_v5  ;;  %v5041_v32 = vld [vmem:[%s7913_s11 + $0x88] ss:$16 sps:$4 sm:$0xff]   ;;  %p5439_p3 = por %p5438_p2, %p5437_p1 }
 0x736   : > { %2919 = vmatpush1.bf16.msra.mxu1 %v5023_v6  ;;  %v5049_v6 = vld [vmem:[%s7913_s11 + $0xac] ss:$16 sps:$4 sm:$0xff]  }
 0x737   : > { %2333 = vadd.xlane.f32.xlu0 %v6528_v53  ;;  %p5440_p5 = pnand %p5439_p3, %p5433_p0 }
 0x738   : > { %v4849_v15 = vpop.f32.mrb[68].mxu1 }
 0x739   : > { %v2248_v47 = vpop.f32.mrb[69].mxu1  ;;  %v2257_v61 = vadd.f32 %v4849_v15, %v6515_v26 }
 0x73a   : > { %v2249_v50 = vadd.f32 %v6515_v26, %v2248_v47  ;;  %v4850_v23 = vpop.f32.mrb[70].mxu1 }
 0x73b   : > { %v2251_v18 = vpop.f32.mrb[71].mxu1  ;;  %2335 = vadd.xlane.f32.xlu0 %v6534_v13  ;;  %v2260_v1 = vadd.f32 %v4850_v23, %v6515_v26  ;;  %v6550_v12 = vadd.f32 %v5420_v56, %v2257_v61 }
 0x73c   : > { %v6539_v49 = vadd.f32 %v5418_v29, %v2249_v50  ;;  %v2252_v48 = vadd.f32 %v6515_v26, %v2251_v18 }
 0x73d   : > { %7979 = vst [vmem:[#allocation18_spill] sm:$0xff] %v6550_v12  ;;  %v6553_v52 = vadd.f32 %v5421_v58, %v2260_v1 }
 0x73e   : > { %7977 = vst [vmem:[#allocation16_spill] sm:$0xff] %v6539_v49  ;;  %v6545_v7 = vadd.f32 %v5419_v41, %v2252_v48 }
 0x73f   : > { %2337 = vadd.xlane.f32.xlu0 %v6539_v49  ;;  %7980 = vst [vmem:[#allocation19_spill] sm:$0xff] %v6553_v52 }
 0x740   : > { %7978 = vst [vmem:[#allocation17_spill] sm:$0xff] %v6545_v7  ;;  %2339 = vadd.xlane.f32.xlu1 %v6545_v7 }
 0x743   : > { %2341 = vadd.xlane.f32.xlu0 %v6550_v12 }
 0x744   : > { %2343 = vadd.xlane.f32.xlu1 %v6553_v52 }
 0x76a   : > { %v4853_v63 = vpop.f32.mrb[72].mxu1 }
 0x76b   : > { %v2264_v3 = vpop.f32.mrb[73].mxu1  ;;  %v2273_v42 = vadd.f32 %v4853_v63, %v6515_v26 }
 0x76c   : > { %v2265_v31 = vadd.f32 %v6515_v26, %v2264_v3  ;;  %v4854_v8 = vpop.f32.mrb[74].mxu1 }
 0x76d   : > { %v2267_v0 = vpop.f32.mrb[75].mxu1  ;;  %v2276_v17 = vadd.f32 %v4854_v8, %v6515_v26  ;;  %v6569_v24 = vadd.f32 %v5424_v51, %v2273_v42 }
 0x76e   : > { %v6560_v20 = vadd.f32 %v5422_v27, %v2265_v31  ;;  %v2268_v59 = vadd.f32 %v6515_v26, %v2267_v0 }
 0x76f   : > { %7983 = vst [vmem:[#allocation22_spill] sm:$0xff] %v6569_v24  ;;  %v6573_v37 = vadd.f32 %v5425_v19, %v2276_v17 }
 0x770   : > { %7981 = vst [vmem:[#allocation20_spill] sm:$0xff] %v6560_v20  ;;  %v6565_v57 = vadd.f32 %v5423_v43, %v2268_v59  ;;  %2345 = vadd.xlane.f32.xlu0 %v6560_v20 }
 0x771   : > { %7984 = vst [vmem:[#allocation23_spill] sm:$0xff] %v6573_v37 }
 0x772   : > { %7982 = vst [vmem:[#allocation21_spill] sm:$0xff] %v6565_v57  ;;  %v4857_v30 = vpop.f32.mrb[76].mxu1  ;;  %2347 = vadd.xlane.f32.xlu1 %v6565_v57 }
 0x773   : > { %v2280_v9 = vpop.f32.mrb[77].mxu1  ;;  %v2289_v34 = vadd.f32 %v4857_v30, %v6515_v26 }
 0x774   : > { %v2281_v11 = vadd.f32 %v6515_v26, %v2280_v9  ;;  %v4858_v21 = vpop.f32.mrb[78].mxu1  ;;  %2349 = vadd.xlane.f32.xlu0 %v6569_v24 }
 0x775   : > { %v2283_v4 = vpop.f32.mrb[79].mxu1  ;;  %v2292_v55 = vadd.f32 %v4858_v21, %v6515_v26  ;;  %v6589_v45 = vadd.f32 %v5428_v44, %v2289_v34  ;;  %v5034_v44 = vld [vmem:[%s7913_s11 + $0x64] ss:$16 sps:$4 sm:$0xff]  }
 0x776   : > { %v6579_v40 = vadd.f32 %v5426_v14, %v2281_v11  ;;  %v2284_v25 = vadd.f32 %v6515_v26, %v2283_v4  ;;  %2351 = vadd.xlane.f32.xlu1 %v6573_v37  ;;  %v5014_v26 = vld [vmem:[%s7913_s11] ss:$16 sps:$4 sm:$0xff]   ;;  %v5028_v14 = vld [vmem:[%s7913_s11 + $0x44] ss:$16 sps:$4 sm:$0xff]  }
 0x777   : > { %7987 = vst [vmem:[#allocation26_spill] sm:$0xff] %v6589_v45  ;;  %v6593_v33 = vadd.f32 %v5429_v60, %v2292_v55  ;;  %2804 = vmatpush1.bf16.msra.mxu0 %v5014_v26  ;;  %v5026_v55 = vld [vmem:[%s7913_s11 + $0x40] ss:$16 sps:$4 sm:$0xff]   ;;  %v5037_v60 = vld [vmem:[%s7913_s11 + $0x6c] ss:$16 sps:$4 sm:$0xff]  }
 0x778   : > { %7985 = vst [vmem:[#allocation24_spill] sm:$0xff] %v6579_v40  ;;  %v6585_v38 = vadd.f32 %v5427_v35, %v2284_v25  ;;  %2353 = vadd.xlane.f32.xlu0 %v6579_v40  ;;  %2805 = vmatprep.subr.bf16.mxu0 %v5022_v39  ;;  %v5031_v25 = vld [vmem:[%s7913_s11 + $0x4c] ss:$16 sps:$4 sm:$0xff]   ;;  %v5029_v35 = vld [vmem:[%s7913_s11 + $0x48] ss:$16 sps:$4 sm:$0xff]  }
 0x779   : > { %7988 = vst [vmem:[#allocation27_spill] sm:$0xff] %v6593_v33  ;;  %2920 = vmatprep.subr.bf16.mxu1 %v5031_v25  ;;  %v5032_v26 = vld [vmem:[%s7913_s11 + $0x60] ss:$16 sps:$4 sm:$0xff]  }
 0x77a   : > { %7986 = vst [vmem:[#allocation25_spill] sm:$0xff] %v6585_v38  ;;  %2355 = vadd.xlane.f32.xlu1 %v6585_v38  ;;  %2921 = vmatpush1.bf16.msra.mxu1 %v5029_v35  ;;  %v5038_v39 = vld [vmem:[%s7913_s11 + $0x80] ss:$16 sps:$4 sm:$0xff]  }
 0x77b   : > { %2806 = vmatpush1.bf16.msra.mxu0 %v5020_v10  ;;  %2922 = vmatprep.subr.bf16.mxu1 %v5037_v60  ;;  %v5046_v10 = vld [vmem:[%s7913_s11 + $0xa4] ss:$16 sps:$4 sm:$0xff]  }
 0x77c   : > { %2357 = vadd.xlane.f32.xlu0 %v6589_v45  ;;  %2807 = vmatprep.subr.bf16.mxu0 %v5028_v14 }
 0x77e   : > { %2359 = vadd.xlane.f32.xlu1 %v6593_v33  ;;  %2923 = vmatpush1.bf16.msra.mxu1 %v5035_v2 }
 0x77f   : > { %2808 = vmatpush1.bf16.msra.mxu0 %v5026_v55  ;;  %2924 = vmatprep.subr.bf16.mxu1 %v5043_v36 }
 0x780   : > { %2809 = vmatprep.subr.bf16.mxu0 %v5034_v44 }
 0x782   : > { %2925 = vmatpush1.bf16.msra.mxu1 %v5041_v32 }
 0x783   : > { %2810 = vmatpush1.bf16.msra.mxu0 %v5032_v26  ;;  %2926 = vmatprep.subr.bf16.mxu1 %v5049_v6 }
 0x784   : > { %2811 = vmatprep.subr.bf16.mxu0 %v5040_v16 }
 0x787   : > { %2812 = vmatpush1.bf16.msra.mxu0 %v5038_v39 }
 0x788   : > { %2813 = vmatprep.subr.bf16.mxu0 %v5046_v10 }
 0x7c0   : > { %v2330_v28 = vpop.xlane.xlu0 %2329 }
 0x7c1   : > { %v2361_v15 = vmul.f32 0.0078125, %v2330_v28  ;;  %v5044_v28 = vld [vmem:[%s7913_s11 + $0xa0] ss:$16 sps:$4 sm:$0xff]  }
 0x7c2   : > { %v2332_v62 = vpop.xlane.xlu1 %2331  ;;  %2814 = vmatpush1.bf16.msra.mxu0 %v5044_v28 }
 0x7c3   : > { %v6622_v47 = vsub.f32 %v6520_v54, %v2361_v15  ;;  %v2362_v50 = vmul.f32 0.0078125, %v2332_v62  ;;  %v5047_v15 = vld [vmem:[%s7913_s11 + $0xa8] ss:$16 sps:$4 sm:$0xff]   ;;  %v5052_v62 = vld [vmem:[%s7913_s11 + $0xc4] ss:$16 sps:$4 sm:$0xff]  }
 0x7c4   : > { %v2334_v23 = vpop.xlane.xlu0 %2333  ;;  %2927 = vmatpush1.bf16.msra.mxu1 %v5047_v15  ;;  %2815 = vmatprep.subr.bf16.mxu0 %v5052_v62 }
 0x7c5   : > { %v6625_v18 = vsub.f32 %v6524_v5, %v2362_v50  ;;  %v2363_v29 = vmul.f32 0.0078125, %v2334_v23  ;;  %v2393_v48 = vmul.f32 %v6622_v47, %v6622_v47  ;;  %v5055_v50 = vld [vmem:[%s7913_s11 + $0xcc] ss:$16 sps:$4 sm:$0xff]   ;;  %v5050_v23 = vld [vmem:[%s7913_s11 + $0xc0] ss:$16 sps:$4 sm:$0xff]  }
 0x7c6   : > { %2928 = vmatprep.subr.bf16.mxu1 %v5055_v50  ;;  %2816 = vmatpush1.bf16.msra.mxu0 %v5050_v23  ;;  %v5062_v23 = vld [vmem:[%s7915_s13 + $0x40] sm:$0xff]  }
 0x7c7   : > { %v6630_v61 = vsub.f32 %v6528_v53, %v2363_v29  ;;  %2409 = vadd.xlane.f32.xlu0 %v2393_v48  ;;  %v2394_v1 = vmul.f32 %v6625_v18, %v6625_v18  ;;  %v5053_v29 = vld [vmem:[%s7913_s11 + $0xc8] ss:$16 sps:$4 sm:$0xff]   ;;  %v5056_v48 = vld [vmem:[%s7913_s11 + $0xe0] ss:$16 sps:$4 sm:$0xff]  }
 0x7c8   : > { %v2336_v41 = vpop.xlane.xlu0 %2335  ;;  %2929 = vmatpush1.bf16.msra.mxu1 %v5053_v29  ;;  %v5063_v29 = vld [vmem:[%s7915_s13 + $0xc0] sm:$0xff]  }
 0x7c9   : > { %v2364_v56 = vmul.f32 0.0078125, %v2336_v41  ;;  %2411 = vadd.xlane.f32.xlu1 %v2394_v1  ;;  %v2395_v58 = vmul.f32 %v6630_v61, %v6630_v61  ;;  %v5058_v1 = vld [vmem:[%s7913_s11 + $0xe4] ss:$16 sps:$4 sm:$0xff]   ;;  %v5059_v41 = vld [vmem:[%s7913_s11 + $0xe8] ss:$16 sps:$4 sm:$0xff]  }
 0x7ca   : > { %2817 = vmatprep.subr.bf16.mxu0 %v5058_v1 }
 0x7cb   : > { %v6637_v63 = vsub.f32 %v6534_v13, %v2364_v56  ;;  %2413 = vadd.xlane.f32.xlu0 %v2395_v58  ;;  %v5061_v56 = vld [vmem:[%s7913_s11 + $0xec] ss:$16 sps:$4 sm:$0xff]   ;;  %2818 = vmatpush1.bf16.msra.mxu0 %v5056_v48 }
 0x7cc   : > { %v2338_v3 = vpop.xlane.xlu0 %2337  ;;  %2930 = vmatprep.subr.bf16.mxu1 %v5061_v56  ;;  %4539 = vmatprep.subr.bf16.mxu0 %v5062_v23 }
 0x7cd   : > { %v2365_v31 = vmul.f32 0.0078125, %v2338_v3  ;;  %v2340_v8 = vpop.xlane.xlu1 %2339  ;;  %v2396_v0 = vmul.f32 %v6637_v63, %v6637_v63  ;;  %2931 = vmatpush1.bf16.msra.mxu1 %v5059_v41 }
 0x7ce   : > { %v2366_v42 = vmul.f32 0.0078125, %v2340_v8  ;;  %4603 = vmatprep.subr.bf16.mxu1 %v5063_v29 }
 0x7cf   : > { %v6642_v27 = vsub.f32 %v6539_v49, %v2365_v31  ;;  %2415 = vadd.xlane.f32.xlu1 %v2396_v0 }
 0x7d0   : > { %v6645_v59 = vsub.f32 %v6545_v7, %v2366_v42  ;;  %v2342_v17 = vpop.xlane.xlu0 %2341 }
 0x7d1   : > { %v2367_v43 = vmul.f32 0.0078125, %v2342_v17  ;;  %v2344_v51 = vpop.xlane.xlu1 %2343  ;;  %v2397_v30 = vmul.f32 %v6642_v27, %v6642_v27 }
 0x7d2   : > { %v2368_v9 = vmul.f32 0.0078125, %v2344_v51  ;;  %v2398_v19 = vmul.f32 %v6645_v59, %v6645_v59 }
 0x7d3   : > { %v6652_v11 = vsub.f32 %v6550_v12, %v2367_v43  ;;  %2417 = vadd.xlane.f32.xlu0 %v2397_v30 }
 0x7d4   : > { %v6655_v21 = vsub.f32 %v6553_v52, %v2368_v9  ;;  %2419 = vadd.xlane.f32.xlu1 %v2398_v19 }
 0x7d5   : > { %v2399_v4 = vmul.f32 %v6652_v11, %v6652_v11 }
 0x7d6   : > { %v2400_v34 = vmul.f32 %v6655_v21, %v6655_v21 }
 0x7d7   : > { %2421 = vadd.xlane.f32.xlu0 %v2399_v4 }
 0x7d8   : > { %2423 = vadd.xlane.f32.xlu1 %v2400_v34 }
 0x7fd   : > { %v2346_v58 = vpop.xlane.xlu0 %2345 }
 0x7fe   : > { %v2369_v3 = vmul.f32 0.0078125, %v2346_v58 }
 0x7ff   : > { %v2348_v31 = vpop.xlane.xlu1 %2347 }
 0x800   : > { %v6734_v8 = vsub.f32 %v6560_v20, %v2369_v3  ;;  %v2370_v0 = vmul.f32 0.0078125, %v2348_v31 }
 0x801   : > { %v2350_v42 = vpop.xlane.xlu0 %2349 }
 0x802   : > { %v6737_v17 = vsub.f32 %v6565_v57, %v2370_v0  ;;  %v2371_v43 = vmul.f32 0.0078125, %v2350_v42  ;;  %v2401_v51 = vmul.f32 %v6734_v8, %v6734_v8 }
 0x803   : > { %v2352_v30 = vpop.xlane.xlu1 %2351 }
 0x804   : > { %v6742_v9 = vsub.f32 %v6569_v24, %v2371_v43  ;;  %v2372_v19 = vmul.f32 0.0078125, %v2352_v30  ;;  %2425 = vadd.xlane.f32.xlu0 %v2401_v51  ;;  %v2402_v4 = vmul.f32 %v6737_v17, %v6737_v17 }
 0x805   : > { %v2354_v34 = vpop.xlane.xlu0 %2353 }
 0x806   : > { %v6747_v14 = vsub.f32 %v6573_v37, %v2372_v19  ;;  %v2373_v25 = vmul.f32 0.0078125, %v2354_v34  ;;  %2427 = vadd.xlane.f32.xlu1 %v2402_v4  ;;  %v2403_v55 = vmul.f32 %v6742_v9, %v6742_v9 }
 0x807   : > { %v2356_v35 = vpop.xlane.xlu1 %2355 }
 0x808   : > { %v6752_v44 = vsub.f32 %v6579_v40, %v2373_v25  ;;  %v2374_v60 = vmul.f32 0.0078125, %v2356_v35  ;;  %2429 = vadd.xlane.f32.xlu0 %v2403_v55  ;;  %v2404_v26 = vmul.f32 %v6747_v14, %v6747_v14  ;;  %v6782_v35 = vld [vmem:[%s7911_s9] ss:$0 sm:$0xff] }
 0x809   : > { %v2358_v2 = vpop.xlane.xlu0 %2357 }
 0x80a   : > { %v6757_v16 = vsub.f32 %v6585_v38, %v2374_v60  ;;  %v2375_v36 = vmul.f32 0.0078125, %v2358_v2  ;;  %2431 = vadd.xlane.f32.xlu1 %v2404_v26  ;;  %v2405_v39 = vmul.f32 %v6752_v44, %v6752_v44 }
 0x80b   : > { %v2360_v32 = vpop.xlane.xlu1 %2359 }
 0x80c   : > { %v6762_v10 = vsub.f32 %v6589_v45, %v2375_v36  ;;  %v2376_v6 = vmul.f32 0.0078125, %v2360_v32  ;;  %2433 = vadd.xlane.f32.xlu0 %v2405_v39  ;;  %v2406_v28 = vmul.f32 %v6757_v16, %v6757_v16 }
 0x80e   : > { %v6767_v15 = vsub.f32 %v6593_v33, %v2376_v6  ;;  %2435 = vadd.xlane.f32.xlu1 %v2406_v28  ;;  %v2407_v62 = vmul.f32 %v6762_v10, %v6762_v10 }
 0x810   : > { %2437 = vadd.xlane.f32.xlu0 %v2407_v62  ;;  %v2408_v50 = vmul.f32 %v6767_v15, %v6767_v15 }
 0x812   : > { %2439 = vadd.xlane.f32.xlu1 %v2408_v50 }
 0x854   : > { %v2410_v48 = vpop.xlane.xlu0 %2409 }
 0x855   : > { %v2441_v1 = vmul.f32 0.0078125, %v2410_v48  ;;  %v6790_v48 = vld [vmem:[%s7912_s10] ss:$0 sm:$0xff] }
 0x856   : > { %v2412_v41 = vpop.xlane.xlu1 %2411 }
 0x857   : > { %v2457_v56 = vadd.f32 1e-05, %v2441_v1  ;;  %v2442_v58 = vmul.f32 0.0078125, %v2412_v41 }
 0x858   : > { %v2414_v3 = vpop.xlane.xlu0 %2413 }
 0x859   : > { %5254 = vrsqrt.f32 %v2457_v56  ;;  %v2458_v31 = vadd.f32 1e-05, %v2442_v58  ;;  %v2443_v0 = vmul.f32 0.0078125, %v2414_v3 }
 0x85b   : > { %5256 = vrsqrt.f32 %v2458_v31  ;;  %v2459_v42 = vadd.f32 1e-05, %v2443_v0  ;;  %v5064_v0 = vld [vmem:[%s7915_s13] sm:$0xff]  }
 0x85c   : > { %v2416_v43 = vpop.xlane.xlu1 %2415 }
 0x85d   : > { %5258 = vrsqrt.f32 %v2459_v42  ;;  %v2444_v51 = vmul.f32 0.0078125, %v2416_v43  ;;  %v5065_v42 = vld [vmem:[%s7915_s13 + $0x80] sm:$0xff]  }
 0x85f   : > { %v2460_v30 = vadd.f32 1e-05, %v2444_v51 }
 0x860   : > { %v2418_v19 = vpop.xlane.xlu0 %2417 }
 0x861   : > { %5260 = vrsqrt.f32 %v2460_v30  ;;  %v2445_v4 = vmul.f32 0.0078125, %v2418_v19  ;;  %v2420_v34 = vpop.xlane.xlu1 %2419 }
 0x862   : > { %v2446_v25 = vmul.f32 0.0078125, %v2420_v34 }
 0x863   : > { %v5255_v55 = vpop.eup %5254  ;;  %v2461_v60 = vadd.f32 1e-05, %v2445_v4 }
 0x864   : > { %v2489_v26 = vmul.f32 %v5255_v55, %v6622_v47  ;;  %v2462_v2 = vadd.f32 1e-05, %v2446_v25  ;;  %v2422_v36 = vpop.xlane.xlu0 %2421 }
 0x865   : > { %v5257_v39 = vpop.eup %5256  ;;  %5262 = vrsqrt.f32 %v2461_v60  ;;  %v2447_v32 = vmul.f32 0.0078125, %v2422_v36  ;;  %v2424_v6 = vpop.xlane.xlu1 %2423 }
 0x866   : > { %v2511_v28 = vmul.f32 %v6782_v35, %v2489_v26  ;;  %v2490_v62 = vmul.f32 %v5257_v39, %v6625_v18  ;;  %5264 = vrsqrt.f32 %v2462_v2  ;;  %v2448_v50 = vmul.f32 0.0078125, %v2424_v6 }
 0x867   : > { %v5259_v23 = vpop.eup %5258  ;;  %v2463_v29 = vadd.f32 1e-05, %v2447_v32 }
 0x868   : > { %v2512_v47 = vmul.f32 %v6782_v35, %v2490_v62  ;;  %v2464_v1 = vadd.f32 1e-05, %v2448_v50  ;;  %v2533_v41 = vadd.f32 %v6790_v48, %v2511_v28  ;;  %v2491_v58 = vmul.f32 %v5259_v23, %v6630_v61 }
 0x869   : > { %5266 = vrsqrt.f32 %v2463_v29 }
 0x86a   : > { %v2534_v56 = vadd.f32 %v6790_v48, %v2512_v47  ;;  %5268 = vrsqrt.f32 %v2464_v1  ;;  %v2513_v43 = vmul.f32 %v6782_v35, %v2491_v58 }
 0x86b   : > { %v5261_v18 = vpop.eup %5260 }
 0x86c   : > { %v2549_v3 = vpack.c.bf16 %v2534_v56, %v2533_v41  ;;  %v2492_v31 = vmul.f32 %v5261_v18, %v6637_v63  ;;  %v2535_v34 = vadd.f32 %v6790_v48, %v2513_v43 }
 0x86e   : > { %2836 = vmatmul.mubr.bf16.vlgmr.msra.gmra.mrb[48].mxu0 %v2549_v3  ;;  %2949 = vmatmul.mubr.bf16.vlgmr.msra.gmra.mrb[80].mxu1 %v2549_v3  ;;  %v2514_v51 = vmul.f32 %v6782_v35, %v2492_v31 }
 0x86f   : > { %v5263_v61 = vpop.eup %5262  ;;  %2845 = vmatprep.mubr.bf16.mxu0 %v5510_v46  ;;  %2958 = vmatprep.mubr.bf16.mxu1 %v5510_v46 }
 0x870   : > { %v5265_v63 = vpop.eup %5264  ;;  %v2536_v30 = vadd.f32 %v6790_v48, %v2514_v51  ;;  %v2493_v19 = vmul.f32 %v5263_v61, %v6642_v27  ;;  %4540 = vmatpush3.bf16.msra.mxu0 %v5064_v0  ;;  %4604 = vmatpush3.bf16.msra.mxu1 %v5065_v42 }
 0x871   : > { %v2494_v4 = vmul.f32 %v5265_v63, %v6645_v59 }
 0x872   : > { %v2550_v55 = vpack.c.bf16 %v2536_v30, %v2535_v34  ;;  %v2515_v60 = vmul.f32 %v6782_v35, %v2493_v19 }
 0x873   : > { %v5267_v25 = vpop.eup %5266  ;;  %v2516_v26 = vmul.f32 %v6782_v35, %v2494_v4 }
 0x874   : > { %v5269_v2 = vpop.eup %5268  ;;  %v2537_v27 = vadd.f32 %v6790_v48, %v2515_v60  ;;  %v2495_v59 = vmul.f32 %v5267_v25, %v6652_v11 }
 0x875   : > { %v2538_v36 = vadd.f32 %v6790_v48, %v2516_v26  ;;  %v2496_v39 = vmul.f32 %v5269_v2, %v6655_v21 }
 0x876   : > { %2846 = vmatmul.mubr.bf16.gmra.mrb[52].mxu0 %v2550_v55  ;;  %2959 = vmatmul.mubr.bf16.gmra.mrb[84].mxu1 %v2550_v55  ;;  %v2517_v6 = vmul.f32 %v6782_v35, %v2495_v59 }
 0x877   : > { %2855 = vmatprep.mubr.bf16.mxu0 %v5510_v46  ;;  %2968 = vmatprep.mubr.bf16.mxu1 %v5510_v46  ;;  %v2551_v32 = vpack.c.bf16 %v2538_v36, %v2537_v27  ;;  %v2518_v28 = vmul.f32 %v6782_v35, %v2496_v39 }
 0x878   : > { %v2539_v62 = vadd.f32 %v6790_v48, %v2517_v6 }
 0x879   : > { %v2540_v50 = vadd.f32 %v6790_v48, %v2518_v28 }
 0x87b   : > { %v2552_v23 = vpack.c.bf16 %v2540_v50, %v2539_v62 }
 0x87e   : > { %2856 = vmatmul.mubr.bf16.gmra.mrb[56].mxu0 %v2551_v32  ;;  %2969 = vmatmul.mubr.bf16.gmra.mrb[88].mxu1 %v2551_v32 }
 0x87f   : > { %2865 = vmatprep.mubr.bf16.mxu0 %v5510_v46  ;;  %2978 = vmatprep.mubr.bf16.mxu1 %v5510_v46 }
 0x886   : > { %2866 = vmatmul.mubr.bf16.gmra.mrb[60].mxu0 %v2552_v23  ;;  %2979 = vmatmul.mubr.bf16.gmra.mrb[92].mxu1 %v2552_v23 }
 0x887   : > { %2875 = vmatprep.mubr.bf16.mxu0 %v5510_v46  ;;  %2988 = vmatprep.mubr.bf16.mxu1 %v5510_v46 }
 0x891   : > { %v2426_v11 = vpop.xlane.xlu0 %2425 }
 0x892   : > { %v2449_v21 = vmul.f32 0.0078125, %v2426_v11 }
 0x893   : > { %v2428_v29 = vpop.xlane.xlu1 %2427 }
 0x894   : > { %v2465_v47 = vadd.f32 1e-05, %v2449_v21  ;;  %v2450_v1 = vmul.f32 0.0078125, %v2428_v29 }
 0x895   : > { %v2430_v41 = vpop.xlane.xlu0 %2429 }
 0x896   : > { %5270 = vrsqrt.f32 %v2465_v47  ;;  %v2466_v56 = vadd.f32 1e-05, %v2450_v1  ;;  %v2451_v58 = vmul.f32 0.0078125, %v2430_v41 }
 0x897   : > { %v2432_v18 = vpop.xlane.xlu1 %2431 }
 0x898   : > { %5272 = vrsqrt.f32 %v2466_v56  ;;  %v2467_v3 = vadd.f32 1e-05, %v2451_v58  ;;  %v2452_v31 = vmul.f32 0.0078125, %v2432_v18 }
 0x899   : > { %v2434_v0 = vpop.xlane.xlu0 %2433 }
 0x89a   : > { %5274 = vrsqrt.f32 %v2467_v3  ;;  %v2468_v42 = vadd.f32 1e-05, %v2452_v31  ;;  %v2453_v43 = vmul.f32 0.0078125, %v2434_v0 }
 0x89b   : > { %v2436_v51 = vpop.xlane.xlu1 %2435 }
 0x89c   : > { %5276 = vrsqrt.f32 %v2468_v42  ;;  %v2454_v61 = vmul.f32 0.0078125, %v2436_v51  ;;  %v2469_v63 = vadd.f32 1e-05, %v2453_v43 }
 0x89d   : > { %v2438_v19 = vpop.xlane.xlu0 %2437 }
 0x89e   : > { %v2470_v30 = vadd.f32 1e-05, %v2454_v61  ;;  %v2455_v26 = vmul.f32 0.0078125, %v2438_v19  ;;  %v5071_v19 = vld [vmem:[%s7915_s13 + $0xd0] sm:$0xff]  }
 0x89f   : > { %v2440_v4 = vpop.xlane.xlu1 %2439 }
 0x8a0   : > { %v5271_v34 = vpop.eup %5270  ;;  %5278 = vrsqrt.f32 %v2470_v30  ;;  %v2456_v25 = vmul.f32 0.0078125, %v2440_v4  ;;  %v2471_v6 = vadd.f32 1e-05, %v2455_v26  ;;  %v5067_v30 = vld [vmem:[%s7915_s13 + $0xc8] sm:$0xff]   ;;  %v5072_v4 = vld [vmem:[%s7915_s13 + $0x10] sm:$0xff]   ;;  %v5077_v26 = vld [vmem:[%s7915_s13 + $0x98] sm:$0xff]  }
 0x8a1   : > { %v2497_v55 = vmul.f32 %v5271_v34, %v6734_v8  ;;  %5280 = vrsqrt.f32 %v2469_v63  ;;  %4605 = vmatprep.subr.bf16.mxu1 %v5067_v30  ;;  %v5073_v34 = vld [vmem:[%s7915_s13 + $0x90] sm:$0xff]  }
 0x8a2   : > { %v5273_v60 = vpop.eup %5272  ;;  %v2472_v59 = vadd.f32 1e-05, %v2456_v25  ;;  %v5074_v25 = vld [vmem:[%s7915_s13 + $0x58] sm:$0xff]  }
 0x8a3   : > { %v2498_v2 = vmul.f32 %v5273_v60, %v6737_v17  ;;  %v2519_v27 = vmul.f32 %v6782_v35, %v2497_v55  ;;  %v5075_v55 = vld [vmem:[%s7915_s13 + $0xd8] sm:$0xff]  }
 0x8a4   : > { %v5275_v36 = vpop.eup %5274  ;;  %5282 = vrsqrt.f32 %v2472_v59  ;;  %v5076_v60 = vld [vmem:[%s7915_s13 + $0x18] sm:$0xff]   ;;  %v5081_v59 = vld [vmem:[%s7915_s13 + $0xa0] sm:$0xff]  }
 0x8a5   : > { %v2520_v39 = vmul.f32 %v6782_v35, %v2498_v2  ;;  %v2541_v28 = vadd.f32 %v6790_v48, %v2519_v27  ;;  %v2499_v50 = vmul.f32 %v5275_v36, %v6742_v9  ;;  %5284 = vrsqrt.f32 %v2471_v6  ;;  %v5078_v2 = vld [vmem:[%s7915_s13 + $0x60] sm:$0xff]   ;;  %v5084_v6 = vld [vmem:[%s7915_s13 + $0x28] sm:$0xff]  }
 0x8a6   : > { %v5277_v32 = vpop.eup %5276  ;;  %v5079_v27 = vld [vmem:[%s7915_s13 + $0xe0] sm:$0xff]  }
 0x8a7   : > { %v2542_v62 = vadd.f32 %v6790_v48, %v2520_v39  ;;  %v2500_v8 = vmul.f32 %v5277_v32, %v6747_v14  ;;  %v2521_v21 = vmul.f32 %v6782_v35, %v2499_v50  ;;  %v5080_v36 = vld [vmem:[%s7915_s13 + $0x20] sm:$0xff]   ;;  %v5082_v39 = vld [vmem:[%s7915_s13 + $0x68] sm:$0xff]   ;;  %v5087_v50 = vld [vmem:[%s7915_s13 + $0xf0] sm:$0xff]  }
 0x8a8   : > { %v5083_v32 = vld [vmem:[%s7915_s13 + $0xe8] sm:$0xff]  }
 0x8a9   : > { %v2553_v23 = vpack.c.bf16 %v2542_v62, %v2541_v28  ;;  %v2522_v17 = vmul.f32 %v6782_v35, %v2500_v8  ;;  %v2543_v14 = vadd.f32 %v6790_v48, %v2521_v21  ;;  %v5085_v28 = vld [vmem:[%s7915_s13 + $0xa8] sm:$0xff]   ;;  %v5086_v62 = vld [vmem:[%s7915_s13 + $0x70] sm:$0xff]   ;;  %v5092_v21 = vld [vmem:[%s7915_s13 + $0x38] sm:$0xff]  }
 0x8aa   : > { %v5279_v11 = vpop.eup %5278  ;;  %v5088_v8 = vld [vmem:[%s7915_s13 + $0x30] sm:$0xff]  }
 0x8ab   : > { %2876 = vmatmul.mubr.bf16.gmra.mrb[64].mxu0 %v2553_v23  ;;  %2989 = vmatmul.mubr.bf16.gmra.mrb[96].mxu1 %v2553_v23  ;;  %v5281_v29 = vpop.eup %5280  ;;  %v2544_v47 = vadd.f32 %v6790_v48, %v2522_v17  ;;  %v2502_v9 = vmul.f32 %v5279_v11, %v6757_v16  ;;  %v5089_v23 = vld [vmem:[%s7915_s13 + $0xb0] sm:$0xff]   ;;  %v5090_v17 = vld [vmem:[%s7915_s13 + $0x78] sm:$0xff]  }
 0x8ac   : > { %2885 = vmatprep.mubr.bf16.mxu0 %v5510_v46  ;;  %2998 = vmatprep.mubr.bf16.mxu1 %v5510_v46  ;;  %v2501_v1 = vmul.f32 %v5281_v29, %v6752_v44  ;;  %v5091_v11 = vld [vmem:[%s7915_s13 + $0xf8] sm:$0xff]  }
 0x8ad   : > { %v2554_v41 = vpack.c.bf16 %v2544_v47, %v2543_v14  ;;  %v2524_v56 = vmul.f32 %v6782_v35, %v2502_v9  ;;  %v5093_v29 = vld [vmem:[%s7915_s13 + $0xb8] sm:$0xff]   ;;  %v2633_v47 = vsub.s32 2, %v5915_v22  ;;  %v2621_v9 = vld [vmem:[%s7914_s12] sm:$0xf]  ;;  %v2637_v14 = vsub.s32 3, %v5915_v22 }
 0x8ae   : > { %v5283_v58 = vpop.eup %5282  ;;  %v2523_v18 = vmul.f32 %v6782_v35, %v2501_v1  ;;  %v7989_v1 = vsub.s32 0, %v5915_v22 }
 0x8af   : > { %v5285_v3 = vpop.eup %5284  ;;  %v2546_v31 = vadd.f32 %v6790_v48, %v2524_v56  ;;  %v2504_v16 = vmul.f32 %v5283_v58, %v6767_v15  ;;  %v6950_v56 = vrot.slane %v2621_v9, %v2633_v47  ;;  %v7992_v58 = vsub.s32 1, %v5915_v22 }
 0x8b0   : > { %v2545_v0 = vadd.f32 %v6790_v48, %v2523_v18  ;;  %v2503_v44 = vmul.f32 %v5285_v3, %v6762_v10  ;;  %v5066_v10 = vld [vmem:[%s7915_s13 + $0x48] sm:$0xff]   ;;  %v6956_v3 = vrot.slane %v2621_v9, %v2637_v14 }
 0x8b1   : > { %v2526_v43 = vmul.f32 %v6782_v35, %v2504_v16  ;;  %4541 = vmatprep.subr.bf16.mxu0 %v5066_v10  ;;  %7991 = vst [vmem:[#allocation29_spill] sm:$0xff] %v6950_v56  ;;  %v6954_v18 = vrot.slane %v2621_v9, %v7992_v58 }
 0x8b2   : > { %v2555_v42 = vpack.c.bf16 %v2546_v31, %v2545_v0  ;;  %v2525_v51 = vmul.f32 %v6782_v35, %v2503_v44  ;;  %v5068_v35 = vld [vmem:[%s7915_s13 + $0x8] sm:$0xff]   ;;  %7994 = vst [vmem:[#allocation31_spill] sm:$0xff] %v6956_v3 }
 0x8b3   : > { %2886 = vmatmul.mubr.bf16.gmra.mrb[68].mxu0 %v2554_v41  ;;  %2999 = vmatmul.mubr.bf16.gmra.mrb[100].mxu1 %v2554_v41  ;;  %v2548_v61 = vadd.f32 %v6790_v48, %v2526_v43  ;;  %v6948_v41 = vrot.slane %v2621_v9, %v7989_v1  ;;  %7993 = vst [vmem:[#allocation30_spill] sm:$0xff] %v6954_v18 }
 0x8b4   : > { %2895 = vmatprep.mubr.bf16.mxu0 %v5510_v46  ;;  %3008 = vmatprep.mubr.bf16.mxu1 %v5510_v46  ;;  %v2547_v63 = vadd.f32 %v6790_v48, %v2525_v51  ;;  %v5070_v48 = vld [vmem:[%s7915_s13 + $0x50] sm:$0xff]  }
 0x8b5   : > { %4542 = vmatpush3.bf16.msra.mxu0 %v5068_v35  ;;  %7990 = vst [vmem:[#allocation28_spill] sm:$0xff] %v6948_v41 }
 0x8b6   : > { %v2556_v15 = vpack.c.bf16 %v2548_v61, %v2547_v63  ;;  %4543 = vmatprep.subr.bf16.mxu0 %v5070_v48 }
 0x8b9   : > { %4544 = vmatpush3.bf16.msra.mxu0 %v5072_v4 }
 0x8ba   : > { %4545 = vmatprep.subr.bf16.mxu0 %v5074_v25 }
 0x8bb   : > { %2896 = vmatmul.mubr.bf16.gmra.mrb[72].mxu0 %v2555_v42  ;;  %3009 = vmatmul.mubr.bf16.gmra.mrb[104].mxu1 %v2555_v42 }
 0x8bc   : > { %2905 = vmatprep.mubr.bf16.mxu0 %v5510_v46  ;;  %3018 = vmatprep.mubr.bf16.mxu1 %v5510_v46  ;;  %v5069_v46 = vld [vmem:[%s7915_s13 + $0x88] sm:$0xff]  }
 0x8bd   : > { %4606 = vmatpush3.bf16.msra.mxu1 %v5069_v46  ;;  %4546 = vmatpush3.bf16.msra.mxu0 %v5076_v60 }
 0x8be   : > { %4607 = vmatprep.subr.bf16.mxu1 %v5071_v19  ;;  %4547 = vmatprep.subr.bf16.mxu0 %v5078_v2 }
 0x8c1   : > { %4608 = vmatpush3.bf16.msra.mxu1 %v5073_v34  ;;  %4548 = vmatpush3.bf16.msra.mxu0 %v5080_v36 }
 0x8c2   : > { %4609 = vmatprep.subr.bf16.mxu1 %v5075_v55  ;;  %4549 = vmatprep.subr.bf16.mxu0 %v5082_v39 }
 0x8c3   : > { %2906 = vmatmul.mubr.bf16.gmra.mrb[76].mxu0 %v2556_v15  ;;  %3019 = vmatmul.mubr.bf16.gmra.mrb[108].mxu1 %v2556_v15 }
 0x8c5   : > { %4610 = vmatpush3.bf16.msra.mxu1 %v5077_v26  ;;  %4550 = vmatpush3.bf16.msra.mxu0 %v5084_v6 }
 0x8c6   : > { %4611 = vmatprep.subr.bf16.mxu1 %v5079_v27  ;;  %4551 = vmatprep.subr.bf16.mxu0 %v5086_v62 }
 0x8c9   : > { %4612 = vmatpush3.bf16.msra.mxu1 %v5081_v59  ;;  %4552 = vmatpush3.bf16.msra.mxu0 %v5088_v8 }
 0x8ca   : > { %4613 = vmatprep.subr.bf16.mxu1 %v5083_v32  ;;  %4553 = vmatprep.subr.bf16.mxu0 %v5090_v17 }
 0x8cd   : > { %4614 = vmatpush3.bf16.msra.mxu1 %v5085_v28  ;;  %4554 = vmatpush3.bf16.msra.mxu0 %v5092_v21 }
 0x8ce   : > { %4615 = vmatprep.subr.bf16.mxu1 %v5087_v50 }
 0x8d1   : > { %4616 = vmatpush3.bf16.msra.mxu1 %v5089_v23 }
 0x8d2   : > { %4617 = vmatprep.subr.bf16.mxu1 %v5091_v11 }
 0x8d5   : > { %4618 = vmatpush3.bf16.msra.mxu1 %v5093_v29 }
 0x941   : > { %v2837_v31 = vpop.f32.mrb[48].mxu0  ;;  %v2950_v16 = vpop.f32.mrb[80].mxu1 }
 0x942   : > { %v2838_v0 = vadd.f32 %v2837_v31, %v6948_v41  ;;  %v2951_v44 = vadd.f32 %v2950_v16, %v6950_v56  ;;  %v2839_v42 = vpop.f32.mrb[49].mxu0  ;;  %v2952_v43 = vpop.f32.mrb[81].mxu1 }
 0x943   : > { %v6961_v51 = vadd.f32 %v2839_v42, %v6954_v18  ;;  %v6964_v61 = vadd.f32 %v2952_v43, %v6956_v3  ;;  %v2841_v63 = vpop.f32.mrb[50].mxu0  ;;  %v2954_v22 = vpop.f32.mrb[82].mxu1 }
 0x944   : > { %v3093_v15 = vmul.f32 0.044715, %v2838_v0  ;;  %v3095_v10 = vmul.f32 0.044715, %v2951_v44  ;;  %v2842_v35 = vadd.f32 %v2841_v63, %v6948_v41  ;;  %v2955_v46 = vadd.f32 %v2954_v22, %v6950_v56  ;;  %v2843_v48 = vpop.f32.mrb[51].mxu0  ;;  %v2956_v19 = vpop.f32.mrb[83].mxu1 }
 0x945   : > { %v3094_v30 = vmul.f32 0.044715, %v6961_v51  ;;  %v3096_v25 = vmul.f32 0.044715, %v6964_v61  ;;  %v6971_v55 = vadd.f32 %v2843_v48, %v6954_v18  ;;  %v6974_v36 = vadd.f32 %v2956_v19, %v6956_v3 }
 0x946   : > { %v3157_v4 = vmul.f32 %v3093_v15, %v2838_v0  ;;  %v3159_v34 = vmul.f32 %v3095_v10, %v2951_v44  ;;  %v3097_v60 = vmul.f32 0.044715, %v2842_v35  ;;  %v3099_v27 = vmul.f32 0.044715, %v2955_v46 }
 0x947   : > { %v3158_v59 = vmul.f32 %v3094_v30, %v6961_v51  ;;  %v3160_v62 = vmul.f32 %v3096_v25, %v6964_v61  ;;  %v3098_v8 = vmul.f32 0.044715, %v6971_v55  ;;  %v6985_v1 = vmul.f32 0.5, %v2838_v0 }
 0x948   : > { %v3221_v26 = vmul.f32 %v3157_v4, %v2838_v0  ;;  %v3223_v2 = vmul.f32 %v3159_v34, %v2951_v44  ;;  %v3161_v39 = vmul.f32 %v3097_v60, %v2842_v35  ;;  %v3163_v50 = vmul.f32 %v3099_v27, %v2955_v46 }
 0x949   : > { %v2847_v32 = vpop.f32.mrb[52].mxu0  ;;  %v2960_v6 = vpop.f32.mrb[84].mxu1  ;;  %v6987_v58 = vmul.f32 0.5, %v2951_v44  ;;  %v3100_v16 = vmul.f32 0.044715, %v6974_v36  ;;  %v6990_v22 = vmul.f32 0.5, %v2842_v35  ;;  %v7000_v4 = vmul.f32 %v3158_v59, %v6961_v51 }
 0x94a   : > { %v3285_v28 = vadd.f32 %v3221_v26, %v2838_v0  ;;  %v2849_v23 = vpop.f32.mrb[53].mxu0  ;;  %v2962_v17 = vpop.f32.mrb[85].mxu1  ;;  %v3287_v11 = vadd.f32 %v3223_v2, %v2951_v44  ;;  %v3225_v21 = vmul.f32 %v3161_v39, %v2842_v35  ;;  %v6980_v29 = vadd.f32 %v2847_v32, %v6948_v41 }
 0x94b   : > { %v6983_v47 = vadd.f32 %v2960_v6, %v6950_v56  ;;  %v2851_v9 = vpop.f32.mrb[54].mxu0  ;;  %v2964_v14 = vpop.f32.mrb[86].mxu1  ;;  %v3227_v31 = vmul.f32 %v3163_v50, %v2955_v46  ;;  %v6992_v10 = vmul.f32 0.5, %v2955_v46  ;;  %v6997_v0 = vadd.f32 %v2849_v23, %v6954_v18 }
 0x94c   : > { %v2853_v42 = vpop.f32.mrb[55].mxu0  ;;  %v2966_v43 = vpop.f32.mrb[87].mxu1  ;;  %v3349_v63 = vmul.f32 0.7978846, %v3285_v28  ;;  %v3289_v15 = vadd.f32 %v3225_v21, %v2842_v35  ;;  %v3101_v48 = vmul.f32 0.044715, %v6980_v29  ;;  %v7003_v34 = vmul.f32 %v3160_v62, %v6964_v61 }
 0x94d   : > { %7995 = vst [vmem:[#allocation32_spill] sm:$0xff] %v6983_v47  ;;  %v3291_v30 = vadd.f32 %v3227_v31, %v2955_v46  ;;  %v3103_v19 = vmul.f32 0.044715, %v6983_v47  ;;  %v3351_v44 = vmul.f32 0.7978846, %v3287_v11  ;;  %v3162_v25 = vmul.f32 %v3098_v8, %v6971_v55 }
 0x94e   : > { %v3164_v35 = vmul.f32 %v3100_v16, %v6974_v36  ;;  %v3102_v46 = vmul.f32 0.044715, %v6997_v0  ;;  %v7009_v60 = vadd.f32 %v2962_v17, %v6956_v3  ;;  %v7012_v26 = vadd.f32 %v2851_v9, %v6948_v41 }
 0x94f   : > { %5286 = vtanh.f32 %v3349_v63  ;;  %v3353_v2 = vmul.f32 0.7978846, %v3289_v15  ;;  %v3355_v27 = vmul.f32 0.7978846, %v3291_v30  ;;  %v7015_v59 = vadd.f32 %v2964_v14, %v6950_v56 }
 0x950   : > { %7996 = vst [vmem:[#allocation33_spill] sm:$0xff] %v7012_v26  ;;  %v3165_v6 = vmul.f32 %v3101_v48, %v6980_v29  ;;  %v3167_v28 = vmul.f32 %v3103_v19, %v6983_v47  ;;  %v3104_v62 = vmul.f32 0.044715, %v7009_v60  ;;  %v3105_v50 = vmul.f32 0.044715, %v7012_v26 }
 0x951   : > { %7997 = vst [vmem:[#allocation34_spill] sm:$0xff] %v7015_v59  ;;  %v2857_v39 = vpop.f32.mrb[56].mxu0  ;;  %v2970_v32 = vpop.f32.mrb[88].mxu1  ;;  %v3166_v17 = vmul.f32 %v3102_v46, %v6997_v0  ;;  %v3107_v11 = vmul.f32 0.044715, %v7015_v59  ;;  %v7024_v21 = vadd.f32 %v2853_v42, %v6954_v18  ;;  %v7027_v9 = vadd.f32 %v2966_v43, %v6956_v3 }
 0x952   : > { %v2859_v8 = vpop.f32.mrb[57].mxu0  ;;  %v2972_v23 = vpop.f32.mrb[89].mxu1  ;;  %5288 = vtanh.f32 %v3351_v44  ;;  %v7030_v16 = vmul.f32 %v3162_v25, %v6971_v55  ;;  %v7033_v63 = vadd.f32 %v2857_v39, %v6948_v41  ;;  %v7036_v15 = vadd.f32 %v2970_v32, %v6950_v56 }
 0x953   : > { %v2861_v14 = vpop.f32.mrb[58].mxu0  ;;  %v2974_v31 = vpop.f32.mrb[90].mxu1  ;;  %5290 = vtanh.f32 %v3353_v2  ;;  %v7039_v42 = vmul.f32 %v3164_v35, %v6974_v36  ;;  %v3168_v43 = vmul.f32 %v3104_v62, %v7009_v60  ;;  %v3106_v19 = vmul.f32 0.044715, %v7024_v21 }
 0x954   : > { %v2863_v30 = vpop.f32.mrb[59].mxu0  ;;  %v2976_v48 = vpop.f32.mrb[91].mxu1  ;;  %v7044_v44 = vmul.f32 %v3165_v6, %v6980_v29  ;;  %v3169_v25 = vmul.f32 %v3105_v50, %v7012_v26  ;;  %v3108_v46 = vmul.f32 0.044715, %v7027_v9  ;;  %v7049_v39 = vadd.f32 %v2859_v8, %v6954_v18 }
 0x955   : > { %5292 = vtanh.f32 %v3355_v27  ;;  %v7052_v2 = vmul.f32 %v3167_v28, %v6983_v47  ;;  %v7055_v35 = vmul.f32 %v3166_v17, %v6997_v0  ;;  %v3171_v32 = vmul.f32 %v3107_v11, %v7015_v59 }
 0x956   : > { %7998 = vst [vmem:[#allocation35_spill] sm:$0xff] %v7044_v44  ;;  %v3109_v62 = vmul.f32 0.044715, %v7033_v63  ;;  %v3111_v6 = vmul.f32 0.044715, %v7036_v15  ;;  %v7061_v50 = vadd.f32 %v2972_v23, %v6956_v3  ;;  %v7064_v33 = vadd.f32 %v2861_v14, %v6948_v41 }
 0x957   : > { %7999 = vst [vmem:[#allocation36_spill] sm:$0xff] %v7052_v2  ;;  %v7067_v27 = vmul.f32 %v3168_v43, %v7009_v60  ;;  %v3170_v28 = vmul.f32 %v3106_v19, %v7024_v21  ;;  %v3110_v8 = vmul.f32 0.044715, %v7049_v39  ;;  %v7072_v17 = vadd.f32 %v2974_v31, %v6950_v56 }
 0x958   : > { %v7075_v38 = vmul.f32 %v3169_v25, %v7012_v26  ;;  %v3172_v23 = vmul.f32 %v3108_v46, %v7027_v9  ;;  %v3112_v14 = vmul.f32 0.044715, %v7061_v50  ;;  %v3113_v40 = vmul.f32 0.044715, %v7064_v33 }
 0x959   : > { %v2867_v11 = vpop.f32.mrb[60].mxu0  ;;  %v2980_v45 = vpop.f32.mrb[92].mxu1  ;;  %v3115_v19 = vmul.f32 0.044715, %v7072_v17  ;;  %v7084_v31 = vadd.f32 %v2863_v30, %v6954_v18  ;;  %v7087_v57 = vadd.f32 %v2976_v48, %v6956_v3  ;;  %v7093_v52 = vmul.f32 %v3171_v32, %v7015_v59 }
 0x95a   : > { %8000 = vst [vmem:[#allocation37_spill] sm:$0xff] %v7075_v38  ;;  %v2869_v43 = vpop.f32.mrb[61].mxu0  ;;  %v2982_v37 = vpop.f32.mrb[93].mxu1  ;;  %v7090_v25 = vadd.f32 %v2867_v11, %v6948_v41  ;;  %v3173_v12 = vmul.f32 %v3109_v62, %v7033_v63  ;;  %v3175_v7 = vmul.f32 %v3111_v6, %v7036_v15  ;;  %v7098_v49 = vadd.f32 %v2980_v45, %v6950_v56 }
 0x95b   : > { %v7080_v24 = vpop.eup %5286  ;;  %v2871_v46 = vpop.f32.mrb[62].mxu0  ;;  %8001 = vst [vmem:[#allocation38_spill] sm:$0xff] %v7093_v52  ;;  %v7101_v48 = vmul.f32 %v3170_v28, %v7024_v21  ;;  %v3114_v11 = vmul.f32 0.044715, %v7084_v31  ;;  %v3116_v53 = vmul.f32 0.044715, %v7087_v57  ;;  %v7107_v54 = vmul.f32 %v3172_v23, %v7027_v9 }
 0x95c   : > { %v2984_v20 = vpop.f32.mrb[94].mxu1  ;;  %8002 = vst [vmem:[#allocation39_spill] sm:$0xff] %v7098_v49  ;;  %v2873_v30 = vpop.f32.mrb[63].mxu0  ;;  %v3117_v5 = vmul.f32 0.044715, %v7090_v25  ;;  %v3174_v62 = vmul.f32 %v3110_v8, %v7049_v39  ;;  %v7112_v6 = vadd.f32 %v2869_v43, %v6954_v18  ;;  %v3176_v28 = vmul.f32 %v3112_v14, %v7061_v50 }
 0x95d   : > { %v2986_v13 = vpop.f32.mrb[95].mxu1  ;;  %v5289_v32 = vpop.eup %5288  ;;  %v3119_v45 = vmul.f32 0.044715, %v7098_v49  ;;  %v3177_v59 = vmul.f32 %v3113_v40, %v7064_v33  ;;  %v3179_v2 = vmul.f32 %v3115_v19, %v7072_v17  ;;  %v3178_v47 = vmul.f32 %v3114_v11, %v7084_v31 }
 0x95e   : > { %v5291_v52 = vpop.eup %5290  ;;  %v3180_v38 = vmul.f32 %v3116_v53, %v7087_v57  ;;  %v3118_v23 = vmul.f32 0.044715, %v7112_v6  ;;  %v7121_v8 = vadd.f32 %v2982_v37, %v6956_v3  ;;  %v7124_v26 = vadd.f32 %v2871_v46, %v6948_v41 }
 0x95f   : > { %v5293_v43 = vpop.eup %5292  ;;  %v7127_v44 = vmul.f32 %v3173_v12, %v7033_v63  ;;  %v7130_v40 = vmul.f32 %v3175_v7, %v7036_v15  ;;  %v3181_v14 = vmul.f32 %v3117_v5, %v7090_v25  ;;  %v7134_v19 = vadd.f32 %v2984_v20, %v6950_v56 }
 0x960   : > { %v7137_v53 = vmul.f32 %v3174_v62, %v7049_v39  ;;  %v3183_v37 = vmul.f32 %v3119_v45, %v7098_v49  ;;  %v3182_v46 = vmul.f32 %v3118_v23, %v7112_v6  ;;  %v3120_v11 = vmul.f32 0.044715, %v7121_v8 }
 0x961   : > { %v7143_v12 = vmul.f32 %v3176_v28, %v7061_v50  ;;  %v7146_v7 = vmul.f32 %v3177_v59, %v7064_v33  ;;  %v3121_v5 = vmul.f32 0.044715, %v7124_v26  ;;  %v3123_v20 = vmul.f32 0.044715, %v7134_v19 }
 0x962   : > { %v7151_v56 = vmul.f32 %v3179_v2, %v7072_v17  ;;  %v7154_v62 = vmul.f32 %v3178_v47, %v7084_v31  ;;  %v7157_v45 = vmul.f32 %v3180_v38, %v7087_v57  ;;  %v7160_v23 = vadd.f32 %v2873_v30, %v6954_v18 }
 0x963   : > { %v7163_v28 = vmul.f32 %v3181_v14, %v7090_v25  ;;  %v3184_v59 = vmul.f32 %v3120_v11, %v7121_v8  ;;  %v7167_v41 = vadd.f32 %v2986_v13, %v6956_v3  ;;  %v3286_v2 = vadd.f32 %v7000_v4, %v6961_v51 }
 0x964   : > { %v7172_v47 = vmul.f32 %v3183_v37, %v7098_v49  ;;  %v7175_v38 = vmul.f32 %v3182_v46, %v7112_v6  ;;  %v7178_v30 = vmul.f32 0.5, %v6961_v51  ;;  %v3290_v14 = vadd.f32 %v7030_v16, %v6971_v55 }
 0x965   : > { %v3185_v11 = vmul.f32 %v3121_v5, %v7124_v26  ;;  %v3187_v13 = vmul.f32 %v3123_v20, %v7134_v19  ;;  %v7185_v3 = vmul.f32 0.5, %v6971_v55  ;;  %v3350_v4 = vmul.f32 0.7978846, %v3286_v2 }
 0x966   : > { %8003 = vst [vmem:[#allocation40_spill] sm:$0xff] %v7172_v47  ;;  %v3122_v37 = vmul.f32 0.044715, %v7160_v23  ;;  %v3354_v18 = vmul.f32 0.7978846, %v3290_v14  ;;  %v3288_v46 = vadd.f32 %v7003_v34, %v6964_v61  ;;  %v3292_v51 = vadd.f32 %v7039_v42, %v6974_v36 }
 0x967   : > { %v7193_v47 = vmul.f32 %v3184_v59, %v7121_v8  ;;  %v3124_v16 = vmul.f32 0.044715, %v7167_v41  ;;  %5294 = vtanh.f32 %v3350_v4  ;;  %v3477_v5 = vadd.f32 1.0, %v7080_v24 }
 0x968   : > { %5296 = vtanh.f32 %v3354_v18  ;;  %v3352_v55 = vmul.f32 0.7978846, %v3288_v46  ;;  %v3356_v20 = vmul.f32 0.7978846, %v3292_v51  ;;  %v3481_v2 = vadd.f32 1.0, %v5291_v52 }
 0x969   : > { %v7198_v14 = vmul.f32 %v3185_v11, %v7124_v26  ;;  %v7201_v34 = vmul.f32 0.5, %v6964_v61  ;;  %v3479_v49 = vadd.f32 1.0, %v5289_v32  ;;  %v3483_v42 = vadd.f32 1.0, %v5293_v43 }
 0x96a   : > { %5298 = vtanh.f32 %v3352_v55  ;;  %v7204_v59 = vmul.f32 %v3477_v5, %v6985_v1  ;;  %v7207_v4 = vmul.f32 %v3481_v2, %v6990_v22  ;;  %v3294_v24 = vadd.f32 %v7055_v35, %v6997_v0  ;;  %v8005_v5 = vld [vmem:[#allocation33_spill] sm:$0xff]  ;;  %v8007_v2 = vld [vmem:[#allocation32_spill] sm:$0xff] }
 0x96b   : > { %5300 = vtanh.f32 %v3356_v20  ;;  %v7212_v52 = vmul.f32 %v3479_v49, %v6987_v58  ;;  %v7215_v18 = vmul.f32 %v3483_v42, %v6992_v10  ;;  %v3298_v61 = vadd.f32 %v7101_v48, %v7024_v21  ;;  %v8006_v55 = vld [vmem:[#allocation37_spill] sm:$0xff]  ;;  %v8008_v42 = vld [vmem:[#allocation36_spill] sm:$0xff] }
 0x96c   : > { %v3186_v32 = vmul.f32 %v3122_v37, %v7160_v23  ;;  %v3188_v1 = vmul.f32 %v3124_v16, %v7167_v41  ;;  %v3621_v22 = vpack.c.bf16 %v7207_v4, %v7204_v59  ;;  %v3358_v43 = vmul.f32 0.7978846, %v3294_v24  ;;  %v8004_v37 = vld [vmem:[#allocation35_spill] sm:$0xff] }
 0x96d   : > { %v3623_v35 = vpack.c.bf16 %v7215_v18, %v7212_v52  ;;  %v3362_v11 = vmul.f32 0.7978846, %v3298_v61  ;;  %v3296_v49 = vadd.f32 %v7067_v27, %v7009_v60  ;;  %v3300_v58 = vadd.f32 %v7107_v54, %v7027_v9  ;;  %v8009_v61 = vld [vmem:[#allocation34_spill] sm:$0xff] }
 0x96e   : > { %v7230_v10 = vmul.f32 %v3187_v13, %v7134_v19  ;;  %v3036_v48 = vmul.f32 0.5, %v6974_v36  ;;  %5302 = vtanh.f32 %v3358_v43  ;;  %v3293_v46 = vadd.f32 %v8004_v37, %v6980_v29  ;;  %v8010_v43 = vld [vmem:[#allocation38_spill] sm:$0xff] }
 0x96f   : > { %5304 = vtanh.f32 %v3362_v11  ;;  %v3360_v51 = vmul.f32 0.7978846, %v3296_v49  ;;  %v3364_v16 = vmul.f32 0.7978846, %v3300_v58  ;;  %v3297_v20 = vadd.f32 %v8006_v55, %v8005_v5 }
 0x970   : > { %v7238_v27 = vmul.f32 %v3186_v32, %v7160_v23  ;;  %v7241_v54 = vmul.f32 %v3188_v1, %v7167_v41  ;;  %v3357_v13 = vmul.f32 0.7978846, %v3293_v46  ;;  %v3295_v36 = vadd.f32 %v8008_v42, %v8007_v2 }
 0x971   : > { %v5295_v59 = vpop.eup %5294  ;;  %v3038_v4 = vmul.f32 0.5, %v6997_v0  ;;  %5306 = vtanh.f32 %v3360_v51  ;;  %v3361_v24 = vmul.f32 0.7978846, %v3297_v20  ;;  %v3299_v11 = vadd.f32 %v8010_v43, %v8009_v61 }
 0x972   : > { %v5297_v49 = vpop.eup %5296  ;;  %v3478_v58 = vadd.f32 1.0, %v5295_v59  ;;  %v3042_v32 = vmul.f32 0.5, %v7024_v21  ;;  %5308 = vtanh.f32 %v3364_v16  ;;  %v3359_v37 = vmul.f32 0.7978846, %v3295_v36 }
 0x973   : > { %v3482_v1 = vadd.f32 1.0, %v5297_v49  ;;  %5310 = vtanh.f32 %v3357_v13  ;;  %v3363_v46 = vmul.f32 0.7978846, %v3299_v11  ;;  %v3302_v55 = vadd.f32 %v7137_v53, %v7049_v39 }
 0x974   : > { %v5299_v42 = vpop.eup %5298  ;;  %v3542_v0 = vmul.f32 %v3478_v58, %v7178_v30  ;;  %v3040_v51 = vmul.f32 0.5, %v7009_v60  ;;  %5312 = vtanh.f32 %v3361_v24  ;;  %v3306_v20 = vadd.f32 %v7154_v62, %v7084_v31 }
 0x975   : > { %v5301_v59 = vpop.eup %5300  ;;  %v3546_v21 = vmul.f32 %v3482_v1, %v7185_v3  ;;  %v3480_v16 = vadd.f32 1.0, %v5299_v42  ;;  %5314 = vtanh.f32 %v3359_v37  ;;  %v3366_v36 = vmul.f32 0.7978846, %v3302_v55 }
 0x976   : > { %v3484_v13 = vadd.f32 1.0, %v5301_v59  ;;  %v3044_v43 = vmul.f32 0.5, %v7027_v9  ;;  %5316 = vtanh.f32 %v3363_v46  ;;  %v3370_v53 = vmul.f32 0.7978846, %v3306_v20 }
 0x977   : > { %v3622_v11 = vpack.c.bf16 %v3546_v21, %v3542_v0  ;;  %v3037_v30 = vmul.f32 0.5, %v6980_v29  ;;  %5318 = vtanh.f32 %v3366_v36  ;;  %v3304_v60 = vadd.f32 %v7143_v12, %v7061_v50 }
 0x978   : > { %v5303_v24 = vpop.eup %5302  ;;  %v3544_v62 = vmul.f32 %v3480_v16, %v7201_v34  ;;  %v3548_v49 = vmul.f32 %v3484_v13, %v3036_v48  ;;  %5320 = vtanh.f32 %v3370_v53  ;;  %v3308_v3 = vadd.f32 %v7157_v45, %v7087_v57 }
 0x979   : > { %v5305_v58 = vpop.eup %5304  ;;  %3941 = vmatprep.mubr.bf16.mxu0 %v3622_v11  ;;  %v3486_v9 = vadd.f32 1.0, %v5303_v24  ;;  %v3041_v37 = vmul.f32 0.5, %v8005_v5  ;;  %v3368_v1 = vmul.f32 0.7978846, %v3304_v60  ;;  %v3301_v29 = vadd.f32 %v7127_v44, %v7033_v63 }
 0x97a   : > { %v3624_v46 = vpack.c.bf16 %v3548_v49, %v3544_v62  ;;  %3942 = vmatmul.mubr.bf16.vlgmr.msra.gmra.mrb[80].mxu0 %v3621_v22  ;;  %v3490_v12 = vadd.f32 1.0, %v5305_v58  ;;  %v3372_v55 = vmul.f32 0.7978846, %v3308_v3  ;;  %v3305_v34 = vadd.f32 %v7146_v7, %v7064_v33 }
 0x97b   : > { %v5307_v48 = vpop.eup %5306  ;;  %v3550_v42 = vmul.f32 %v3486_v9, %v3038_v4  ;;  %v3039_v45 = vmul.f32 0.5, %v8007_v2  ;;  %5322 = vtanh.f32 %v3368_v1  ;;  %v3365_v0 = vmul.f32 0.7978846, %v3301_v29 }
 0x97c   : > { %v5309_v20 = vpop.eup %5308  ;;  %4038 = vmatprep.mubr.bf16.mxu1 %v3624_v46  ;;  %v3554_v5 = vmul.f32 %v3490_v12, %v3042_v32  ;;  %v3488_v59 = vadd.f32 1.0, %v5307_v48  ;;  %5324 = vtanh.f32 %v3372_v55  ;;  %v3369_v21 = vmul.f32 0.7978846, %v3305_v34 }
 0x97d   : > { %v5311_v16 = vpop.eup %5310  ;;  %4039 = vmatmul.mubr.bf16.vlgmr.msra.gmra.mrb[112].mxu1 %v3623_v35  ;;  %v3492_v7 = vadd.f32 1.0, %v5309_v20  ;;  %v3043_v2 = vmul.f32 0.5, %v8009_v61  ;;  %5326 = vtanh.f32 %v3365_v0  ;;  %v3303_v4 = vadd.f32 %v7130_v40, %v7036_v15 }
 0x97e   : > { %v7269_v44 = vpop.f32.mrb[64].mxu0  ;;  %v7271_v22 = vpop.f32.mrb[96].mxu1  ;;  %v3626_v53 = vpack.c.bf16 %v3554_v5, %v3550_v42  ;;  %v3552_v11 = vmul.f32 %v3488_v59, %v3040_v51  ;;  %v3485_v60 = vadd.f32 1.0, %v5311_v16  ;;  %5328 = vtanh.f32 %v3369_v21 }
 0x97f   : > { %v7279_v32 = vpop.f32.mrb[65].mxu0  ;;  %v7281_v36 = vpop.f32.mrb[97].mxu1  ;;  %v3556_v35 = vmul.f32 %v3492_v7, %v3044_v43  ;;  %v3307_v62 = vadd.f32 %v7151_v56, %v7072_v17  ;;  %v3367_v40 = vmul.f32 0.7978846, %v3303_v4  ;;  %v3046_v1 = vmul.f32 0.5, %v7049_v39 }
 0x980   : > { %v5313_v13 = vpop.eup %5312  ;;  %v7283_v24 = vpop.f32.mrb[66].mxu0  ;;  %3949 = vmatprep.mubr.bf16.mxu0 %v3626_v53  ;;  %v3549_v51 = vmul.f32 %v3485_v60, %v3037_v30  ;;  %v3050_v29 = vmul.f32 0.5, %v7084_v31  ;;  %v3310_v0 = vadd.f32 %v7175_v38, %v7112_v6  ;;  %v3048_v39 = vmul.f32 0.5, %v7061_v50 }
 0x981   : > { %v7285_v52 = vpop.f32.mrb[98].mxu1  ;;  %v5315_v18 = vpop.eup %5314  ;;  %v3489_v61 = vadd.f32 1.0, %v5313_v13  ;;  %v3628_v12 = vpack.c.bf16 %v3556_v35, %v3552_v11  ;;  %v3371_v34 = vmul.f32 0.7978846, %v3307_v62  ;;  %5330 = vtanh.f32 %v3367_v40 }
 0x982   : > { %v7289_v49 = vpop.f32.mrb[67].mxu0  ;;  %v7291_v3 = vpop.f32.mrb[99].mxu1  ;;  %v3487_v9 = vadd.f32 1.0, %v5315_v18  ;;  %v3052_v31 = vmul.f32 0.5, %v7087_v57  ;;  %v3374_v59 = vmul.f32 0.7978846, %v3310_v0  ;;  %v3316_v11 = vadd.f32 %v7241_v54, %v7167_v41 }
 0x983   : > { %v5317_v58 = vpop.eup %5316  ;;  %v3553_v43 = vmul.f32 %v3489_v61, %v3041_v37  ;;  %4046 = vmatprep.mubr.bf16.mxu1 %v3628_v12  ;;  %5332 = vtanh.f32 %v3371_v34  ;;  %v3314_v37 = vadd.f32 %v7238_v27, %v7160_v23  ;;  %v3313_v34 = vadd.f32 %v7198_v14, %v7124_v26 }
 0x984   : > { %v5319_v46 = vpop.eup %5318  ;;  %v3491_v55 = vadd.f32 1.0, %v5317_v58  ;;  %v3551_v56 = vmul.f32 %v3487_v9, %v3039_v45  ;;  %5334 = vtanh.f32 %v3374_v59  ;;  %v3380_v54 = vmul.f32 0.7978846, %v3316_v11 }
 0x985   : > { %v5321_v48 = vpop.eup %5320  ;;  %v3494_v42 = vadd.f32 1.0, %v5319_v46  ;;  %v3625_v20 = vpack.c.bf16 %v3553_v43, %v3549_v51  ;;  %v3378_v27 = vmul.f32 0.7978846, %v3314_v37 }
 0x986   : > { %v3555_v30 = vmul.f32 %v3491_v55, %v3043_v2  ;;  %v3498_v5 = vadd.f32 1.0, %v5321_v48  ;;  %v7301_v21 = vpop.f32.mrb[68].mxu0  ;;  %v7303_v45 = vpop.f32.mrb[100].mxu1  ;;  %v3312_v2 = vadd.f32 %v7193_v47, %v7121_v8  ;;  %v3045_v47 = vmul.f32 0.5, %v7033_v63 }
 0x987   : > { %v5323_v16 = vpop.eup %5322  ;;  %3950 = vmatmul.mubr.bf16.gmra.mrb[84].mxu0 %v3625_v20  ;;  %v3558_v7 = vmul.f32 %v3494_v42, %v3046_v1  ;;  %v7307_v13 = vpop.f32.mrb[69].mxu0  ;;  %v3049_v1 = vmul.f32 0.5, %v7064_v33  ;;  %5336 = vtanh.f32 %v3378_v27  ;;  %v3047_v55 = vmul.f32 0.5, %v7036_v15 }
 0x988   : > { %v3627_v38 = vpack.c.bf16 %v3555_v30, %v3551_v56  ;;  %v3562_v4 = vmul.f32 %v3498_v5, %v3050_v29  ;;  %v7309_v50 = vpop.f32.mrb[101].mxu1  ;;  %v5325_v57 = vpop.eup %5324  ;;  %v3496_v53 = vadd.f32 1.0, %v5323_v16  ;;  %v3376_v40 = vmul.f32 0.7978846, %v3312_v2  ;;  %v8011_v5 = vld [vmem:[#allocation39_spill] sm:$0xff] }
 0x989   : > { %v7313_v60 = vpop.f32.mrb[70].mxu0  ;;  %v7315_v18 = vpop.f32.mrb[102].mxu1  ;;  %v3500_v62 = vadd.f32 1.0, %v5325_v57  ;;  %v3309_v63 = vadd.f32 %v7163_v28, %v7090_v25  ;;  %v3051_v42 = vmul.f32 0.5, %v7072_v17  ;;  %v3377_v30 = vmul.f32 0.7978846, %v3313_v34 }
 0x98a   : > { %v5327_v35 = vpop.eup %5326  ;;  %4047 = vmatmul.mubr.bf16.gmra.mrb[116].mxu1 %v3627_v38  ;;  %v3630_v61 = vpack.c.bf16 %v3562_v4, %v3558_v7  ;;  %v7318_v58 = vpop.f32.mrb[71].mxu0  ;;  %v3560_v46 = vmul.f32 %v3496_v53, %v3048_v39  ;;  %5338 = vtanh.f32 %v3376_v40  ;;  %v8012_v39 = vld [vmem:[#allocation40_spill] sm:$0xff]  ;;  %v3315_v15 = vadd.f32 %v7230_v10, %v7134_v19  ;;  %v8014_v7 = vld [vmem:[#allocation29_spill] sm:$0xff] }
 0x98b   : > { %v7320_v51 = vpop.f32.mrb[103].mxu1  ;;  %v5329_v9 = vpop.eup %5328  ;;  %v3493_v29 = vadd.f32 1.0, %v5327_v35  ;;  %v3564_v12 = vmul.f32 %v3500_v62, %v3052_v31  ;;  %5340 = vtanh.f32 %v3380_v54  ;;  %v3373_v20 = vmul.f32 0.7978846, %v3309_v63  ;;  %v8013_v38 = vld [vmem:[#allocation28_spill] sm:$0xff] }
 0x98c   : > { %3957 = vmatprep.mubr.bf16.mxu0 %v3630_v61  ;;  %v3497_v43 = vadd.f32 1.0, %v5329_v9  ;;  %v5331_v0 = vpop.eup %5330  ;;  %v3311_v31 = vadd.f32 %v8012_v39, %v8011_v5  ;;  %v7339_v17 = vadd.f32 %v7269_v44, %v8013_v38  ;;  %v7343_v4 = vadd.f32 %v7271_v22, %v8014_v7  ;;  %v8015_v9 = vld [vmem:[#allocation30_spill] sm:$0xff] }
 0x98d   : > { %v3632_v48 = vpack.c.bf16 %v3564_v12, %v3560_v46  ;;  %v3557_v56 = vmul.f32 %v3493_v29, %v3045_v47  ;;  %v5333_v59 = vpop.eup %5332  ;;  %v3495_v16 = vadd.f32 1.0, %v5331_v0  ;;  %5342 = vtanh.f32 %v3373_v20 }
 0x98e   : > { %v3561_v33 = vmul.f32 %v3497_v43, %v3049_v1  ;;  %v7333_v37 = vpop.f32.mrb[72].mxu0  ;;  %v7335_v28 = vpop.f32.mrb[104].mxu1  ;;  %v3499_v10 = vadd.f32 1.0, %v5333_v59  ;;  %v3375_v53 = vmul.f32 0.7978846, %v3311_v31  ;;  %5344 = vtanh.f32 %v3377_v30 }
 0x98f   : > { %4054 = vmatprep.mubr.bf16.mxu1 %v3632_v48  ;;  %v7345_v2 = vpop.f32.mrb[73].mxu0  ;;  %v7347_v57 = vpop.f32.mrb[105].mxu1  ;;  %v3379_v27 = vmul.f32 0.7978846, %v3315_v15  ;;  %v3559_v35 = vmul.f32 %v3495_v16, %v3047_v55  ;;  %v3125_v44 = vmul.f32 0.044715, %v7339_v17  ;;  %v7359_v1 = vadd.f32 %v7279_v32, %v8015_v9 }
 0x990   : > { %v3629_v14 = vpack.c.bf16 %v3561_v33, %v3557_v56  ;;  %v7349_v11 = vpop.f32.mrb[74].mxu0  ;;  %v7352_v61 = vpop.f32.mrb[106].mxu1  ;;  %v3563_v47 = vmul.f32 %v3499_v10, %v3051_v42  ;;  %5346 = vtanh.f32 %v3375_v53  ;;  %v3127_v40 = vmul.f32 0.044715, %v7343_v4  ;;  %v8016_v48 = vld [vmem:[#allocation31_spill] sm:$0xff] }
 0x991   : > { %v7354_v62 = vpop.f32.mrb[75].mxu0  ;;  %v5335_v22 = vpop.eup %5334  ;;  %v3054_v54 = vmul.f32 0.5, %v7112_v6  ;;  %v3058_v46 = vmul.f32 0.5, %v7160_v23  ;;  %5348 = vtanh.f32 %v3379_v27  ;;  %v3056_v63 = vmul.f32 0.5, %v7121_v8 }
 0x992   : > { %3958 = vmatmul.mubr.bf16.gmra.mrb[88].mxu0 %v3629_v14  ;;  %v7361_v29 = vpop.f32.mrb[107].mxu1  ;;  %v3502_v12 = vadd.f32 1.0, %v5335_v22  ;;  %v5337_v43 = vpop.eup %5336  ;;  %v3631_v55 = vpack.c.bf16 %v3563_v47, %v3559_v35  ;;  %v3126_v34 = vmul.f32 0.044715, %v7359_v1  ;;  %v7369_v56 = vadd.f32 %v7281_v36, %v8016_v48 }
 0x993   : > { %v3506_v33 = vadd.f32 1.0, %v5337_v43  ;;  %v3060_v42 = vmul.f32 0.5, %v7167_v41  ;;  %v3053_v6 = vmul.f32 0.5, %v7090_v25  ;;  %v3057_v23 = vmul.f32 0.5, %v7124_v26 }
 0x994   : > { %v5339_v32 = vpop.eup %5338  ;;  %4055 = vmatmul.mubr.bf16.gmra.mrb[120].mxu1 %v3631_v55  ;;  %v3189_v30 = vmul.f32 %v3125_v44, %v7339_v17  ;;  %v3191_v8 = vmul.f32 %v3127_v40, %v7343_v4  ;;  %v7378_v39 = vadd.f32 %v7283_v24, %v8013_v38  ;;  %v3566_v41 = vmul.f32 %v3502_v12, %v3054_v54 }
 0x995   : > { %v5341_v0 = vpop.eup %5340  ;;  %v3504_v20 = vadd.f32 1.0, %v5339_v32  ;;  %v3570_v15 = vmul.f32 %v3506_v33, %v3058_v46  ;;  %v7386_v26 = vadd.f32 %v7285_v52, %v8014_v7  ;;  %v3055_v16 = vmul.f32 0.5, %v8011_v5 }
 0x996   : > { %v7380_v36 = vpop.f32.mrb[76].mxu0  ;;  %v7382_v31 = vpop.f32.mrb[108].mxu1  ;;  %v3508_v25 = vadd.f32 1.0, %v5341_v0  ;;  %v3059_v24 = vmul.f32 0.5, %v7134_v19  ;;  %v3190_v10 = vmul.f32 %v3126_v34, %v7359_v1  ;;  %v3128_v53 = vmul.f32 0.044715, %v7369_v56 }
 0x997   : > { %v7388_v59 = vpop.f32.mrb[77].mxu0  ;;  %v7390_v14 = vpop.f32.mrb[109].mxu1  ;;  %v3634_v44 = vpack.c.bf16 %v3570_v15, %v3566_v41  ;;  %v3568_v22 = vmul.f32 %v3504_v20, %v3056_v63  ;;  %v7402_v47 = vadd.f32 %v7289_v49, %v8015_v9  ;;  %v7409_v54 = vmul.f32 %v3189_v30, %v7339_v17 }
 0x998   : > { %v7396_v27 = vpop.f32.mrb[78].mxu0  ;;  %v7398_v35 = vpop.f32.mrb[110].mxu1  ;;  %v3572_v52 = vmul.f32 %v3508_v25, %v3060_v42  ;;  %v7412_v46 = vmul.f32 %v3191_v8, %v7343_v4  ;;  %v3129_v12 = vmul.f32 0.044715, %v7378_v39  ;;  %v7417_v43 = vadd.f32 %v7291_v3, %v8016_v48 }
 0x999   : > { %v7404_v40 = vpop.f32.mrb[79].mxu0  ;;  %v7406_v5 = vpop.f32.mrb[111].mxu1  ;;  %3965 = vmatprep.mubr.bf16.mxu0 %v3634_v44  ;;  %v3131_v34 = vmul.f32 0.044715, %v7386_v26  ;;  %v7422_v32 = vadd.f32 %v7301_v21, %v8013_v38  ;;  %v3192_v0 = vmul.f32 %v3128_v53, %v7369_v56  ;;  %v7427_v20 = vadd.f32 %v7303_v45, %v8014_v7 }
 0x99a   : > { %v5343_v19 = vpop.eup %5342  ;;  %v3636_v49 = vpack.c.bf16 %v3572_v52, %v3568_v22  ;;  %v7431_v3 = vadd.f32 %v7307_v13, %v8015_v9  ;;  %v7434_v41 = vmul.f32 %v3190_v10, %v7359_v1  ;;  %v3130_v21 = vmul.f32 0.044715, %v7402_v47 }
 0x99b   : > { %v5345_v55 = vpop.eup %5344  ;;  %v3501_v63 = vadd.f32 1.0, %v5343_v19  ;;  %8017 = vst [vmem:[#allocation35_spill] sm:$0xff] %v7427_v20  ;;  %v3132_v15 = vmul.f32 0.044715, %v7417_v43  ;;  %v3193_v45 = vmul.f32 %v3129_v12, %v7378_v39  ;;  %v3195_v52 = vmul.f32 %v3131_v34, %v7386_v26 }
 0x99c   : > { %v5347_v33 = vpop.eup %5346  ;;  %v3505_v42 = vadd.f32 1.0, %v5345_v55  ;;  %4062 = vmatprep.mubr.bf16.mxu1 %v3636_v49  ;;  %v3133_v13 = vmul.f32 0.044715, %v7422_v32  ;;  %v7443_v19 = vadd.f32 %v7309_v50, %v8016_v48  ;;  %v3135_v49 = vmul.f32 0.044715, %v7427_v20 }
 0x99d   : > { %v5349_v30 = vpop.eup %5348  ;;  %v3503_v8 = vadd.f32 1.0, %v5347_v33  ;;  %v3565_v25 = vmul.f32 %v3501_v63, %v3053_v6  ;;  %v3134_v33 = vmul.f32 0.044715, %v7431_v3  ;;  %v3194_v6 = vmul.f32 %v3130_v21, %v7402_v47 }
 0x99e   : > { %v3569_v53 = vmul.f32 %v3505_v42, %v3057_v23  ;;  %v3507_v44 = vadd.f32 1.0, %v5349_v30  ;;  %v3196_v23 = vmul.f32 %v3132_v15, %v7417_v43  ;;  %v7452_v12 = vadd.f32 %v7313_v60, %v8013_v38 }
 0x99f   : > { %v3567_v22 = vmul.f32 %v3503_v8, %v3055_v16  ;;  %v3136_v16 = vmul.f32 0.044715, %v7443_v19  ;;  %v7456_v50 = vadd.f32 %v7315_v18, %v8014_v7  ;;  %v7464_v34 = vadd.f32 %v7320_v51, %v8016_v48 }
 0x9a0   : > { %v3633_v10 = vpack.c.bf16 %v3569_v53, %v3565_v25  ;;  %v3571_v55 = vmul.f32 %v3507_v44, %v3059_v24  ;;  %8018 = vst [vmem:[#allocation33_spill] sm:$0xff] %v7452_v12  ;;  %v7460_v24 = vadd.f32 %v7318_v58, %v8015_v9  ;;  %v7467_v42 = vmul.f32 %v3192_v0, %v7369_v56 }
 0x9a1   : > { %8019 = vst [vmem:[#allocation37_spill] sm:$0xff] %v7456_v50  ;;  %v7470_v60 = vmul.f32 %v3193_v45, %v7378_v39  ;;  %v3197_v30 = vmul.f32 %v3133_v13, %v7422_v32  ;;  %v3137_v8 = vmul.f32 0.044715, %v7452_v12  ;;  %v3199_v18 = vmul.f32 %v3135_v49, %v7427_v20 }
 0x9a2   : > { %3966 = vmatmul.mubr.bf16.gmra.mrb[92].mxu0 %v3633_v10  ;;  %v3635_v63 = vpack.c.bf16 %v3571_v55, %v3567_v22  ;;  %v3198_v58 = vmul.f32 %v3134_v33, %v7431_v3  ;;  %v3139_v21 = vmul.f32 0.044715, %v7456_v50  ;;  %v7479_v51 = vadd.f32 %v7333_v37, %v8013_v38 }
 0x9a3   : > { %v3200_v0 = vmul.f32 %v3136_v16, %v7443_v19  ;;  %v3138_v15 = vmul.f32 0.044715, %v7460_v24  ;;  %v3140_v25 = vmul.f32 0.044715, %v7464_v34  ;;  %v7486_v53 = vadd.f32 %v7335_v28, %v8014_v7 }
 0x9a4   : > { %4063 = vmatmul.mubr.bf16.gmra.mrb[124].mxu1 %v3635_v63  ;;  %8020 = vst [vmem:[#allocation32_spill] sm:$0xff] %v7479_v51  ;;  %v7489_v44 = vmul.f32 %v3195_v52, %v7386_v26  ;;  %v7492_v45 = vmul.f32 %v3194_v6, %v7402_v47  ;;  %v7495_v22 = vmul.f32 %v3196_v23, %v7417_v43  ;;  %v3141_v28 = vmul.f32 0.044715, %v7479_v51 }
 0x9a5   : > { %v7499_v37 = vadd.f32 %v7345_v2, %v8015_v9  ;;  %v3201_v13 = vmul.f32 %v3137_v8, %v7452_v12  ;;  %v3203_v10 = vmul.f32 %v3139_v21, %v7456_v50  ;;  %v3143_v55 = vmul.f32 0.044715, %v7486_v53 }
 0x9a6   : > { %v7506_v52 = vmul.f32 %v3197_v30, %v7422_v32  ;;  %v7509_v49 = vmul.f32 %v3199_v18, %v7427_v20  ;;  %v7512_v33 = vmul.f32 %v3198_v58, %v7431_v3  ;;  %v7516_v2 = vadd.f32 %v7347_v57, %v8016_v48 }
 0x9a7   : > { %v7519_v6 = vmul.f32 %v3200_v0, %v7443_v19  ;;  %v3202_v23 = vmul.f32 %v3138_v15, %v7460_v24  ;;  %v3204_v16 = vmul.f32 %v3140_v25, %v7464_v34  ;;  %v7525_v63 = vadd.f32 %v7349_v11, %v8013_v38 }
 0x9a8   : > { %8021 = vst [vmem:[#allocation36_spill] sm:$0xff] %v7509_v49  ;;  %v3142_v30 = vmul.f32 0.044715, %v7499_v37  ;;  %v7530_v8 = vadd.f32 %v7352_v61, %v8014_v7  ;;  %v7534_v57 = vadd.f32 %v7354_v62, %v8015_v9  ;;  %v7538_v18 = vadd.f32 %v7361_v29, %v8016_v48 }
 0x9a9   : > { %v7541_v58 = vmul.f32 %v3201_v13, %v7452_v12  ;;  %v7544_v11 = vmul.f32 %v3203_v10, %v7456_v50  ;;  %v3205_v21 = vmul.f32 %v3141_v28, %v7479_v51  ;;  %v3207_v0 = vmul.f32 %v3143_v55, %v7486_v53 }
 0x9aa   : > { %v3144_v61 = vmul.f32 0.044715, %v7516_v2  ;;  %v3145_v15 = vmul.f32 0.044715, %v7525_v63  ;;  %v3147_v62 = vmul.f32 0.044715, %v7530_v8  ;;  %v7553_v29 = vadd.f32 %v7380_v36, %v8013_v38 }
 0x9ab   : > { %8022 = vst [vmem:[#allocation34_spill] sm:$0xff] %v7541_v58  ;;  %8023 = vst [vmem:[#allocation38_spill] sm:$0xff] %v7544_v11  ;;  %v3146_v25 = vmul.f32 0.044715, %v7534_v57  ;;  %v3148_v13 = vmul.f32 0.044715, %v7538_v18  ;;  %v7559_v10 = vadd.f32 %v7382_v31, %v8014_v7  ;;  %v7563_v28 = vadd.f32 %v7388_v59, %v8015_v9 }
 0x9ac   : > { %v7566_v55 = vmul.f32 %v3202_v23, %v7460_v24  ;;  %v7569_v11 = vmul.f32 %v3204_v16, %v7464_v34  ;;  %v3206_v36 = vmul.f32 %v3142_v30, %v7499_v37  ;;  %v3149_v50 = vmul.f32 0.044715, %v7553_v29 }
 0x9ad   : > { %v7574_v49 = vmul.f32 %v3205_v21, %v7479_v51  ;;  %v3151_v31 = vmul.f32 0.044715, %v7559_v10  ;;  %v3150_v20 = vmul.f32 0.044715, %v7563_v28  ;;  %v7580_v59 = vadd.f32 %v7390_v14, %v8016_v48 }
 0x9ae   : > { %v7583_v23 = vmul.f32 %v3207_v0, %v7486_v53  ;;  %v3208_v16 = vmul.f32 %v3144_v61, %v7516_v2  ;;  %v3209_v30 = vmul.f32 %v3145_v15, %v7525_v63  ;;  %v3211_v58 = vmul.f32 %v3147_v62, %v7530_v8 }
 0x9af   : > { %8024 = vst [vmem:[#allocation39_spill] sm:$0xff] %v7574_v49  ;;  %v3210_v21 = vmul.f32 %v3146_v25, %v7534_v57  ;;  %v3212_v49 = vmul.f32 %v3148_v13, %v7538_v18  ;;  %v3152_v51 = vmul.f32 0.044715, %v7580_v59  ;;  %v7593_v12 = vadd.f32 %v7396_v27, %v8013_v38 }
 0x9b0   : > { %v3213_v14 = vmul.f32 %v3149_v50, %v7553_v29  ;;  %v3215_v0 = vmul.f32 %v3151_v31, %v7559_v10  ;;  %v7599_v61 = vadd.f32 %v7398_v35, %v8014_v7  ;;  %v7603_v15 = vadd.f32 %v7404_v40, %v8015_v9 }
 0x9b1   : > { %v7606_v62 = vmul.f32 %v3206_v36, %v7499_v37  ;;  %v3214_v25 = vmul.f32 %v3150_v20, %v7563_v28  ;;  %v3216_v38 = vmul.f32 %v3152_v51, %v7580_v59  ;;  %v7612_v27 = vadd.f32 %v7406_v5, %v8016_v48 }
 0x9b2   : > { %v7615_v50 = vmul.f32 %v3208_v16, %v7516_v2  ;;  %v7618_v7 = vmul.f32 %v3209_v30, %v7525_v63  ;;  %v3153_v9 = vmul.f32 0.044715, %v7593_v12  ;;  %v3318_v35 = vadd.f32 %v7434_v41, %v7359_v1 }
 0x9b3   : > { %v7624_v40 = vmul.f32 %v3211_v58, %v7530_v8  ;;  %v7627_v20 = vmul.f32 %v3210_v21, %v7534_v57  ;;  %v7630_v48 = vmul.f32 %v3212_v49, %v7538_v18  ;;  %v3154_v5 = vmul.f32 0.044715, %v7603_v15 }
 0x9b4   : > { %v7634_v51 = vmul.f32 %v3213_v14, %v7553_v29  ;;  %v7637_v13 = vmul.f32 %v3215_v0, %v7559_v10  ;;  %v3155_v36 = vmul.f32 0.044715, %v7599_v61  ;;  %v3322_v41 = vadd.f32 %v7492_v45, %v7402_v47 }
 0x9b5   : > { %v7643_v58 = vmul.f32 %v3214_v25, %v7563_v28  ;;  %v7646_v31 = vmul.f32 %v3216_v38, %v7580_v59  ;;  %v3156_v49 = vmul.f32 0.044715, %v7612_v27  ;;  %v3382_v16 = vmul.f32 0.7978846, %v3318_v35 }
 0x9b6   : > { %8025 = vst [vmem:[#allocation40_spill] sm:$0xff] %v7637_v13  ;;  %v7650_v30 = vmul.f32 %v3153_v9, %v7593_v12  ;;  %v3062_v21 = vmul.f32 0.5, %v7359_v1  ;;  %v3066_v14 = vmul.f32 0.5, %v7402_v47  ;;  %v3386_v0 = vmul.f32 0.7978846, %v3322_v41 }
 0x9b7   : > { %v3218_v13 = vmul.f32 %v3154_v5, %v7603_v15  ;;  %5350 = vtanh.f32 %v3382_v16  ;;  %v3320_v45 = vadd.f32 %v7467_v42, %v7369_v56  ;;  %v3324_v25 = vadd.f32 %v7495_v22, %v7417_v43 }
 0x9b8   : > { %v7660_v38 = vmul.f32 %v3155_v36, %v7599_v61  ;;  %5352 = vtanh.f32 %v3386_v0  ;;  %v3317_v9 = vadd.f32 %v7409_v54, %v7339_v17  ;;  %v3321_v1 = vadd.f32 %v7470_v60, %v7378_v39 }
 0x9b9   : > { %v7667_v47 = vmul.f32 %v3156_v49, %v7612_v27  ;;  %v7670_v35 = vmul.f32 0.5, %v7369_v56  ;;  %v3384_v42 = vmul.f32 0.7978846, %v3320_v45  ;;  %v3388_v5 = vmul.f32 0.7978846, %v3324_v25 }
 0x9ba   : > { %v3381_v41 = vmul.f32 0.7978846, %v3317_v9  ;;  %v3385_v22 = vmul.f32 0.7978846, %v3321_v1  ;;  %v3319_v36 = vadd.f32 %v7412_v46, %v7343_v4  ;;  %v3323_v16 = vadd.f32 %v7489_v44, %v7386_v26 }
 0x9bb   : > { %v7677_v54 = vmul.f32 %v3218_v13, %v7603_v15  ;;  %v7680_v60 = vmul.f32 0.5, %v7417_v43  ;;  %5354 = vtanh.f32 %v3384_v42  ;;  %v3326_v56 = vadd.f32 %v7512_v33, %v7431_v3  ;;  %v8026_v42 = vld [vmem:[#allocation33_spill] sm:$0xff] }
 0x9bc   : > { %5356 = vtanh.f32 %v3388_v5  ;;  %v3383_v49 = vmul.f32 0.7978846, %v3319_v36  ;;  %v3387_v0 = vmul.f32 0.7978846, %v3323_v16  ;;  %v3330_v45 = vadd.f32 %v7566_v55, %v7460_v24  ;;  %v8027_v5 = vld [vmem:[#allocation34_spill] sm:$0xff] }
 0x9bd   : > { %v3061_v46 = vmul.f32 0.5, %v7339_v17  ;;  %v7688_v44 = vmul.f32 0.5, %v7378_v39  ;;  %5358 = vtanh.f32 %v3381_v41  ;;  %v3390_v13 = vmul.f32 0.7978846, %v3326_v56  ;;  %v8029_v56 = vld [vmem:[#allocation36_spill] sm:$0xff] }
 0x9be   : > { %5360 = vtanh.f32 %v3385_v22  ;;  %v3394_v43 = vmul.f32 0.7978846, %v3330_v45  ;;  %v3328_v25 = vadd.f32 %v7519_v6, %v7443_v19  ;;  %v3332_v33 = vadd.f32 %v7569_v11, %v7464_v34 }
 0x9bf   : > { %v7695_v9 = vmul.f32 0.5, %v7343_v4  ;;  %v7698_v55 = vmul.f32 0.5, %v7386_v26  ;;  %5362 = vtanh.f32 %v3383_v49  ;;  %v3325_v17 = vadd.f32 %v7506_v52, %v7422_v32  ;;  %v8028_v52 = vld [vmem:[#allocation35_spill] sm:$0xff] }
 0x9c0   : > { %5364 = vtanh.f32 %v3387_v0  ;;  %v3392_v39 = vmul.f32 0.7978846, %v3328_v25  ;;  %v3396_v1 = vmul.f32 0.7978846, %v3332_v33  ;;  %v3329_v41 = vadd.f32 %v8027_v5, %v8026_v42  ;;  %v8030_v25 = vld [vmem:[#allocation37_spill] sm:$0xff] }
 0x9c1   : > { %v5351_v6 = vpop.eup %5350  ;;  %v7705_v22 = vmul.f32 0.5, %v7431_v3  ;;  %v7708_v4 = vmul.f32 0.5, %v7460_v24  ;;  %5366 = vtanh.f32 %v3390_v13  ;;  %v3389_v26 = vmul.f32 0.7978846, %v3325_v17  ;;  %v8031_v3 = vld [vmem:[#allocation38_spill] sm:$0xff] }
 0x9c2   : > { %v5353_v11 = vpop.eup %5352  ;;  %v3510_v36 = vadd.f32 1.0, %v5351_v6  ;;  %5368 = vtanh.f32 %v3394_v43  ;;  %v3393_v16 = vmul.f32 0.7978846, %v3329_v41  ;;  %v3327_v49 = vadd.f32 %v8029_v56, %v8028_v52 }
 0x9c3   : > { %v3514_v0 = vadd.f32 1.0, %v5353_v11  ;;  %v7713_v45 = vmul.f32 0.5, %v7443_v19  ;;  %5370 = vtanh.f32 %v3392_v39  ;;  %v3331_v33 = vadd.f32 %v8031_v3, %v8030_v25 }
 0x9c4   : > { %v3574_v5 = vmul.f32 %v3510_v36, %v3062_v21  ;;  %v7718_v24 = vmul.f32 0.5, %v7464_v34  ;;  %5372 = vtanh.f32 %v3396_v1  ;;  %v3391_v13 = vmul.f32 0.7978846, %v3327_v49 }
 0x9c5   : > { %v5355_v17 = vpop.eup %5354  ;;  %v3578_v43 = vmul.f32 %v3514_v0, %v3066_v14  ;;  %5374 = vtanh.f32 %v3389_v26  ;;  %v3395_v41 = vmul.f32 0.7978846, %v3331_v33  ;;  %v3334_v6 = vadd.f32 %v7606_v62, %v7499_v37 }
 0x9c6   : > { %v5357_v11 = vpop.eup %5356  ;;  %v3512_v19 = vadd.f32 1.0, %v5355_v17  ;;  %v7723_v39 = vmul.f32 0.5, %v7422_v32  ;;  %5376 = vtanh.f32 %v3393_v16  ;;  %v3338_v21 = vadd.f32 %v7627_v20, %v7534_v57 }
 0x9c7   : > { %v5359_v34 = vpop.eup %5358  ;;  %v3638_v36 = vpack.c.bf16 %v3578_v43, %v3574_v5  ;;  %v3516_v1 = vadd.f32 1.0, %v5357_v11  ;;  %5378 = vtanh.f32 %v3391_v13  ;;  %v3398_v56 = vmul.f32 0.7978846, %v3334_v6 }
 0x9c8   : > { %v5361_v14 = vpop.eup %5360  ;;  %v3509_v26 = vadd.f32 1.0, %v5359_v34  ;;  %v3073_v49 = vmul.f32 0.5, %v8026_v42  ;;  %5380 = vtanh.f32 %v3395_v41  ;;  %v3402_v62 = vmul.f32 0.7978846, %v3338_v21 }
 0x9c9   : > { %v5363_v0 = vpop.eup %5362  ;;  %3973 = vmatprep.mubr.bf16.mxu0 %v3638_v36  ;;  %v3576_v32 = vmul.f32 %v3512_v19, %v7670_v35  ;;  %v3580_v16 = vmul.f32 %v3516_v1, %v7680_v60  ;;  %v3513_v3 = vadd.f32 1.0, %v5361_v14  ;;  %5382 = vtanh.f32 %v3398_v56 }
 0x9ca   : > { %v5365_v20 = vpop.eup %5364  ;;  %v3573_v33 = vmul.f32 %v3509_v26, %v3061_v46  ;;  %v3511_v5 = vadd.f32 1.0, %v5363_v0  ;;  %5384 = vtanh.f32 %v3402_v62  ;;  %v3336_v13 = vadd.f32 %v7615_v50, %v7516_v2 }
 0x9cb   : > { %v5367_v17 = vpop.eup %5366  ;;  %v3640_v43 = vpack.c.bf16 %v3580_v16, %v3576_v32  ;;  %v3577_v42 = vmul.f32 %v3513_v3, %v7688_v44  ;;  %v3515_v41 = vadd.f32 1.0, %v5365_v20  ;;  %v3340_v6 = vadd.f32 %v7630_v48, %v7538_v18  ;;  %v8032_v16 = vld [vmem:[#allocation32_spill] sm:$0xff]  ;;  %v8033_v3 = vld [vmem:[#allocation39_spill] sm:$0xff] }
 0x9cc   : > { %v5369_v35 = vpop.eup %5368  ;;  %v3575_v60 = vmul.f32 %v3511_v5, %v7695_v9  ;;  %v3518_v11 = vadd.f32 1.0, %v5367_v17  ;;  %v3071_v19 = vmul.f32 0.5, %v8028_v52  ;;  %v3400_v46 = vmul.f32 0.7978846, %v3336_v13 }
 0x9cd   : > { %v5371_v21 = vpop.eup %5370  ;;  %4070 = vmatprep.mubr.bf16.mxu1 %v3640_v43  ;;  %v3637_v34 = vpack.c.bf16 %v3577_v42, %v3573_v33  ;;  %v3579_v50 = vmul.f32 %v3515_v41, %v7698_v55  ;;  %v3522_v36 = vadd.f32 1.0, %v5369_v35  ;;  %v3404_v1 = vmul.f32 0.7978846, %v3340_v6 }
 0x9ce   : > { %v5373_v56 = vpop.eup %5372  ;;  %v3582_v44 = vmul.f32 %v3518_v11, %v7705_v22  ;;  %v3520_v14 = vadd.f32 1.0, %v5371_v21  ;;  %v3075_v48 = vmul.f32 0.5, %v8030_v25  ;;  %5386 = vtanh.f32 %v3400_v46 }
 0x9cf   : > { %v5375_v26 = vpop.eup %5374  ;;  %3974 = vmatmul.mubr.bf16.gmra.mrb[96].mxu0 %v3637_v34  ;;  %v3639_v9 = vpack.c.bf16 %v3579_v50, %v3575_v60  ;;  %v3586_v52 = vmul.f32 %v3522_v36, %v7708_v4  ;;  %v3524_v62 = vadd.f32 1.0, %v5373_v56  ;;  %5388 = vtanh.f32 %v3404_v1 }
 0x9d0   : > { %v5377_v0 = vpop.eup %5376  ;;  %v3517_v32 = vadd.f32 1.0, %v5375_v26  ;;  %v3078_v55 = vmul.f32 0.5, %v7499_v37  ;;  %v3333_v20 = vadd.f32 %v8033_v3, %v8032_v16  ;;  %v3337_v22 = vadd.f32 %v7618_v7, %v7525_v63 }
 0x9d1   : > { %v5379_v33 = vpop.eup %5378  ;;  %4071 = vmatmul.mubr.bf16.gmra.mrb[128].mxu1 %v3639_v9  ;;  %v3642_v25 = vpack.c.bf16 %v3586_v52, %v3582_v44  ;;  %v3584_v5 = vmul.f32 %v3520_v14, %v7713_v45  ;;  %v3588_v13 = vmul.f32 %v3524_v62, %v7718_v24  ;;  %v3521_v4 = vadd.f32 1.0, %v5377_v0 }
 0x9d2   : > { %v5381_v17 = vpop.eup %5380  ;;  %v3519_v43 = vadd.f32 1.0, %v5379_v33  ;;  %v3082_v42 = vmul.f32 0.5, %v7534_v57  ;;  %v3397_v41 = vmul.f32 0.7978846, %v3333_v20  ;;  %v3401_v37 = vmul.f32 0.7978846, %v3337_v22 }
 0x9d3   : > { %v5383_v6 = vpop.eup %5382  ;;  %3981 = vmatprep.mubr.bf16.mxu0 %v3642_v25  ;;  %v3644_v35 = vpack.c.bf16 %v3588_v13, %v3584_v5  ;;  %v3581_v60 = vmul.f32 %v3517_v32, %v7723_v39  ;;  %v3585_v7 = vmul.f32 %v3521_v4, %v3073_v49  ;;  %v3523_v11 = vadd.f32 1.0, %v5381_v17 }
 0x9d4   : > { %v5385_v46 = vpop.eup %5384  ;;  %v3583_v21 = vmul.f32 %v3519_v43, %v3071_v19  ;;  %v3526_v34 = vadd.f32 1.0, %v5383_v6  ;;  %5390 = vtanh.f32 %v3397_v41  ;;  %v3335_v45 = vadd.f32 %v7583_v23, %v7486_v53 }
 0x9d5   : > { %4078 = vmatprep.mubr.bf16.mxu1 %v3644_v35  ;;  %v3641_v24 = vpack.c.bf16 %v3585_v7, %v3581_v60  ;;  %v3587_v50 = vmul.f32 %v3523_v11, %v3075_v48  ;;  %v3530_v57 = vadd.f32 1.0, %v5385_v46  ;;  %5392 = vtanh.f32 %v3401_v37 }
 0x9d6   : > { %v3281_v36 = vmul.f32 %v7650_v30, %v7593_v12  ;;  %v3284_v39 = vmul.f32 %v7667_v47, %v7612_v27  ;;  %v3339_v49 = vadd.f32 %v7624_v40, %v7530_v8  ;;  %v3399_v19 = vmul.f32 0.7978846, %v3335_v45 }
 0x9d7   : > { %3982 = vmatmul.mubr.bf16.gmra.mrb[100].mxu0 %v3641_v24  ;;  %v3643_v1 = vpack.c.bf16 %v3587_v50, %v3583_v21  ;;  %v3590_v56 = vmul.f32 %v3526_v34, %v3078_v55  ;;  %v3594_v44 = vmul.f32 %v3530_v57, %v3082_v42  ;;  %v3342_v23 = vadd.f32 %v7643_v58, %v7563_v28 }
 0x9d8   : > { %v5387_v14 = vpop.eup %5386  ;;  %v3080_v48 = vmul.f32 0.5, %v7516_v2  ;;  %v3403_v26 = vmul.f32 0.7978846, %v3339_v49  ;;  %5394 = vtanh.f32 %v3399_v19  ;;  %v3346_v30 = vadd.f32 %v7677_v54, %v7603_v15 }
 0x9d9   : > { %v5389_v47 = vpop.eup %5388  ;;  %4079 = vmatmul.mubr.bf16.gmra.mrb[132].mxu1 %v3643_v1  ;;  %v3646_v9 = vpack.c.bf16 %v3594_v44, %v3590_v56  ;;  %v3084_v40 = vmul.f32 0.5, %v7538_v18  ;;  %v3528_v52 = vadd.f32 1.0, %v5387_v14  ;;  %v3406_v62 = vmul.f32 0.7978846, %v3342_v23 }
 0x9da   : > { %v3532_v0 = vadd.f32 1.0, %v5389_v47  ;;  %5396 = vtanh.f32 %v3403_v26  ;;  %v3410_v32 = vmul.f32 0.7978846, %v3346_v30  ;;  %v3344_v58 = vadd.f32 %v7646_v31, %v7580_v59 }
 0x9db   : > { %v3283_v2 = vmul.f32 %v7660_v38, %v7599_v61  ;;  %3989 = vmatprep.mubr.bf16.mxu0 %v3646_v9  ;;  %5398 = vtanh.f32 %v3406_v62  ;;  %v3348_v54 = vadd.f32 %v3284_v39, %v7612_v27  ;;  %v3592_v55 = vmul.f32 %v3528_v52, %v3080_v48  ;;  %v8034_v38 = vld [vmem:[#allocation40_spill] sm:$0xff] }
 0x9dc   : > { %v3596_v3 = vmul.f32 %v3532_v0, %v3084_v40  ;;  %5400 = vtanh.f32 %v3410_v32  ;;  %v3408_v20 = vmul.f32 0.7978846, %v3344_v58  ;;  %v3341_v22 = vadd.f32 %v7634_v51, %v7553_v29 }
 0x9dd   : > { %v3412_v18 = vmul.f32 0.7978846, %v3348_v54  ;;  %v3345_v33 = vadd.f32 %v3281_v36, %v7593_v12  ;;  %v3077_v31 = vmul.f32 0.5, %v8032_v16  ;;  %v3343_v13 = vadd.f32 %v8034_v38, %v7559_v10 }
 0x9de   : > { %v5391_v25 = vpop.eup %5390  ;;  %v3648_v5 = vpack.c.bf16 %v3596_v3, %v3592_v55  ;;  %5402 = vtanh.f32 %v3408_v20  ;;  %v3405_v43 = vmul.f32 0.7978846, %v3341_v22  ;;  %v3081_v41 = vmul.f32 0.5, %v7525_v63 }
 0x9df   : > { %v5393_v4 = vpop.eup %5392  ;;  %v3525_v17 = vadd.f32 1.0, %v5391_v25  ;;  %5404 = vtanh.f32 %v3412_v18  ;;  %v3409_v42 = vmul.f32 0.7978846, %v3345_v33  ;;  %v3347_v51 = vadd.f32 %v3283_v2, %v7599_v61 }
 0x9e0   : > { %4086 = vmatprep.mubr.bf16.mxu1 %v3648_v5  ;;  %v3529_v37 = vadd.f32 1.0, %v5393_v4  ;;  %v3407_v6 = vmul.f32 0.7978846, %v3343_v13  ;;  %5406 = vtanh.f32 %v3405_v43  ;;  %v3079_v45 = vmul.f32 0.5, %v7486_v53 }
 0x9e1   : > { %v3589_v60 = vmul.f32 %v3525_v17, %v3077_v31  ;;  %5408 = vtanh.f32 %v3409_v42  ;;  %v3411_v7 = vmul.f32 0.7978846, %v3347_v51  ;;  %v3083_v63 = vmul.f32 0.5, %v7530_v8  ;;  %v7793_v51 = vld [vmem:[%s7916_s14] ss:$0 sm:$0xff] }
 0x9e2   : > { %v5395_v35 = vpop.eup %5394  ;;  %v3593_v16 = vmul.f32 %v3529_v37, %v3081_v41  ;;  %5410 = vtanh.f32 %v3407_v6  ;;  %v3086_v57 = vmul.f32 0.5, %v7563_v28  ;;  %v3090_v19 = vmul.f32 0.5, %v7603_v15  ;;  %v8035_v6 = vld [vmem:[#allocation12_spill] sm:$0xff] }
 0x9e3   : > { %v3527_v11 = vadd.f32 1.0, %v5395_v35  ;;  %5412 = vtanh.f32 %v3411_v7  ;;  %v3088_v53 = vmul.f32 0.5, %v7580_v59  ;;  %v3092_v8 = vmul.f32 0.5, %v7612_v27  ;;  %v8036_v7 = vld [vmem:[#allocation13_spill] sm:$0xff] }
 0x9e4   : > { %v5397_v46 = vpop.eup %5396  ;;  %v3645_v21 = vpack.c.bf16 %v3593_v16, %v3589_v60  ;;  %v3085_v0 = vmul.f32 0.5, %v7553_v29  ;;  %v3089_v32 = vmul.f32 0.5, %v7593_v12  ;;  %v3087_v59 = vmul.f32 0.5, %v7559_v10 }
 0x9e5   : > { %v5399_v34 = vpop.eup %5398  ;;  %v3531_v24 = vadd.f32 1.0, %v5397_v46  ;;  %v3591_v39 = vmul.f32 %v3527_v11, %v3079_v45  ;;  %v3091_v20 = vmul.f32 0.5, %v7599_v61 }
 0x9e6   : > { %v5401_v50 = vpop.eup %5400  ;;  %3990 = vmatmul.mubr.bf16.gmra.mrb[104].mxu0 %v3645_v21  ;;  %v3534_v36 = vadd.f32 1.0, %v5399_v34 }
 0x9e7   : > { %v3595_v49 = vmul.f32 %v3531_v24, %v3083_v63  ;;  %v3538_v1 = vadd.f32 1.0, %v5401_v50 }
 0x9e8   : > { %v5403_v56 = vpop.eup %5402  ;;  %v3598_v14 = vmul.f32 %v3534_v36, %v3086_v57 }
 0x9e9   : > { %v5405_v44 = vpop.eup %5404  ;;  %v3647_v23 = vpack.c.bf16 %v3595_v49, %v3591_v39  ;;  %v3602_v48 = vmul.f32 %v3538_v1, %v3090_v19  ;;  %v3536_v26 = vadd.f32 1.0, %v5403_v56 }
 0x9ea   : > { %v3540_v30 = vadd.f32 1.0, %v5405_v44  ;;  %v5407_v47 = vpop.eup %5406  ;;  %v8037_v44 = vld [vmem:[#allocation14_spill] sm:$0xff] }
 0x9eb   : > { %4087 = vmatmul.mubr.bf16.gmra.mrb[136].mxu1 %v3647_v23  ;;  %v3650_v28 = vpack.c.bf16 %v3602_v48, %v3598_v14  ;;  %v5409_v9 = vpop.eup %5408  ;;  %v3600_v40 = vmul.f32 %v3536_v26, %v3088_v53  ;;  %v3533_v62 = vadd.f32 1.0, %v5407_v47  ;;  %v8038_v26 = vld [vmem:[#allocation15_spill] sm:$0xff] }
 0x9ec   : > { %v3604_v52 = vmul.f32 %v3540_v30, %v3092_v8  ;;  %v5411_v15 = vpop.eup %5410  ;;  %v3537_v58 = vadd.f32 1.0, %v5409_v9 }
 0x9ed   : > { %3997 = vmatprep.mubr.bf16.mxu0 %v3650_v28  ;;  %v5413_v2 = vpop.eup %5412  ;;  %v3535_v27 = vadd.f32 1.0, %v5411_v15  ;;  %v3597_v55 = vmul.f32 %v3533_v62, %v3085_v0 }
 0x9ee   : > { %v3652_v54 = vpack.c.bf16 %v3604_v52, %v3600_v40  ;;  %v3601_v3 = vmul.f32 %v3537_v58, %v3089_v32  ;;  %v3539_v18 = vadd.f32 1.0, %v5413_v2 }
 0x9ef   : > { %v3599_v33 = vmul.f32 %v3535_v27, %v3087_v59  ;;  %v8039_v59 = vld [vmem:[#allocation16_spill] sm:$0xff] }
 0x9f0   : > { %4094 = vmatprep.mubr.bf16.mxu1 %v3652_v54  ;;  %v3649_v22 = vpack.c.bf16 %v3601_v3, %v3597_v55  ;;  %v3603_v25 = vmul.f32 %v3539_v18, %v3091_v20  ;;  %v8040_v20 = vld [vmem:[#allocation17_spill] sm:$0xff] }
 0x9f2   : > { %3998 = vmatmul.mubr.bf16.gmra.mrb[108].mxu0 %v3649_v22  ;;  %v3651_v29 = vpack.c.bf16 %v3603_v25, %v3599_v33 }
 0x9f4   : > { %4095 = vmatmul.mubr.bf16.gmra.mrb[140].mxu1 %v3651_v29 }
 0xa4d   : > { %v4555_v12 = vpop.f32.mrb[80].mxu0 }
 0xa4e   : > { %v4556_v5 = vpop.f32.mrb[81].mxu0 }
 0xa4f   : > { %v4557_v31 = vadd.f32 %v4556_v5, %v4555_v12  ;;  %v4558_v38 = vpop.f32.mrb[82].mxu0 }
 0xa50   : > { %v4619_v10 = vpop.f32.mrb[112].mxu1  ;;  %v4559_v13 = vpop.f32.mrb[83].mxu0 }
 0xa51   : > { %v4620_v4 = vpop.f32.mrb[113].mxu1  ;;  %v4560_v17 = vadd.f32 %v4559_v13, %v4558_v38 }
 0xa52   : > { %v4621_v43 = vadd.f32 %v4620_v4, %v4619_v10  ;;  %v4622_v61 = vpop.f32.mrb[114].mxu1 }
 0xa53   : > { %v4623_v42 = vpop.f32.mrb[115].mxu1 }
 0xa54   : > { %v4041_v41 = vadd.f32 %v4621_v43, %v4557_v31  ;;  %v4624_v37 = vadd.f32 %v4623_v42, %v4622_v61  ;;  %v8041_v42 = vld [vmem:[#allocation18_spill] sm:$0xff] }
 0xa56   : > { %v4170_v35 = vadd.f32 %v4041_v41, %v8035_v6  ;;  %v4044_v60 = vadd.f32 %v4624_v37, %v4560_v17 }
 0xa58   : > { %v4193_v16 = vadd.f32 %v7793_v51, %v4170_v35  ;;  %v4171_v11 = vadd.f32 %v4044_v60, %v8036_v7  ;;  %v8042_v35 = vld [vmem:[#allocation19_spill] sm:$0xff] }
 0xa5a   : > { %v4561_v46 = vpop.f32.mrb[84].mxu0  ;;  %4209 = vst [vmem:[%s7798_s0] sm:$0xff] %v4193_v16  ;;  %v4194_v34 = vadd.f32 %v7793_v51, %v4171_v11 }
 0xa5b   : > { %v4562_v21 = vpop.f32.mrb[85].mxu0 }
 0xa5c   : > { %v4563_v63 = vadd.f32 %v4562_v21, %v4561_v46  ;;  %v4564_v24 = vpop.f32.mrb[86].mxu0  ;;  %4210 = vst [vmem:[%s7798_s0 + $0x8] sm:$0xff] %v4194_v34 }
 0xa5d   : > { %v4625_v45 = vpop.f32.mrb[116].mxu1  ;;  %v4565_v57 = vpop.f32.mrb[87].mxu0 }
 0xa5e   : > { %v4626_v50 = vpop.f32.mrb[117].mxu1  ;;  %v4566_v49 = vadd.f32 %v4565_v57, %v4564_v24 }
 0xa5f   : > { %v4627_v36 = vadd.f32 %v4626_v50, %v4625_v45  ;;  %v4628_v39 = vpop.f32.mrb[118].mxu1 }
 0xa60   : > { %v4629_v19 = vpop.f32.mrb[119].mxu1 }
 0xa61   : > { %v4049_v1 = vadd.f32 %v4627_v36, %v4563_v63  ;;  %v4630_v56 = vadd.f32 %v4629_v19, %v4628_v39  ;;  %v8043_v19 = vld [vmem:[#allocation20_spill] sm:$0xff] }
 0xa63   : > { %v4172_v23 = vadd.f32 %v4049_v1, %v8037_v44  ;;  %v4052_v14 = vadd.f32 %v4630_v56, %v4566_v49 }
 0xa65   : > { %v4195_v48 = vadd.f32 %v7793_v51, %v4172_v23  ;;  %v4173_v53 = vadd.f32 %v4052_v14, %v8038_v26  ;;  %v4567_v8 = vpop.f32.mrb[88].mxu0 }
 0xa66   : > { %v4568_v30 = vpop.f32.mrb[89].mxu0 }
 0xa67   : > { %4211 = vst [vmem:[%s7798_s0 + $0x10] sm:$0xff] %v4195_v48  ;;  %v4196_v47 = vadd.f32 %v7793_v51, %v4173_v53  ;;  %v4569_v28 = vadd.f32 %v4568_v30, %v4567_v8  ;;  %v4570_v9 = vpop.f32.mrb[90].mxu0  ;;  %v4631_v62 = vpop.f32.mrb[120].mxu1  ;;  %v8044_v48 = vld [vmem:[#allocation21_spill] sm:$0xff] }
 0xa68   : > { %v4571_v40 = vpop.f32.mrb[91].mxu0  ;;  %v4632_v15 = vpop.f32.mrb[121].mxu1 }
 0xa69   : > { %4212 = vst [vmem:[%s7798_s0 + $0x18] sm:$0xff] %v4196_v47  ;;  %v4572_v52 = vadd.f32 %v4571_v40, %v4570_v9  ;;  %v4633_v0 = vadd.f32 %v4632_v15, %v4631_v62  ;;  %v4634_v32 = vpop.f32.mrb[122].mxu1 }
 0xa6a   : > { %v4635_v58 = vpop.f32.mrb[123].mxu1 }
 0xa6b   : > { %v4057_v2 = vadd.f32 %v4633_v0, %v4569_v28  ;;  %v4636_v54 = vadd.f32 %v4635_v58, %v4634_v32  ;;  %v8045_v58 = vld [vmem:[#allocation22_spill] sm:$0xff] }
 0xa6d   : > { %v4174_v27 = vadd.f32 %v4057_v2, %v8039_v59  ;;  %v4060_v55 = vadd.f32 %v4636_v54, %v4572_v52 }
 0xa6f   : > { %v4197_v3 = vadd.f32 %v7793_v51, %v4174_v27  ;;  %v4175_v18 = vadd.f32 %v4060_v55, %v8040_v20  ;;  %v8046_v27 = vld [vmem:[#allocation23_spill] sm:$0xff] }
 0xa71   : > { %4213 = vst [vmem:[%s7798_s0 + $0x20] sm:$0xff] %v4197_v3  ;;  %v4198_v22 = vadd.f32 %v7793_v51, %v4175_v18 }
 0xa73   : > { %4214 = vst [vmem:[%s7798_s0 + $0x28] sm:$0xff] %v4198_v22 }
 0xa75   : > { %v4573_v33 = vpop.f32.mrb[92].mxu0 }
 0xa76   : > { %v4574_v25 = vpop.f32.mrb[93].mxu0 }
 0xa77   : > { %v4637_v29 = vpop.f32.mrb[124].mxu1  ;;  %v4575_v12 = vadd.f32 %v4574_v25, %v4573_v33  ;;  %v4576_v5 = vpop.f32.mrb[94].mxu0 }
 0xa78   : > { %v4638_v31 = vpop.f32.mrb[125].mxu1  ;;  %v4577_v38 = vpop.f32.mrb[95].mxu0 }
 0xa79   : > { %v4639_v10 = vadd.f32 %v4638_v31, %v4637_v29  ;;  %v4640_v13 = vpop.f32.mrb[126].mxu1  ;;  %v4578_v4 = vadd.f32 %v4577_v38, %v4576_v5 }
 0xa7a   : > { %v4641_v17 = vpop.f32.mrb[127].mxu1 }
 0xa7b   : > { %v4065_v43 = vadd.f32 %v4639_v10, %v4575_v12  ;;  %v4642_v61 = vadd.f32 %v4641_v17, %v4640_v13  ;;  %v8047_v17 = vld [vmem:[#allocation24_spill] sm:$0xff] }
 0xa7d   : > { %v4176_v41 = vadd.f32 %v4065_v43, %v8041_v42  ;;  %v4068_v37 = vadd.f32 %v4642_v61, %v4578_v4 }
 0xa7f   : > { %v4199_v6 = vadd.f32 %v7793_v51, %v4176_v41  ;;  %v4177_v60 = vadd.f32 %v4068_v37, %v8042_v35  ;;  %v8048_v41 = vld [vmem:[#allocation25_spill] sm:$0xff] }
 0xa81   : > { %4215 = vst [vmem:[%s7798_s0 + $0x30] sm:$0xff] %v4199_v6  ;;  %v4200_v16 = vadd.f32 %v7793_v51, %v4177_v60 }
 0xa83   : > { %4216 = vst [vmem:[%s7798_s0 + $0x38] sm:$0xff] %v4200_v16 }
 0xaa2   : > { %v4579_v7 = vpop.f32.mrb[96].mxu0 }
 0xaa3   : > { %v4580_v11 = vpop.f32.mrb[97].mxu0 }
 0xaa4   : > { %v4643_v46 = vpop.f32.mrb[128].mxu1  ;;  %v4581_v21 = vadd.f32 %v4580_v11, %v4579_v7  ;;  %v4582_v34 = vpop.f32.mrb[98].mxu0 }
 0xaa5   : > { %v4644_v45 = vpop.f32.mrb[129].mxu1  ;;  %v4583_v63 = vpop.f32.mrb[99].mxu0 }
 0xaa6   : > { %v4645_v24 = vadd.f32 %v4644_v45, %v4643_v46  ;;  %v4646_v50 = vpop.f32.mrb[130].mxu1  ;;  %v4584_v57 = vadd.f32 %v4583_v63, %v4582_v34 }
 0xaa7   : > { %v4647_v36 = vpop.f32.mrb[131].mxu1 }
 0xaa8   : > { %v4073_v39 = vadd.f32 %v4645_v24, %v4581_v21  ;;  %v4648_v49 = vadd.f32 %v4647_v36, %v4646_v50  ;;  %v8049_v36 = vld [vmem:[#allocation26_spill] sm:$0xff] }
 0xaaa   : > { %v4178_v1 = vadd.f32 %v4073_v39, %v8043_v19  ;;  %v4076_v56 = vadd.f32 %v4648_v49, %v4584_v57  ;;  %v4585_v44 = vpop.f32.mrb[100].mxu0 }
 0xaab   : > { %v4586_v23 = vpop.f32.mrb[101].mxu0 }
 0xaac   : > { %v4201_v14 = vadd.f32 %v7793_v51, %v4178_v1  ;;  %v4179_v26 = vadd.f32 %v4076_v56, %v8044_v48  ;;  %v4649_v53 = vpop.f32.mrb[132].mxu1  ;;  %v4587_v8 = vadd.f32 %v4586_v23, %v4585_v44  ;;  %v4588_v30 = vpop.f32.mrb[102].mxu0  ;;  %v8050_v1 = vld [vmem:[#allocation27_spill] sm:$0xff] }
 0xaad   : > { %v4650_v47 = vpop.f32.mrb[133].mxu1  ;;  %v4589_v28 = vpop.f32.mrb[103].mxu0 }
 0xaae   : > { %4217 = vst [vmem:[%s7798_s0 + $0x40] sm:$0xff] %v4201_v14  ;;  %v4202_v9 = vadd.f32 %v7793_v51, %v4179_v26  ;;  %v4651_v40 = vadd.f32 %v4650_v47, %v4649_v53  ;;  %v4652_v52 = vpop.f32.mrb[134].mxu1  ;;  %v4590_v62 = vadd.f32 %v4589_v28, %v4588_v30 }
 0xaaf   : > { %v4653_v15 = vpop.f32.mrb[135].mxu1 }
 0xab0   : > { %4218 = vst [vmem:[%s7798_s0 + $0x48] sm:$0xff] %v4202_v9  ;;  %v4081_v0 = vadd.f32 %v4651_v40, %v4587_v8  ;;  %v4654_v32 = vadd.f32 %v4653_v15, %v4652_v52 }
 0xab2   : > { %v4180_v2 = vadd.f32 %v4081_v0, %v8045_v58  ;;  %v4084_v54 = vadd.f32 %v4654_v32, %v4590_v62 }
 0xab4   : > { %v4203_v59 = vadd.f32 %v7793_v51, %v4180_v2  ;;  %v4181_v55 = vadd.f32 %v4084_v54, %v8046_v27 }
 0xab6   : > { %4219 = vst [vmem:[%s7798_s0 + $0x50] sm:$0xff] %v4203_v59  ;;  %v4204_v3 = vadd.f32 %v7793_v51, %v4181_v55 }
 0xab8   : > { %4220 = vst [vmem:[%s7798_s0 + $0x58] sm:$0xff] %v4204_v3 }
 0xab9   : > { %v4591_v20 = vpop.f32.mrb[104].mxu0 }
 0xaba   : > { %v4592_v18 = vpop.f32.mrb[105].mxu0 }
 0xabb   : > { %v4593_v22 = vadd.f32 %v4592_v18, %v4591_v20  ;;  %v4594_v33 = vpop.f32.mrb[106].mxu0 }
 0xabc   : > { %v4595_v25 = vpop.f32.mrb[107].mxu0 }
 0xabd   : > { %v4596_v29 = vadd.f32 %v4595_v25, %v4594_v33 }
 0xabe   : > { %v4655_v12 = vpop.f32.mrb[136].mxu1 }
 0xabf   : > { %v4656_v5 = vpop.f32.mrb[137].mxu1 }
 0xac0   : > { %v4657_v31 = vadd.f32 %v4656_v5, %v4655_v12  ;;  %v4658_v38 = vpop.f32.mrb[138].mxu1 }
 0xac1   : > { %v4659_v10 = vpop.f32.mrb[139].mxu1 }
 0xac2   : > { %v4089_v13 = vadd.f32 %v4657_v31, %v4593_v22  ;;  %v4660_v4 = vadd.f32 %v4659_v10, %v4658_v38 }
 0xac4   : > { %v4182_v43 = vadd.f32 %v4089_v13, %v8047_v17  ;;  %v4092_v61 = vadd.f32 %v4660_v4, %v4596_v29 }
 0xac5   : > { %v4597_v6 = vpop.f32.mrb[108].mxu0 }
 0xac6   : > { %v4205_v42 = vadd.f32 %v7793_v51, %v4182_v43  ;;  %v4183_v37 = vadd.f32 %v4092_v61, %v8048_v41  ;;  %v4598_v35 = vpop.f32.mrb[109].mxu0 }
 0xac7   : > { %v4661_v16 = vpop.f32.mrb[140].mxu1  ;;  %v4599_v7 = vadd.f32 %v4598_v35, %v4597_v6  ;;  %v4600_v11 = vpop.f32.mrb[110].mxu0 }
 0xac8   : > { %4221 = vst [vmem:[%s7798_s0 + $0x60] sm:$0xff] %v4205_v42  ;;  %v4206_v60 = vadd.f32 %v7793_v51, %v4183_v37  ;;  %v4662_v46 = vpop.f32.mrb[141].mxu1  ;;  %v4601_v21 = vpop.f32.mrb[111].mxu0 }
 0xac9   : > { %v4663_v34 = vadd.f32 %v4662_v46, %v4661_v16  ;;  %v4664_v45 = vpop.f32.mrb[142].mxu1  ;;  %v4602_v63 = vadd.f32 %v4601_v21, %v4600_v11 }
 0xaca   : > { %4222 = vst [vmem:[%s7798_s0 + $0x68] sm:$0xff] %v4206_v60  ;;  %v4665_v24 = vpop.f32.mrb[143].mxu1 }
 0xacb   : > { %v4097_v50 = vadd.f32 %v4663_v34, %v4599_v7  ;;  %v4666_v57 = vadd.f32 %v4665_v24, %v4664_v45 }
 0xacd   : > { %v4184_v39 = vadd.f32 %v4097_v50, %v8049_v36  ;;  %v4100_v49 = vadd.f32 %v4666_v57, %v4602_v63 }
 0xacf   : > { %v4207_v19 = vadd.f32 %v7793_v51, %v4184_v39  ;;  %v4185_v56 = vadd.f32 %v4100_v49, %v8050_v1 }
 0xad1   : > { %4223 = vst [vmem:[%s7798_s0 + $0x70] sm:$0xff] %v4207_v19  ;;  %v4208_v44 = vadd.f32 %v7793_v51, %v4185_v56 }
 0xad3   : > { %4224 = vst [vmem:[%s7798_s0 + $0x78] sm:$0xff] %v4208_v44 }
 0xad4   : > { %5443 = shalt.err (!%p5440_p5)
}
 0xad5   : > { %s5444_s16 = scalar_lea.hbm %s7847_s29, 2048  ;;  %s5448_s18 = scalar_lea.hbm %s8052_s27, 4096 }
 0xad6   : > { %p5445_p6 = scmp.ne.s32.totalorder %s7847_s29, %s5444_s16  ;;  %p5449_p10 = scmp.lt.u32.totalorder %s7847_s29, %s8052_s27 }
 0xad7   : > { %p5450_p11 = scmp.lt.u32.totalorder %s5448_s18, %s5444_s16  ;;  %p5452_p13 = scmp.lt.u32.totalorder %s5444_s16, %s7847_s29 }
 0xad8   : > { %p5446_p7 = pnand %p5445_p6, %p5635_p4 }
 0xad9   : > { %p5451_p12 = por %p5450_p11, %p5449_p10 }
 0xada   : > { %p5447_p9 = pneg %p5446_p7 }
 0xadb   : > { %p5453_p0 = por %p5452_p13, %p5451_p12 }
 0xadd   : > { %p5454_p1 = pnand %p5453_p0, %p5447_p9 }
 0xadf   : > { %5457 = shalt.err (!%p5454_p1)
}
 0xae0   : > { %s5513_s17 = smov 128   ;;  %s5514_s22 = smov 8  }
 0xae1   : > { %4875 = dma.vmem_to_hbm [thread:$0]  (%p5635_p4), %s7849_s26, 2048, %s7847_s29, %s7856_s21, %s5513_s17, %s5513_s17, %s5514_s22  }
 0xae2 PF: > { %s8053_s0 = sld [smem:[#allocation8_spill]]  ;;  %p4881_p2 = scmp.ge.s32.totalorder %s5508_s23, 2 }
 0xae4   : > { %p4878_p3 = pnand %p4881_p2, %p5642_p8 }
 0xae8   : > { %s4254_s15 = sand.u32 1, %s8053_s0  }
 0xae9   : > { %s4255_s16 = scalar_lea.sflag [#allocation6], %s4254_s15 }
 0xaea   : > { %5483 = dma.done.wait (!%p4878_p3), %s4255_s16, 2048  }
 0xaeb   : > { %5485 = vsyncadd (!%p4878_p3), %s4255_s16, 4294965248  ;;  %s28_s23 = sadd.s32 1, %s5508_s23   ;;  %s8054_s24 = sld [smem:[#allocation11_spill]] }
 0xaec   : > { %p25_p5 = scmp.ge.s32.totalorder %s28_s23, 4   ;;  %s8055_s21 = sld [smem:[#allocation9_spill]] }
 0xaed   : > { %s8056_s22 = sld [smem:[#allocation10_spill]]  ;;  %s8057_s18 = smov %s5492_s19 }
 0xaee   : > { %s8058_s19 = smov %s5496_s20  ;;  %27 = sbr.rel (!%p25_p5) target bundleno = 7 (0x7), region = 123 }
 0xaf1   : > { %s8059_s20 = smov %s8054_s24 }
 0xaf5   :  { %4260 = vsyncpa [#allocation6], 1 }
 0xaf6   :  { %4262 = vsyncpa [#allocation6 + $0x1], 1 }

</bundles_post_ra>
